<compile_context>
chip_gen: v6e
topology: v6e:2x2x1
jax: 0.10.0
libtpu: 0.0.40
codegen_flags: <defaults>
</compile_context>

<pallas_src>
import functools
import types

import numpy as np
import jax
import jax.numpy as jnp
from jax.experimental import pallas as pl
from jax.experimental.pallas import tpu as pltpu

TILE_N = 128       # voxels per back-projection tile (sublane-blocked)
PH_TILE = 512      # rows per point-head tile (amortize grid-step overhead)
LOSS_TILE = 512    # rows per loss-reduction tile
C_PAD = 128        # lane-padded channel width used by all kernels


def round_up(n, m):
    return ((n + m - 1) // m) * m


# --------------------------------------------------------------------------
# Pallas kernels
# --------------------------------------------------------------------------

def back_project_kernel(pts_ref, projT_ref, pxy_ref, feat_ref, out_ref, *,
                        W_img, H_img, C, V):
    """Project voxels into every view, bilinearly sample features, sum over views.

    pts_ref  : (1, TILE_N, 4)        homogeneous world coords (w=0 for pad rows)
    projT_ref: (1, V, 4, 4)          KRcam^T per view for the current batch
    pxy_ref  : (2, H*W)              pixel-center x / y coordinates (f32 constants)
    feat_ref : (1, V, H*W, C_PAD)    channels-last bf16 feature slabs (VMEM-resident)
    out_ref  : (1, TILE_N, C_PAD)    lanes [0:C]=feature sum, [C]=im_z sum, [C+1]=count
    """
    pts = pts_ref[0]                                     # (TN, 4)
    TN = pts.shape[0]
    HW = pxy_ref.shape[1]

    # Pixel-center grids, broadcast ONCE (hoisted out of the unrolled view loop;
    # avoids per-view int iota + div/mod on a (TN, HW) tensor).
    px = jnp.broadcast_to(pxy_ref[0:1, :], (TN, HW))
    py = jnp.broadcast_to(pxy_ref[1:2, :], (TN, HW))

    feat_sum = jnp.zeros((TN, C_PAD), jnp.float32)
    imz_sum = jnp.zeros((TN, 1), jnp.float32)
    cnt_sum = jnp.zeros((TN, 1), jnp.float32)

    for v in range(V):                                   # V static & small -> unrolled
        P = projT_ref[0, v]                              # (4, 4) == KRcam^T
        im = jnp.dot(pts, P, preferred_element_type=jnp.float32)   # (TN, 4)
        im_z = im[:, 2:3]
        safe_z = jnp.where(im_z > 0, im_z, 1.0)
        im_x = im[:, 0:1] / safe_z
        im_y = im[:, 1:2] / safe_z

        valid = ((im_x >= 0.0) & (im_x <= float(W_img - 1)) &
                 (im_y >= 0.0) & (im_y <= float(H_img - 1)) & (im_z > 0.0))
        validf = valid.astype(jnp.float32)               # (TN, 1)

        # Separable bilinear "hat" weights (zero-padding semantics): only the two
        # neighbouring columns/rows get non-zero weight.  No int iota / % / //.
        wx = jnp.maximum(1.0 - jnp.abs(px - im_x), 0.0)  # (TN, HW)
        wy = jnp.maximum(1.0 - jnp.abs(py - im_y), 0.0)
        w = (wx * wy * validf).astype(jnp.bfloat16)      # bf16 MXU operand

        feat_sum = feat_sum + jnp.dot(w, feat_ref[0, v],
                                      preferred_element_type=jnp.float32)
        imz_sum = imz_sum + im_z * validf
        cnt_sum = cnt_sum + validf

    lane = jax.lax.broadcasted_iota(jnp.int32, (TN, C_PAD), 1)
    out_ref[0] = (feat_sum
                  + jnp.where(lane == C, imz_sum, 0.0)
                  + jnp.where(lane == C + 1, cnt_sum, 0.0))


def point_head_kernel(x_ref, w0_ref, b0_ref, wh_ref, bh_ref, o_ref, *, ch):
    """Point-wise MLP stem (SPVCNN stand-in) fused with the tsdf/occ linear heads.

    Output packing (lane-dense): lanes [0:ch]=hidden feature, [ch]=tsdf, [ch+1]=occ.
    Explicit lane masks keep the packing correct even if pad weights become non-zero.
    """
    x = x_ref[...]                                                  # (PH_TILE, cin_pad) bf16
    h = jnp.dot(x, w0_ref[...], preferred_element_type=jnp.float32) + b0_ref[...]
    h = jnp.maximum(h, 0.0)
    lane = jax.lax.broadcasted_iota(jnp.int32, h.shape, 1)
    h = jnp.where(lane < ch, h, 0.0)
    heads = jnp.dot(h, wh_ref[...], preferred_element_type=jnp.float32) + bh_ref[...]
    heads = jnp.where((lane == ch) | (lane == ch + 1), heads, 0.0)
    o_ref[...] = h + heads                                          # disjoint lane support


def loss_reduce_kernel(p_ref, o_ref):
    """Masked reduction sums for the tsdf/occ loss.

    p_ref columns: 0=tsdf, 1=occ, 2=tsdf_target, 3=occ_target, 4=mask (0 for pad rows)
    o_ref lanes  : 0=n_all, 1=n_pos, 2=sum(-t*logsig(occ)), 3=sum(-(1-t)*logsig(-occ)),
                   4=sum(|logtr(tsdf)-logtr(tgt)|) over positives.
    """
    t = pl.program_id(0)

    @pl.when(t == 0)
    def _():
        o_ref[...] = jnp.zeros_like(o_ref)

    p = p_ref[...]
    tsdf = p[:, 0:1]
    occ = p[:, 1:2]
    tt = p[:, 2:3]
    ot = p[:, 3:4]
    m = p[:, 4:5]

    def logsig(x):  # stable log-sigmoid
        return jnp.minimum(x, 0.0) - jnp.log(1.0 + jnp.exp(-jnp.abs(x)))

    def logtr(x):   # apply_log_transform
        return jnp.sign(x) * jnp.log(jnp.abs(x) + 1.0)

    absdiff = jnp.abs(logtr(tsdf) - logtr(tt))

    lane = jax.lax.broadcasted_iota(jnp.int32, (p.shape[0], 8), 1)  # narrow 8-lane work
    vals = (jnp.where(lane == 0, m, 0.0)
            + jnp.where(lane == 1, m * ot, 0.0)
            + jnp.where(lane == 2, -m * ot * logsig(occ), 0.0)
            + jnp.where(lane == 3, -m * (1.0 - ot) * logsig(-occ), 0.0)
            + jnp.where(lane == 4, m * ot * absdiff, 0.0))
    o_ref[...] += jnp.sum(vals, axis=0, keepdims=True)


# --------------------------------------------------------------------------
# pallas_call wrappers
# --------------------------------------------------------------------------

def run_back_project(pts, projT, pxy, feats_cl, H_img, W_img, C):
    B, Npad, _ = pts.shape
    V = feats_cl.shape[1]
    HW = H_img * W_img
    kernel = functools.partial(back_project_kernel, W_img=W_img, H_img=H_img, C=C, V=V)
    return pl.pallas_call(
        kernel,
        out_shape=jax.ShapeDtypeStruct((B, Npad, C_PAD), jnp.float32),
        grid=(B, Npad // TILE_N),                     # voxel-tile axis innermost so the
        in_specs=[                                    # feature slab stays resident per b
            pl.BlockSpec((1, TILE_N, 4), lambda b, t: (b, t, 0)),
            pl.BlockSpec((1, V, 4, 4), lambda b, t: (b, 0, 0, 0)),
            pl.BlockSpec((2, HW), lambda b, t: (0, 0)),
            pl.BlockSpec((1, V, HW, C_PAD), lambda b, t: (b, 0, 0, 0)),
        ],
        out_specs=pl.BlockSpec((1, TILE_N, C_PAD), lambda b, t: (b, t, 0)),
        compiler_params=pltpu.CompilerParams(
            dimension_semantics=("parallel", "parallel"),
            vmem_limit_bytes=48 << 20),
    )(pts, projT, pxy, feats_cl)


def run_point_head(x_pad, w0, b0, wh, bh, ch):
    Npad, cin_pad = x_pad.shape
    kernel = functools.partial(point_head_kernel, ch=ch)
    return pl.pallas_call(
        kernel,
        out_shape=jax.ShapeDtypeStruct((Npad, C_PAD), jnp.float32),
        grid=(Npad // PH_TILE,),
        in_specs=[
            pl.BlockSpec((PH_TILE, cin_pad), lambda t: (t, 0)),
            pl.BlockSpec((cin_pad, C_PAD), lambda t: (0, 0)),
            pl.BlockSpec((1, C_PAD), lambda t: (0, 0)),
            pl.BlockSpec((C_PAD, C_PAD), lambda t: (0, 0)),
            pl.BlockSpec((1, C_PAD), lambda t: (0, 0)),
        ],
        out_specs=pl.BlockSpec((PH_TILE, C_PAD), lambda t: (t, 0)),
        compiler_params=pltpu.CompilerParams(dimension_semantics=("parallel",)),
    )(x_pad, w0, b0, wh, bh)


def run_loss_reduce(packed):
    Npad = packed.shape[0]
    sums = pl.pallas_call(
        loss_reduce_kernel,
        out_shape=jax.ShapeDtypeStruct((1, 8), jnp.float32),
        grid=(Npad // LOSS_TILE,),
        in_specs=[pl.BlockSpec((LOSS_TILE, 8), lambda t: (t, 0))],
        out_specs=pl.BlockSpec((1, 8), lambda t: (0, 0)),
        compiler_params=pltpu.CompilerParams(dimension_semantics=("arbitrary",)),
    )(packed)
    return sums[0]


# --------------------------------------------------------------------------
# Glue: coordinate utilities (mirroring the PyTorch helpers)
# --------------------------------------------------------------------------

def generate_grid(n_vox, interval):
    rngs = [np.arange(0, n_vox[a], interval) for a in range(3)]
    grid = np.stack(np.meshgrid(*rngs, indexing='ij')).astype(np.float32)  # (3, dx, dy, dz)
    return grid.reshape(3, -1)


# --------------------------------------------------------------------------
# NeuConNet
# --------------------------------------------------------------------------

class NeuConNetPallas:
    def __init__(self, cfg, key):
        self.cfg = cfg
        self.n_scales = len(cfg.THRESHOLDS) - 1
        out_ch_2d = [24, 40, 80]
        alpha = int(cfg.BACKBONE2D_ARC.split('-')[-1])
        self.ch_in = [out_ch_2d[2] * alpha + 1,
                      96 + out_ch_2d[1] * alpha + 2 + 1,
                      48 + out_ch_2d[0] * alpha + 2 + 1,
                      24 + 24 + 2 + 1]
        self.channels = [96, 48, 24]
        # TODO(synk): GRUFusion (cfg.FUSION_ON) and RenderNetwork (cfg.ENABLE_RENDER) are
        # disabled in this synthetic config and not implemented.
        self.params = []
        for i in range(len(cfg.THRESHOLDS)):
            cin, ch = self.ch_in[i], self.channels[i]
            cin_pad = round_up(cin, C_PAD)
            k0, k1, k2, k3, k4, k5, key = jax.random.split(key, 7)
            w0 = jnp.zeros((cin_pad, C_PAD), jnp.float32)
            w0 = w0.at[:cin, :ch].set(jax.random.normal(k0, (cin, ch), jnp.float32) / np.sqrt(cin))
            b0 = jnp.zeros((1, C_PAD), jnp.float32)
            b0 = b0.at[0, :ch].set(jax.random.normal(k1, (ch,), jnp.float32) * 0.01)
            wt = jax.random.normal(k2, (ch,), jnp.float32) / np.sqrt(ch)
            bt = jax.random.normal(k3, (), jnp.float32) * 0.01
            wo = jax.random.normal(k4, (ch,), jnp.float32) / np.sqrt(ch)
            bo = jax.random.normal(k5, (), jnp.float32) * 0.01
            wh = jnp.zeros((C_PAD, C_PAD), jnp.float32)
            wh = wh.at[:ch, ch].set(wt).at[:ch, ch + 1].set(wo)
            bh = jnp.zeros((1, C_PAD), jnp.float32)
            bh = bh.at[0, ch].set(bt).at[0, ch + 1].set(bo)
            self.params.append(dict(w0=w0.astype(jnp.bfloat16), b0=b0, wh=wh, bh=bh,
                                    cin=cin, cin_pad=cin_pad, ch=ch))

    # ---------------- helpers ----------------

    def get_target(self, coords, inputs, scale):
        tsdf_t = np.asarray(inputs['tsdf_list'][scale])
        occ_t = np.asarray(inputs['occ_list'][scale])
        cd = coords.astype(np.int64).copy()
        cd[:, 1:] = cd[:, 1:] // (2 ** scale)
        tsdf_target = tsdf_t[cd[:, 0], cd[:, 1], cd[:, 2], cd[:, 3]]
        occ_target = occ_t[cd[:, 0], cd[:, 1], cd[:, 2], cd[:, 3]]
        return tsdf_target, occ_target

    @staticmethod
    def upsample(pre_feat, pre_coords, interval, num=8):
        pos_list = [1, 2, 3, [1, 2], [1, 3], [2, 3], [1, 2, 3]]
        up_feat = np.repeat(np.asarray(pre_feat), num, axis=0)
        up_coords = np.repeat(pre_coords[:, None, :], num, axis=1).copy()
        for k, pos in enumerate(pos_list):
            up_coords[:, k + 1, np.atleast_1d(pos)] += interval
        return jnp.asarray(up_feat), up_coords.reshape(-1, 4)

    def back_project(self, up_coords, vol_origin, voxel_size, feats, KRcam_bv):
        """feats: (V, B, C, H, W) f32; KRcam_bv: (B, V, 4, 4).  One pallas_call per layer."""
        V, B, C, H, W = feats.shape
        N = up_coords.shape[0]
        origin_np = np.asarray(vol_origin)

        idx_list = [np.nonzero(up_coords[:, 0] == b)[0] for b in range(B)]
        max_nb = max(max(len(ix) for ix in idx_list), 1)
        Npad = round_up(max_nb, TILE_N)

        pts = np.zeros((B, Npad, 4), np.float32)          # pad rows: w=0 -> invalid
        for b, ix in enumerate(idx_list):
            nb = len(ix)
            if nb == 0:
                continue
            pts[b, :nb, :3] = up_coords[ix][:, 1:] * voxel_size + origin_np[b][None, :]
            pts[b, :nb, 3] = 1.0

        projT = jnp.transpose(jnp.asarray(KRcam_bv, jnp.float32), (0, 1, 3, 2))  # (B,V,4,4)
        # NCHW -> channels-last bf16 slab, once per layer (hoisted out of any batch loop)
        feats_cl = jnp.transpose(jnp.asarray(feats, jnp.float32),
                                 (1, 0, 3, 4, 2)).reshape(B, V, H * W, C)
        feats_cl = jnp.pad(feats_cl, ((0, 0), (0, 0), (0, 0),
                                      (0, C_PAD - C))).astype(jnp.bfloat16)
        hw = np.arange(H * W, dtype=np.float32)
        pxy = jnp.asarray(np.stack([hw % W, hw // W], axis=0))                   # (2, HW)

        out = run_back_project(jnp.asarray(pts), projT, pxy, feats_cl, H, W, C)  # (B,Npad,C_PAD)

        # Epilogue (count normalization + per-batch im_z mean/std) stays on device.
        cnt = out[..., C + 1]                              # (B, Npad)
        inscope = jnp.maximum(cnt, 1.0)
        fts = out[..., :C] / inscope[..., None]
        imz = out[..., C] / inscope
        pos = (imz > 0).astype(jnp.float32)
        npos = jnp.maximum(pos.sum(axis=1, keepdims=True), 1.0)
        mean = (imz * pos).sum(axis=1, keepdims=True) / npos
        std = jnp.sqrt((((imz - mean) * pos) ** 2).sum(axis=1, keepdims=True)) + 1e-5
        imz_n = jnp.where(pos > 0, (imz - mean) / std, 0.0)

        volume = jnp.zeros((N, C + 1), jnp.float32)
        count = jnp.zeros((N,), jnp.float32)
        for b, ix in enumerate(idx_list):
            nb = len(ix)
            if nb == 0:
                continue
            rows = jnp.concatenate([fts[b, :nb], imz_n[b, :nb, None]], axis=1)
            volume = volume.at[ix].set(rows)
            count = count.at[ix].set(cnt[b, :nb])
        return volume, count

    def compute_r_coords(self, up_coords, inputs, bs):
        r_coords = up_coords.astype(np.float32).copy()
        w2ac = np.asarray(inputs['world_to_aligned_camera'])
        origin = np.asarray(inputs['vol_origin_partial'])
        for b in range(bs):
            bidx = np.nonzero(up_coords[:, 0] == b)[0]
            cb = up_coords[bidx][:, 1:].astype(np.float32)
            cb = cb * self.cfg.VOXEL_SIZE + origin[b][None, :]
            cb = np.concatenate([cb, np.ones_like(cb[:, :1])], axis=1)
            cb = cb @ w2ac[b, :3, :].T
            r_coords[bidx, 1:] = cb
        return r_coords[:, [1, 2, 3, 0]]

    def compute_loss(self, tsdf, occ, tsdf_target, occ_target,
                     loss_weight=(1, 1), mask=None, pos_weight=1.0):
        tsdf = np.asarray(tsdf).reshape(-1)
        occ = np.asarray(occ).reshape(-1)
        tsdf_target = np.asarray(tsdf_target).reshape(-1).astype(np.float32)
        occ_target = np.asarray(occ_target).reshape(-1).astype(np.float32)
        m = (np.ones_like(occ, np.float32) if mask is None
             else np.asarray(mask).reshape(-1).astype(np.float32))
        N = occ.shape[0]
        Npad = round_up(N, LOSS_TILE)
        packed = np.zeros((Npad, 8), np.float32)
        packed[:N, 0] = tsdf
        packed[:N, 1] = occ
        packed[:N, 2] = tsdf_target
        packed[:N, 3] = occ_target
        packed[:N, 4] = m
        sums = np.asarray(run_loss_reduce(jnp.asarray(packed)))
        n_all, n_p, s_pos, s_neg, s_abs = [float(sums[j]) for j in range(5)]
        if n_p == 0:
            print('warning: target: no valid voxel when computing loss')
            return jnp.asarray(0.0, jnp.float32)
        w_for_1 = (n_all - n_p) / n_p * pos_weight
        occ_loss = (w_for_1 * s_pos + s_neg) / n_all
        tsdf_loss = s_abs / n_p
        return jnp.asarray(loss_weight[0] * occ_loss + loss_weight[1] * tsdf_loss, jnp.float32)

    # ---------------- forward ----------------

    def forward(self, features, inputs, outputs):
        bs = features[0][0].shape[0]
        pre_feat = None
        pre_coords = None
        loss_dict = {}
        for i in range(self.cfg.N_LAYER):
            interval = 2 ** (self.n_scales - i)
            scale = self.n_scales - i
            if i == 0:
                coords = generate_grid(self.cfg.N_VOX, interval)           # (3, nV)
                up_list = []
                for b in range(bs):
                    up_list.append(np.concatenate(
                        [np.full((1, coords.shape[-1]), b, np.float32), coords], axis=0))
                up_coords = np.concatenate(up_list, axis=1).T.astype(np.float32)
                up_feat = None
            else:
                up_feat, up_coords = self.upsample(pre_feat, pre_coords, interval)

            feats = jnp.stack([feat[scale] for feat in features])          # (V, B, C, H, W)
            KRcam_bv = inputs['proj_matrices'][:, :, scale]                # (B, V, 4, 4)
            volume, count = self.back_project(up_coords, inputs['vol_origin_partial'],
                                              self.cfg.VOXEL_SIZE, feats, KRcam_bv)

            if i != 0:
                feat = jnp.concatenate([volume, up_feat], axis=1)
            else:
                feat = volume

            tsdf_target, occ_target = self.get_target(up_coords, inputs, scale)
            _r_coords = self.compute_r_coords(up_coords, inputs, bs)  # SPVCNN voxelization coords

            # TODO(synk): SPVCNN sparse 3D (torchsparse) convolutions have no clean Pallas
            # equivalent; only the point-wise linear stem + tsdf/occ heads run in the kernel.
            p = self.params[i]
            N = feat.shape[0]
            Npad = round_up(N, PH_TILE)
            x_pad = jnp.zeros((Npad, p['cin_pad']), jnp.bfloat16)
            x_pad = x_pad.at[:N, :p['cin']].set(feat.astype(jnp.bfloat16))
            packed_out = run_point_head(x_pad, p['w0'], p['b0'], p['wh'], p['bh'], p['ch'])

            # Single host sync per layer for the data-dependent control flow below.
            po = np.asarray(packed_out[:N])
            count_np = np.asarray(count)
            grid_mask = count_np > 1
            ch = p['ch']
            feat_np = po[:, :ch]
            tsdf = po[:, ch:ch + 1]
            occ = po[:, ch + 1:ch + 2]

            loss = self.compute_loss(tsdf, occ, tsdf_target, occ_target,
                                     mask=grid_mask, pos_weight=self.cfg.POS_WEIGHT)
            loss_dict[f'tsdf_occ_loss_{i}'] = loss

            # writable numpy result (fixes read-only in-place assignment bug)
            occupancy = (occ[:, 0] > self.cfg.THRESHOLDS[i]) & grid_mask
            num = int(occupancy.sum())
            if num == 0:
                print(f'warning: no valid points: scale {i}')
                return outputs, loss_dict
            # (training-time random subsampling skipped: eval mode)

            idx = np.nonzero(occupancy)[0]
            pre_coords = up_coords[idx]
            for b in range(bs):
                if int((pre_coords[:, 0] == b).sum()) == 0:
                    print(f'warning: no valid points: scale {i}, batch {b}')
                    return outputs, loss_dict

            pre_tsdf = tsdf[idx]
            pre_occ = occ[idx]
            pre_feat = np.concatenate([feat_np[idx], pre_tsdf, pre_occ], axis=1)

            if i == self.cfg.N_LAYER - 1:
                outputs['coords'] = jnp.asarray(pre_coords)
                outputs['tsdf'] = jnp.asarray(pre_tsdf)
        return outputs, loss_dict


# --------------------------------------------------------------------------
# main
# --------------------------------------------------------------------------

if __name__ == "__main__":
    key = jax.random.PRNGKey(0)
    bs, n_views = 2, 2
    H0, W0 = 32, 32
    out_ch_2d = [24, 40, 80]
    N_VOX = [16, 16, 16]
    VOXEL_SIZE = 0.04

    cfg = types.SimpleNamespace(
        THRESHOLDS=[-100.0, -100.0, -100.0],
        BACKBONE2D_ARC='fpn-mnas-1',
        N_LAYER=3,
        N_VOX=N_VOX,
        VOXEL_SIZE=VOXEL_SIZE,
        POS_WEIGHT=1.5,
        TRAIN_NUM_SAMPLE=[4096, 16384, 65536],
        ENABLE_RENDER=False,
        ENABLE_MESH_GT=False,
        FUSION_ON=False,
    )

    # multi-scale image features: features[view][scale] = (B, C_s, H/2^s, W/2^s), NCHW
    features = []
    for v in range(n_views):
        per_scale = []
        for s in range(3):
            key, kf = jax.random.split(key)
            Cs, Hs, Ws = out_ch_2d[s], H0 // 2 ** s, W0 // 2 ** s
            per_scale.append(jax.random.normal(kf, (bs, Cs, Hs, Ws), jnp.float32))
        features.append(per_scale)

    # deterministic projection matrices (B, V, n_stage, 4, 4) so voxels land in-image
    n_stage = 3
    proj = np.zeros((bs, n_views, n_stage, 4, 4), np.float32)
    base_f = [48.0, 24.0, 12.0]
    for b in range(bs):
        for v in range(n_views):
            for s in range(n_stage):
                Hs, Ws = H0 // 2 ** s, W0 // 2 ** s
                f = base_f[s] * (1.0 + 0.05 * v)
                cx, cy = (Ws - 1) / 2.0, (Hs - 1) / 2.0
                tz = 2.0 + 0.1 * b
                K = np.array([[f, 0, cx], [0, f, cy], [0, 0, 1.0]], np.float32)
                Rt = np.concatenate([np.eye(3, dtype=np.float32),
                                     np.array([[0.05 * v], [0.0], [tz]], np.float32)], axis=1)
                P = np.eye(4, dtype=np.float32)
                P[:3, :] = K @ Rt
                proj[b, v, s] = P

    vol_origin = np.tile(np.array([-0.3, -0.3, -0.3], np.float32), (bs, 1))
    w2ac = np.tile(np.eye(4, dtype=np.float32), (bs, 1, 1))

    # ground-truth tsdf / occupancy volumes per scale
    tsdf_list, occ_list = [], []
    for s in range(3):
        dim = [n // 2 ** s for n in N_VOX]
        key, k1 = jax.random.split(key)
        tsdf_list.append(np.asarray(jax.random.uniform(k1, (bs, *dim), jnp.float32, -1.0, 1.0)))
        key, k2 = jax.random.split(key)
        occ_list.append(np.asarray(jax.random.uniform(k2, (bs, *dim)) > 0.5))

    inputs = dict(
        proj_matrices=jnp.asarray(proj),
        vol_origin_partial=jnp.asarray(vol_origin),
        world_to_aligned_camera=jnp.asarray(w2ac),
        tsdf_list=tsdf_list,
        occ_list=occ_list,
    )

    key, kp = jax.random.split(key)
    net = NeuConNetPallas(cfg, kp)
    outputs, loss_dict = net.forward(features, inputs, {})

    jax.block_until_ready(outputs['tsdf'])
    jax.block_until_ready(outputs['coords'])
    for v in loss_dict.values():
        jax.block_until_ready(v)
    print("KERNEL_OK")
</pallas_src>

<mosaic_0001>
module attributes {stable_mosaic.version = 11 : i64} {
  func.func @back_project_kernel(%arg0: i32, %arg1: i32, %arg2: memref<1x128x4xf32, #tpu.memory_space<vmem>>, %arg3: memref<1x2x4x4xf32, #tpu.memory_space<vmem>>, %arg4: memref<2x64xf32, #tpu.memory_space<vmem>>, %arg5: memref<1x2x64x128xbf16, #tpu.memory_space<vmem>>, %arg6: memref<1x128x128xf32, #tpu.memory_space<vmem>>) attributes {dimension_semantics = [#tpu.dimension_semantics<parallel>, #tpu.dimension_semantics<parallel>], iteration_bounds = array<i64: 2, 1>, scalar_prefetch = 0 : i64, scratch_operands = 0 : i64, tpu.core_type = #tpu.core_type<tc>, window_params = [{transform_indices = @transform_0, window_bounds = array<i64: 1, 128, 4>}, {transform_indices = @transform_1, window_bounds = array<i64: 1, 2, 4, 4>}, {pipeline_mode = #tpu.pipeline_mode<synchronous>, transform_indices = @transform_2, window_bounds = array<i64: 2, 64>}, {transform_indices = @transform_3, window_bounds = array<i64: 1, 2, 64, 128>}, {transform_indices = @transform_4, window_bounds = array<i64: 1, 128, 128>}]} {
    %c0 = arith.constant 0 : index
    %c0_0 = arith.constant 0 : index
    %c0_1 = arith.constant 0 : index
    %0 = vector.load %arg2[%c0, %c0_0, %c0_1] : memref<1x128x4xf32, #tpu.memory_space<vmem>>, vector<1x128x4xf32>
    %1 = vector.shape_cast %0 : vector<1x128x4xf32> to vector<128x4xf32>
    %c0_2 = arith.constant 0 : index
    %c0_3 = arith.constant 0 : index
    %2 = vector.load %arg4[%c0_2, %c0_3] : memref<2x64xf32, #tpu.memory_space<vmem>>, vector<1x64xf32>
    %3 = vector.shape_cast %2 : vector<1x64xf32> to vector<1x64xf32>
    %4 = vector.broadcast %3 : vector<1x64xf32> to vector<128x64xf32>
    %c1 = arith.constant 1 : index
    %c0_4 = arith.constant 0 : index
    %5 = vector.load %arg4[%c1, %c0_4] : memref<2x64xf32, #tpu.memory_space<vmem>>, vector<1x64xf32>
    %6 = vector.shape_cast %5 : vector<1x64xf32> to vector<1x64xf32>
    %7 = vector.broadcast %6 : vector<1x64xf32> to vector<128x64xf32>
    %cst = arith.constant 0.000000e+00 : f32
    %8 = vector.broadcast %cst : f32 to vector<128x128xf32>
    %cst_5 = arith.constant 0.000000e+00 : f32
    %9 = vector.broadcast %cst_5 : f32 to vector<128x1xf32>
    %cst_6 = arith.constant 0.000000e+00 : f32
    %10 = vector.broadcast %cst_6 : f32 to vector<128x1xf32>
    %c0_7 = arith.constant 0 : index
    %c0_8 = arith.constant 0 : index
    %c0_9 = arith.constant 0 : index
    %c0_10 = arith.constant 0 : index
    %11 = vector.load %arg3[%c0_7, %c0_8, %c0_9, %c0_10] : memref<1x2x4x4xf32, #tpu.memory_space<vmem>>, vector<1x1x4x4xf32>
    %12 = vector.shape_cast %11 : vector<1x1x4x4xf32> to vector<4x4xf32>
    %cst_11 = arith.constant dense<0.000000e+00> : vector<128x4xf32>
    %13 = tpu.matmul %1, %12, %cst_11 {dimension_numbers = #tpu.dot_dimension_numbers<[1], [0], [0], [1], [0, 0, 1, 1], [], []>} : vector<128x4xf32>, vector<4x4xf32>, vector<128x4xf32> -> vector<128x4xf32>
    %14 = vector.extract_strided_slice %13 {offsets = [0, 2], sizes = [128, 1], strides = [1, 1]} : vector<128x4xf32> to vector<128x1xf32>
    %cst_12 = arith.constant 0.000000e+00 : f32
    %15 = vector.broadcast %cst_12 : f32 to vector<128x1xf32>
    %16 = arith.cmpf ogt, %14, %15 : vector<128x1xf32>
    %cst_13 = arith.constant 1.000000e+00 : f32
    %17 = vector.broadcast %cst_13 : f32 to vector<128x1xf32>
    %18 = arith.select %16, %14, %17 : vector<128x1xi1>, vector<128x1xf32>
    %19 = vector.extract_strided_slice %13 {offsets = [0, 0], sizes = [128, 1], strides = [1, 1]} : vector<128x4xf32> to vector<128x1xf32>
    %20 = arith.divf %19, %18 : vector<128x1xf32>
    %21 = vector.extract_strided_slice %13 {offsets = [0, 1], sizes = [128, 1], strides = [1, 1]} : vector<128x4xf32> to vector<128x1xf32>
    %22 = arith.divf %21, %18 : vector<128x1xf32>
    %cst_14 = arith.constant 0.000000e+00 : f32
    %23 = vector.broadcast %cst_14 : f32 to vector<128x1xf32>
    %24 = arith.cmpf oge, %20, %23 : vector<128x1xf32>
    %cst_15 = arith.constant 7.000000e+00 : f32
    %25 = vector.broadcast %cst_15 : f32 to vector<128x1xf32>
    %26 = arith.cmpf ole, %20, %25 : vector<128x1xf32>
    %27 = arith.andi %24, %26 : vector<128x1xi1>
    %cst_16 = arith.constant 0.000000e+00 : f32
    %28 = vector.broadcast %cst_16 : f32 to vector<128x1xf32>
    %29 = arith.cmpf oge, %22, %28 : vector<128x1xf32>
    %30 = arith.andi %27, %29 : vector<128x1xi1>
    %cst_17 = arith.constant 7.000000e+00 : f32
    %31 = vector.broadcast %cst_17 : f32 to vector<128x1xf32>
    %32 = arith.cmpf ole, %22, %31 : vector<128x1xf32>
    %33 = arith.andi %30, %32 : vector<128x1xi1>
    %cst_18 = arith.constant 0.000000e+00 : f32
    %34 = vector.broadcast %cst_18 : f32 to vector<128x1xf32>
    %35 = arith.cmpf ogt, %14, %34 : vector<128x1xf32>
    %36 = arith.andi %33, %35 : vector<128x1xi1>
    %37 = arith.extui %36 : vector<128x1xi1> to vector<128x1xi32>
    %38 = arith.sitofp %37 : vector<128x1xi32> to vector<128x1xf32>
    %39 = vector.broadcast %20 : vector<128x1xf32> to vector<128x64xf32>
    %40 = arith.subf %4, %39 : vector<128x64xf32>
    %41 = math.absf %40 : vector<128x64xf32>
    %cst_19 = arith.constant 1.000000e+00 : f32
    %42 = vector.broadcast %cst_19 : f32 to vector<128x64xf32>
    %43 = arith.subf %42, %41 : vector<128x64xf32>
    %cst_20 = arith.constant 0.000000e+00 : f32
    %44 = vector.broadcast %cst_20 : f32 to vector<128x64xf32>
    %45 = arith.maximumf %43, %44 : vector<128x64xf32>
    %46 = vector.broadcast %22 : vector<128x1xf32> to vector<128x64xf32>
    %47 = arith.subf %7, %46 : vector<128x64xf32>
    %48 = math.absf %47 : vector<128x64xf32>
    %cst_21 = arith.constant 1.000000e+00 : f32
    %49 = vector.broadcast %cst_21 : f32 to vector<128x64xf32>
    %50 = arith.subf %49, %48 : vector<128x64xf32>
    %cst_22 = arith.constant 0.000000e+00 : f32
    %51 = vector.broadcast %cst_22 : f32 to vector<128x64xf32>
    %52 = arith.maximumf %50, %51 : vector<128x64xf32>
    %53 = arith.mulf %45, %52 : vector<128x64xf32>
    %54 = vector.broadcast %38 : vector<128x1xf32> to vector<128x64xf32>
    %55 = arith.mulf %53, %54 : vector<128x64xf32>
    %56 = arith.truncf %55 : vector<128x64xf32> to vector<128x64xbf16>
    %c0_23 = arith.constant 0 : index
    %c0_24 = arith.constant 0 : index
    %c0_25 = arith.constant 0 : index
    %c0_26 = arith.constant 0 : index
    %57 = vector.load %arg5[%c0_23, %c0_24, %c0_25, %c0_26] : memref<1x2x64x128xbf16, #tpu.memory_space<vmem>>, vector<1x1x64x128xbf16>
    %58 = vector.shape_cast %57 : vector<1x1x64x128xbf16> to vector<64x128xbf16>
    %cst_27 = arith.constant dense<0.000000e+00> : vector<128x128xf32>
    %59 = tpu.matmul %56, %58, %cst_27 {dimension_numbers = #tpu.dot_dimension_numbers<[1], [0], [0], [1], [0, 0, 1, 1], [], []>} : vector<128x64xbf16>, vector<64x128xbf16>, vector<128x128xf32> -> vector<128x128xf32>
    %60 = arith.addf %8, %59 : vector<128x128xf32>
    %61 = arith.mulf %14, %38 : vector<128x1xf32>
    %62 = arith.addf %9, %61 : vector<128x1xf32>
    %63 = arith.addf %10, %38 : vector<128x1xf32>
    %c0_28 = arith.constant 0 : index
    %c1_29 = arith.constant 1 : index
    %c0_30 = arith.constant 0 : index
    %c0_31 = arith.constant 0 : index
    %64 = vector.load %arg3[%c0_28, %c1_29, %c0_30, %c0_31] : memref<1x2x4x4xf32, #tpu.memory_space<vmem>>, vector<1x1x4x4xf32>
    %65 = vector.shape_cast %64 : vector<1x1x4x4xf32> to vector<4x4xf32>
    %cst_32 = arith.constant dense<0.000000e+00> : vector<128x4xf32>
    %66 = tpu.matmul %1, %65, %cst_32 {dimension_numbers = #tpu.dot_dimension_numbers<[1], [0], [0], [1], [0, 0, 1, 1], [], []>} : vector<128x4xf32>, vector<4x4xf32>, vector<128x4xf32> -> vector<128x4xf32>
    %67 = vector.extract_strided_slice %66 {offsets = [0, 2], sizes = [128, 1], strides = [1, 1]} : vector<128x4xf32> to vector<128x1xf32>
    %cst_33 = arith.constant 0.000000e+00 : f32
    %68 = vector.broadcast %cst_33 : f32 to vector<128x1xf32>
    %69 = arith.cmpf ogt, %67, %68 : vector<128x1xf32>
    %cst_34 = arith.constant 1.000000e+00 : f32
    %70 = vector.broadcast %cst_34 : f32 to vector<128x1xf32>
    %71 = arith.select %69, %67, %70 : vector<128x1xi1>, vector<128x1xf32>
    %72 = vector.extract_strided_slice %66 {offsets = [0, 0], sizes = [128, 1], strides = [1, 1]} : vector<128x4xf32> to vector<128x1xf32>
    %73 = arith.divf %72, %71 : vector<128x1xf32>
    %74 = vector.extract_strided_slice %66 {offsets = [0, 1], sizes = [128, 1], strides = [1, 1]} : vector<128x4xf32> to vector<128x1xf32>
    %75 = arith.divf %74, %71 : vector<128x1xf32>
    %cst_35 = arith.constant 0.000000e+00 : f32
    %76 = vector.broadcast %cst_35 : f32 to vector<128x1xf32>
    %77 = arith.cmpf oge, %73, %76 : vector<128x1xf32>
    %cst_36 = arith.constant 7.000000e+00 : f32
    %78 = vector.broadcast %cst_36 : f32 to vector<128x1xf32>
    %79 = arith.cmpf ole, %73, %78 : vector<128x1xf32>
    %80 = arith.andi %77, %79 : vector<128x1xi1>
    %cst_37 = arith.constant 0.000000e+00 : f32
    %81 = vector.broadcast %cst_37 : f32 to vector<128x1xf32>
    %82 = arith.cmpf oge, %75, %81 : vector<128x1xf32>
    %83 = arith.andi %80, %82 : vector<128x1xi1>
    %cst_38 = arith.constant 7.000000e+00 : f32
    %84 = vector.broadcast %cst_38 : f32 to vector<128x1xf32>
    %85 = arith.cmpf ole, %75, %84 : vector<128x1xf32>
    %86 = arith.andi %83, %85 : vector<128x1xi1>
    %cst_39 = arith.constant 0.000000e+00 : f32
    %87 = vector.broadcast %cst_39 : f32 to vector<128x1xf32>
    %88 = arith.cmpf ogt, %67, %87 : vector<128x1xf32>
    %89 = arith.andi %86, %88 : vector<128x1xi1>
    %90 = arith.extui %89 : vector<128x1xi1> to vector<128x1xi32>
    %91 = arith.sitofp %90 : vector<128x1xi32> to vector<128x1xf32>
    %92 = vector.broadcast %73 : vector<128x1xf32> to vector<128x64xf32>
    %93 = arith.subf %4, %92 : vector<128x64xf32>
    %94 = math.absf %93 : vector<128x64xf32>
    %cst_40 = arith.constant 1.000000e+00 : f32
    %95 = vector.broadcast %cst_40 : f32 to vector<128x64xf32>
    %96 = arith.subf %95, %94 : vector<128x64xf32>
    %cst_41 = arith.constant 0.000000e+00 : f32
    %97 = vector.broadcast %cst_41 : f32 to vector<128x64xf32>
    %98 = arith.maximumf %96, %97 : vector<128x64xf32>
    %99 = vector.broadcast %75 : vector<128x1xf32> to vector<128x64xf32>
    %100 = arith.subf %7, %99 : vector<128x64xf32>
    %101 = math.absf %100 : vector<128x64xf32>
    %cst_42 = arith.constant 1.000000e+00 : f32
    %102 = vector.broadcast %cst_42 : f32 to vector<128x64xf32>
    %103 = arith.subf %102, %101 : vector<128x64xf32>
    %cst_43 = arith.constant 0.000000e+00 : f32
    %104 = vector.broadcast %cst_43 : f32 to vector<128x64xf32>
    %105 = arith.maximumf %103, %104 : vector<128x64xf32>
    %106 = arith.mulf %98, %105 : vector<128x64xf32>
    %107 = vector.broadcast %91 : vector<128x1xf32> to vector<128x64xf32>
    %108 = arith.mulf %106, %107 : vector<128x64xf32>
    %109 = arith.truncf %108 : vector<128x64xf32> to vector<128x64xbf16>
    %c0_44 = arith.constant 0 : index
    %c1_45 = arith.constant 1 : index
    %c0_46 = arith.constant 0 : index
    %c0_47 = arith.constant 0 : index
    %110 = vector.load %arg5[%c0_44, %c1_45, %c0_46, %c0_47] : memref<1x2x64x128xbf16, #tpu.memory_space<vmem>>, vector<1x1x64x128xbf16>
    %111 = vector.shape_cast %110 : vector<1x1x64x128xbf16> to vector<64x128xbf16>
    %cst_48 = arith.constant dense<0.000000e+00> : vector<128x128xf32>
    %112 = tpu.matmul %109, %111, %cst_48 {dimension_numbers = #tpu.dot_dimension_numbers<[1], [0], [0], [1], [0, 0, 1, 1], [], []>} : vector<128x64xbf16>, vector<64x128xbf16>, vector<128x128xf32> -> vector<128x128xf32>
    %113 = arith.addf %60, %112 : vector<128x128xf32>
    %114 = arith.mulf %67, %91 : vector<128x1xf32>
    %115 = arith.addf %62, %114 : vector<128x1xf32>
    %116 = arith.addf %63, %91 : vector<128x1xf32>
    %117 = tpu.iota {dimensions = array<i32: 1>} : vector<128x128xi32>
    %c80_i32 = arith.constant 80 : i32
    %118 = vector.broadcast %c80_i32 : i32 to vector<128x128xi32>
    %119 = arith.cmpi eq, %117, %118 : vector<128x128xi32>
    %cst_49 = arith.constant 0.000000e+00 : f32
    %120 = vector.shape_cast %115 : vector<128x1xf32> to vector<128x1xf32>
    %121 = vector.broadcast %120 : vector<128x1xf32> to vector<128x128xf32>
    %122 = vector.broadcast %cst_49 : f32 to vector<128x128xf32>
    %123 = arith.select %119, %121, %122 : vector<128x128xi1>, vector<128x128xf32>
    %124 = arith.addf %113, %123 : vector<128x128xf32>
    %c81_i32 = arith.constant 81 : i32
    %125 = vector.broadcast %c81_i32 : i32 to vector<128x128xi32>
    %126 = arith.cmpi eq, %117, %125 : vector<128x128xi32>
    %cst_50 = arith.constant 0.000000e+00 : f32
    %127 = vector.shape_cast %116 : vector<128x1xf32> to vector<128x1xf32>
    %128 = vector.broadcast %127 : vector<128x1xf32> to vector<128x128xf32>
    %129 = vector.broadcast %cst_50 : f32 to vector<128x128xf32>
    %130 = arith.select %126, %128, %129 : vector<128x128xi1>, vector<128x128xf32>
    %131 = arith.addf %124, %130 : vector<128x128xf32>
    %c0_51 = arith.constant 0 : index
    %c0_52 = arith.constant 0 : index
    %c0_53 = arith.constant 0 : index
    %132 = vector.load %arg6[%c0_51, %c0_52, %c0_53] : memref<1x128x128xf32, #tpu.memory_space<vmem>>, vector<1x128x128xf32>
    %133 = vector.shape_cast %132 : vector<1x128x128xf32> to vector<128x128xf32>
    %134 = vector.shape_cast %131 : vector<128x128xf32> to vector<1x128x128xf32>
    tpu.vector_store %arg6[%c0_51, %c0_52, %c0_53], %134 {strides = array<i32>} : memref<1x128x128xf32, #tpu.memory_space<vmem>>, vector<1x128x128xf32>,
    return
  }
  func.func @transform_0(%arg0: i32, %arg1: i32) -> (i32, i32, i32) {
    %c0_i32 = arith.constant 0 : i32
    %c0_i32_0 = arith.constant 0 : i32
    return %arg0, %arg1, %c0_i32 : i32, i32, i32
  }
  func.func @transform_1(%arg0: i32, %arg1: i32) -> (i32, i32, i32, i32) {
    %c0_i32 = arith.constant 0 : i32
    %c0_i32_0 = arith.constant 0 : i32
    %c0_i32_1 = arith.constant 0 : i32
    %c0_i32_2 = arith.constant 0 : i32
    return %arg0, %c0_i32, %c0_i32_0, %c0_i32_1 : i32, i32, i32, i32
  }
  func.func @transform_2(%arg0: i32, %arg1: i32) -> (i32, i32) {
    %c0_i32 = arith.constant 0 : i32
    %c0_i32_0 = arith.constant 0 : i32
    %c0_i32_1 = arith.constant 0 : i32
    return %c0_i32, %c0_i32_0 : i32, i32
  }
  func.func @transform_3(%arg0: i32, %arg1: i32) -> (i32, i32, i32, i32) {
    %c0_i32 = arith.constant 0 : i32
    %c0_i32_0 = arith.constant 0 : i32
    %c0_i32_1 = arith.constant 0 : i32
    %c0_i32_2 = arith.constant 0 : i32
    return %arg0, %c0_i32, %c0_i32_0, %c0_i32_1 : i32, i32, i32, i32
  }
  func.func @transform_4(%arg0: i32, %arg1: i32) -> (i32, i32, i32) {
    %c0_i32 = arith.constant 0 : i32
    %c0_i32_0 = arith.constant 0 : i32
    return %arg0, %arg1, %c0_i32 : i32, i32, i32
  }
}

</mosaic_0001>

<bundles_post_ra>
// kernel: tpu_custom_call.1
= control target key start
LH: loop header
LB: loop body
LE: loop exit
PB: predicated region body
PF: predicated region fallthrough
CT: control target
= control target key end

     0   :  { %9 = vsyncpa [#allocation3], 0  ;;  %s6445_s0 = inlined_call_operand.vmem [shape: f32[2,128,4], index: 0, kind: input, shape index: {}]   ;;  %s6446_s1 = inlined_call_operand.vmem [shape: f32[2,2,4,4], index: 1, kind: input, shape index: {}]   ;;  %s6447_s2 = inlined_call_operand.vmem [shape: f32[2,64], index: 2, kind: input, shape index: {}]   ;;  %s6448_s3 = inlined_call_operand.vmem [shape: bf16[2,2,64,128], index: 3, kind: input, shape index: {}]   ;;  %s6449_s4 = inlined_call_operand.hbm [shape: f32[2,128,128], index: 4, kind: output, shape index: {}]  }
   0x1   :  { %11 = vsyncpa [#allocation3 + $0x1], 0  ;;  %s4224_s15 = smov 0   ;;  %s4226_s16 = smov 0  }
   0x2   :  { %s4228_s17 = smov 0   ;;  %s4230_s18 = smov 0  }
   0x3   :  { %s4232_s19 = smov 0   ;;  %s4234_s20 = smov 0  }
   0x4 LB: > { %s3442_s21 = sadd.s32 4294967295, %s4187_s20   ;;  %s3443_s22 = sadd.s32 4294967294, %s4187_s20   ;;  %s4187_s20 = sphi %s4234_s20, %s17_s20   ;;  %s4183_s19 = sphi %s4232_s19, %s6832_s19   ;;  %s4179_s18 = sphi %s4230_s18, %s6831_s18   ;;  %s4175_s17 = sphi %s4228_s17, %s6830_s17   ;;  %s4171_s16 = sphi %s4226_s16, %s6829_s16   ;;  %s4167_s15 = sphi %s4224_s15, %s6828_s15  }
   0x5   : > { %s29_s23 = sadd.s32 1, %s4183_s19  ;;  %s139_s24 = sadd.s32 1, %s4175_s17 }
   0x6   : > { %p31_p0 = scmp.ge.s32.totalorder %s29_s23, 2  ;;  %p149_p1 = scmp.ne.s32.totalorder %s4175_s17, %s4171_s16 }
   0x7   : > { %p150_p2 = scmp.eq.s32.totalorder %s3442_s21, 1  ;;  %p155_p3 = scmp.ne.s32.totalorder %s4171_s16, %s4167_s15 }
   0x8   : > { %s6834_s23 = smov (%p31_p0, %s29_s23), 0  ;;  %p156_p5 = scmp.eq.s32.totalorder %s3443_s22, 1 }
   0x9   : > { %p4264_p4 = por %p150_p2, %p149_p1  ;;  %s134_s26 = ssub.s32 %s4183_s19, %s6834_s23 }
   0xa   : > { %p3446_p6 = scmp.ge.s32.totalorder %s4187_s20, 1  ;;  %p137_p7 = scmp.eq.s32.totalorder %s134_s26, 0 }
   0xb   : > { %p4271_p8 = por %p156_p5, %p155_p3  ;;  %p206_p9 = scmp.lt.s32.totalorder %s4187_s20, 3 }
   0xc   : > { %s4277_s28 = scalar_select %p137_p7, %s4175_s17, %s139_s24  }
   0xd   : > { %p207_p10 = pnand %p3446_p6, %p206_p9 }
   0xf   : > { %210 = sbr.rel (%p207_p10) target bundleno = 1132 (0x46c), region = 36 }
  0x14   : > { %p247_p11 = scmp.lt.s32.totalorder %s4179_s18, 1  ;;  %vm344_vm0 = vcmask 1043456   ;;  %vm295_vm1 = vcmask 31744   ;;  %v6481_v18 = vmov 0   ;;  %s4190_s22 = smov 127   ;;  %v6450_v47 = vmov 1  }
  0x15   : > { %3786 = vset.pattern.permute.xlu1 %v6481_v18  ;;  %s4191_s24 = smov 126   ;;  %3787 = vset.pattern.permute.xlu0 %v6450_v47  ;;  %s4194_s26 = smov 2  }
  0x16   : > { %s248_s29 = scalar_select %p247_p11, %s4179_s18, 1 }
  0x17   : > { %s243_s7 = sand.u32 1, %s4171_s16   ;;  %s3563_s10 = sshll.u32 %s4179_s18, 11 }
  0x18   : > { %s3560_s30 = sshll.u32 %s248_s29, 7  ;;  %s3561_s5 = sshll.u32 %s248_s29, 3 }
  0x19   : > { %s4284_s8 = scalar_lea.vmem %s6445_s0, %s3560_s30  ;;  %s260_s11 = scalar_lea.vmem %s6446_s1, %s3561_s5 }
  0x1a   : > { %v294_v0 = vld [vmem:[%s260_s11] sm:$0xf]  ;;  %v269_v2 = vld [vmem:[%s4284_s8 + $0x8] sm:$0xff]  ;;  %v3489_v3 = vld [vmem:[%s260_s11 + $0x4] sm:$0xf]  ;;  %s3562_s12 = sshll.u32 %s248_s29, 6  ;;  %s6392_s14 = scalar_lea.hbm %s6449_s4, %s3563_s10 }
  0x1b   : > { %v268_v1 = vld [vmem:[%s4284_s8] sm:$0xff]  ;;  %3622 = vmatprep.subr.msk.mxu0 %vm344_vm0, %v294_v0  ;;  %v270_v4 = vld [vmem:[%s4284_s8 + $0x10] sm:$0xff]  ;;  %3648 = vmatprep.subr.msk.mxu1 %vm344_vm0, %v3489_v3  ;;  %v271_v5 = vld [vmem:[%s4284_s8 + $0x18] sm:$0xff]  ;;  %s4300_s21 = scalar_lea.vmem %s6448_s3, %s3562_s12  ;;  %s6400_s18 = scalar_lea.sflag [#allocation3], %s243_s7 }
  0x1c   : > { %3624 = vmatprep.mubr.msk.f32.mxu0 %vm295_vm1, %v268_v1  ;;  %3623 = vmatpush3.msk.msra.mxu0 %vm344_vm0, %v294_v0  ;;  %v272_v6 = vld [vmem:[%s4284_s8 + $0x20] sm:$0xff]  ;;  %v273_v7 = vld [vmem:[%s4284_s8 + $0x28] sm:$0xff]  ;;  %v274_v8 = vld [vmem:[%s4284_s8 + $0x30] sm:$0xff] }
  0x1d   : > { %3625 = vmatmul.mubr.msk.f32.vlgmr.msra.gmra.mxu0 %vm295_vm1, %v269_v2  ;;  %3649 = vmatpush3.msk.msra.mxu1 %vm344_vm0, %v3489_v3  ;;  %v275_v9 = vld [vmem:[%s4284_s8 + $0x38] sm:$0xff]  ;;  %v276_v10 = vld [vmem:[%s4284_s8 + $0x40] sm:$0xff]  ;;  %v277_v11 = vld [vmem:[%s4284_s8 + $0x48] sm:$0xff] }
  0x1e   : > { %3650 = vmatprep.mubr.msk.f32.mxu1 %vm295_vm1, %v268_v1  ;;  %3627 = vmatprep.mubr.msk.f32.mxu0 %vm295_vm1, %v270_v4  ;;  %v278_v12 = vld [vmem:[%s4284_s8 + $0x50] sm:$0xff]  ;;  %v279_v13 = vld [vmem:[%s4284_s8 + $0x58] sm:$0xff]  ;;  %v280_v14 = vld [vmem:[%s4284_s8 + $0x60] sm:$0xff] }
  0x1f   : > { %3651 = vmatmul.mubr.msk.f32.vlgmr.msra.gmra.mxu1 %vm295_vm1, %v269_v2  ;;  %v281_v15 = vld [vmem:[%s4284_s8 + $0x68] sm:$0xff]  ;;  %v282_v16 = vld [vmem:[%s4284_s8 + $0x70] sm:$0xff]  ;;  %v283_v17 = vld [vmem:[%s4284_s8 + $0x78] sm:$0xff]  ;;  %s3447_s8 = sshll.u32 %s243_s7, 7 }
  0x20   : > { %3653 = vmatprep.mubr.msk.f32.mxu1 %vm295_vm1, %v270_v4  ;;  %s6307_s9 = scalar_lea.vmem [#allocation2], %s3447_s8 }
  0x21   : > { %3628 = vmatmul.mubr.msk.f32.gmra.mxu0 %vm295_vm1, %v271_v5  ;;  %s3339_s11 = sshll.u32 %s6307_s9, 4  ;;  %s6394_s11 = int_to_ptr.vmem [resolvable:$true] %s3339_s11 }
  0x22   : > { %3630 = vmatprep.mubr.msk.f32.mxu0 %vm295_vm1, %v272_v6 }
  0x23   : > { %3654 = vmatmul.mubr.msk.f32.gmra.mxu1 %vm295_vm1, %v271_v5 }
  0x24   : > { %3656 = vmatprep.mubr.msk.f32.mxu1 %vm295_vm1, %v272_v6 }
  0x25   : > { %3631 = vmatmul.mubr.msk.f32.gmra.mxu0 %vm295_vm1, %v273_v7 }
  0x26   : > { %3633 = vmatprep.mubr.msk.f32.mxu0 %vm295_vm1, %v274_v8 }
  0x27   : > { %3657 = vmatmul.mubr.msk.f32.gmra.mxu1 %vm295_vm1, %v273_v7 }
  0x28   : > { %3659 = vmatprep.mubr.msk.f32.mxu1 %vm295_vm1, %v274_v8 }
  0x29   : > { %3634 = vmatmul.mubr.msk.f32.gmra.mxu0 %vm295_vm1, %v275_v9 }
  0x2a   : > { %3636 = vmatprep.mubr.msk.f32.mxu0 %vm295_vm1, %v276_v10 }
  0x2b   : > { %3660 = vmatmul.mubr.msk.f32.gmra.mxu1 %vm295_vm1, %v275_v9 }
  0x2c   : > { %3662 = vmatprep.mubr.msk.f32.mxu1 %vm295_vm1, %v276_v10 }
  0x2d   : > { %3637 = vmatmul.mubr.msk.f32.gmra.mxu0 %vm295_vm1, %v277_v11 }
  0x2e   : > { %3639 = vmatprep.mubr.msk.f32.mxu0 %vm295_vm1, %v278_v12 }
  0x2f   : > { %3663 = vmatmul.mubr.msk.f32.gmra.mxu1 %vm295_vm1, %v277_v11 }
  0x30   : > { %3665 = vmatprep.mubr.msk.f32.mxu1 %vm295_vm1, %v278_v12 }
  0x31   : > { %3640 = vmatmul.mubr.msk.f32.gmra.mxu0 %vm295_vm1, %v279_v13 }
  0x32   : > { %3642 = vmatprep.mubr.msk.f32.mxu0 %vm295_vm1, %v280_v14 }
  0x33   : > { %3666 = vmatmul.mubr.msk.f32.gmra.mxu1 %vm295_vm1, %v279_v13 }
  0x34   : > { %3668 = vmatprep.mubr.msk.f32.mxu1 %vm295_vm1, %v280_v14 }
  0x35   : > { %3643 = vmatmul.mubr.msk.f32.gmra.mxu0 %vm295_vm1, %v281_v15 }
  0x36   : > { %3645 = vmatprep.mubr.msk.f32.mxu0 %vm295_vm1, %v282_v16 }
  0x37   : > { %3669 = vmatmul.mubr.msk.f32.gmra.mxu1 %vm295_vm1, %v281_v15 }
  0x38   : > { %3671 = vmatprep.mubr.msk.f32.mxu1 %vm295_vm1, %v282_v16 }
  0x39   : > { %3646 = vmatmul.mubr.msk.f32.gmra.mxu0 %vm295_vm1, %v283_v17 }
  0x3b   : > { %3672 = vmatmul.mubr.msk.f32.gmra.mxu1 %vm295_vm1, %v283_v17 }
  0xdd   : > { %v4343_v19 = vpop.f32.mrf.mxu0 }
  0xde   : > { %6522 = vst [vmem:[#allocation5_spill] sm:$0xff] %v4343_v19  ;;  %vm494_vm2 = vcmp.gt.f32.partialorder %v4343_v19, 0.0 }
  0xdf   : > { %v4346_v20 = vpop.f32.mrf.mxu1  ;;  %v510_v21 = vsel %vm494_vm2, %v4343_v19, 1.0  ;;  %v942_v24 = vsel %vm494_vm2, 1, %v6481_v18  ;;  %v4362_v26 = vpop.f32.mrf.mxu0 }
  0xe0   : > { %6523 = vst [vmem:[#allocation6_spill] sm:$0xff] %v4346_v20  ;;  %623 = vrot.lane.b32.xlu1 %v510_v21, %s4190_s22  ;;  %543 = vrot.lane.b32.xlu0 %v510_v21, %s4191_s24  ;;  %vm1716_vm3 = vcmp.gt.f32.partialorder %v4346_v20, 0.0  ;;  %6525 = vst [vmem:[#allocation8_spill] sm:$0xff] %v4362_v26  ;;  %vm493_vm5 = vcmp.gt.f32.partialorder %v4362_v26, 0.0 }
  0xe1   : > { %v4352_v22 = vpop.f32.mrf.mxu1  ;;  %v1732_v23 = vsel %vm1716_vm3, %v4346_v20, 1.0  ;;  %v2164_v27 = vsel %vm1716_vm3, 1, %v6481_v18  ;;  %v4368_v28 = vpop.f32.mrf.mxu0  ;;  %v509_v30 = vsel %vm493_vm5, %v4362_v26, 1.0  ;;  %v941_v33 = vsel %vm493_vm5, 1, %v6481_v18 }
  0xe2   : > { %6524 = vst [vmem:[#allocation7_spill] sm:$0xff] %v4352_v22  ;;  %vm1715_vm4 = vcmp.gt.f32.partialorder %v4352_v22, 0.0  ;;  %6526 = vst [vmem:[#allocation9_spill] sm:$0xff] %v4368_v28  ;;  %vm496_vm6 = vcmp.gt.f32.partialorder %v4368_v28, 0.0 }
  0xe3   : > { %v1731_v25 = vsel %vm1715_vm4, %v4352_v22, 1.0  ;;  %v2163_v29 = vsel %vm1715_vm4, 1, %v6481_v18  ;;  %v512_v31 = vsel %vm496_vm6, %v4368_v28, 1.0  ;;  %v4376_v32 = vpop.f32.mrf.mxu1  ;;  %v4384_v34 = vpop.f32.mrf.mxu0  ;;  %v944_v36 = vsel %vm496_vm6, 1, %v6481_v18 }
  0xe4   : > { %959 = vrot.lane.b32.xlu1 %v942_v24, %s4191_s24  ;;  %1765 = vrot.lane.b32.xlu0 %v1732_v23, %s4191_s24  ;;  %6527 = vst [vmem:[#allocation10_spill] sm:$0xff] %v4376_v32  ;;  %vm1718_vm7 = vcmp.gt.f32.partialorder %v4376_v32, 0.0  ;;  %6528 = vst [vmem:[#allocation11_spill] sm:$0xff] %v4384_v34  ;;  %vm495_vm8 = vcmp.gt.f32.partialorder %v4384_v34, 0.0 }
  0xe5   : > { %v1734_v35 = vsel %vm1718_vm7, %v4376_v32, 1.0  ;;  %v4391_v37 = vpop.f32.mrf.mxu1  ;;  %v511_v38 = vsel %vm495_vm8, %v4384_v34, 1.0  ;;  %v2166_v39 = vsel %vm1718_vm7, 1, %v6481_v18  ;;  %v4407_v42 = vpop.f32.mrf.mxu0  ;;  %v943_v43 = vsel %vm495_vm8, 1, %v6481_v18 }
  0xe6   : > { %6529 = vst [vmem:[#allocation12_spill] sm:$0xff] %v4391_v37  ;;  %vm1717_vm9 = vcmp.gt.f32.partialorder %v4391_v37, 0.0  ;;  %6531 = vst [vmem:[#allocation14_spill] sm:$0xff] %v4407_v42  ;;  %vm498_vm11 = vcmp.gt.f32.partialorder %v4407_v42, 0.0 }
  0xe7   : > { %v1733_v40 = vsel %vm1717_vm9, %v4391_v37, 1.0  ;;  %v4403_v41 = vpop.f32.mrf.mxu1  ;;  %v2165_v44 = vsel %vm1717_vm9, 1, %v6481_v18  ;;  %v514_v46 = vsel %vm498_vm11, %v4407_v42, 1.0  ;;  %v4428_v48 = vpop.f32.mrf.mxu0  ;;  %v946_v51 = vsel %vm498_vm11, 1, %v6481_v18 }
  0xe8   : > { %1763 = vrot.lane.b32.xlu1 %v1731_v25, %s4191_s24  ;;  %1845 = vrot.lane.b32.xlu0 %v1732_v23, %s4190_s22  ;;  %6530 = vst [vmem:[#allocation13_spill] sm:$0xff] %v4403_v41  ;;  %vm1720_vm10 = vcmp.gt.f32.partialorder %v4403_v41, 0.0  ;;  %6532 = vst [vmem:[#allocation15_spill] sm:$0xff] %v4428_v48  ;;  %vm497_vm13 = vcmp.gt.f32.partialorder %v4428_v48, 0.0 }
  0xe9   : > { %v1736_v45 = vsel %vm1720_vm10, %v4403_v41, 1.0  ;;  %v4430_v49 = vpop.f32.mrf.mxu1  ;;  %v2168_v50 = vsel %vm1720_vm10, 1, %v6481_v18  ;;  %v513_v53 = vsel %vm497_vm13, %v4428_v48, 1.0  ;;  %v4450_v55 = vpop.f32.mrf.mxu0  ;;  %v945_v57 = vsel %vm497_vm13, 1, %v6481_v18 }
  0xea   : > { %6533 = vst [vmem:[#allocation16_spill] sm:$0xff] %v4430_v49  ;;  %vm1719_vm12 = vcmp.gt.f32.partialorder %v4430_v49, 0.0  ;;  %6535 = vst [vmem:[#allocation18_spill] sm:$0xff] %v4450_v55  ;;  %vm500_vm15 = vcmp.gt.f32.partialorder %v4450_v55, 0.0 }
  0xeb   : > { %v1735_v52 = vsel %vm1719_vm12, %v4430_v49, 1.0  ;;  %v4446_v54 = vpop.f32.mrf.mxu1  ;;  %v2167_v56 = vsel %vm1719_vm12, 1, %v6481_v18  ;;  %v516_v59 = vsel %vm500_vm15, %v4450_v55, 1.0  ;;  %v4464_v60 = vpop.f32.mrf.mxu0  ;;  %v948_v62 = vsel %vm500_vm15, 1, %v6481_v18 }
  0xec   : > { %1843 = vrot.lane.b32.xlu1 %v1731_v25, %s4190_s22  ;;  %2181 = vrot.lane.b32.xlu0 %v2164_v27, %s4191_s24  ;;  %6534 = vst [vmem:[#allocation17_spill] sm:$0xff] %v4446_v54  ;;  %vm1722_vm14 = vcmp.gt.f32.partialorder %v4446_v54, 0.0  ;;  %6536 = vst [vmem:[#allocation19_spill] sm:$0xff] %v4464_v60  ;;  %vm499_vm0 = vcmp.gt.f32.partialorder %v4464_v60, 0.0 }
  0xed   : > { %v1738_v58 = vsel %vm1722_vm14, %v4446_v54, 1.0  ;;  %v4469_v61 = vpop.f32.mrf.mxu1  ;;  %v515_v63 = vsel %vm499_vm0, %v4464_v60, 1.0  ;;  %v4483_v2 = vpop.f32.mrf.mxu0  ;;  %v947_v3 = vsel %vm499_vm0, 1, %v6481_v18 }
  0xee   : > { %6537 = vst [vmem:[#allocation20_spill] sm:$0xff] %v4469_v61  ;;  %vm6479_vm1 = vcmp.gt.f32.partialorder %v4469_v61, 0.0  ;;  %6539 = vst [vmem:[#allocation22_spill] sm:$0xff] %v4483_v2  ;;  %vm502_vm3 = vcmp.gt.f32.partialorder %v4483_v2, 0.0 }
  0xef   : > { %v1737_v0 = vsel %vm6479_vm1, %v4469_v61, 1.0  ;;  %v4479_v1 = vpop.f32.mrf.mxu1  ;;  %v518_v5 = vsel %vm502_vm3, %v4483_v2, 1.0  ;;  %v4496_v6 = vpop.f32.mrf.mxu0  ;;  %v950_v8 = vsel %vm502_vm3, 1, %v6481_v18 }
  0xf0   : > { %2179 = vrot.lane.b32.xlu1 %v2163_v29, %s4191_s24  ;;  %541 = vrot.lane.b32.xlu0 %v509_v30, %s4191_s24  ;;  %6538 = vst [vmem:[#allocation21_spill] sm:$0xff] %v4479_v1  ;;  %vm1724_vm2 = vcmp.gt.f32.partialorder %v4479_v1, 0.0  ;;  %6540 = vst [vmem:[#allocation23_spill] sm:$0xff] %v4496_v6  ;;  %vm501_vm4 = vcmp.gt.f32.partialorder %v4496_v6, 0.0 }
  0xf1   : > { %v1740_v4 = vsel %vm1724_vm2, %v4479_v1, 1.0  ;;  %v4501_v7 = vpop.f32.mrf.mxu1  ;;  %v517_v9 = vsel %vm501_vm4, %v4496_v6, 1.0  ;;  %v4515_v12 = vpop.f32.mrf.mxu0  ;;  %v949_v13 = vsel %vm501_vm4, 1, %v6481_v18 }
  0xf2   : > { %6541 = vst [vmem:[#allocation24_spill] sm:$0xff] %v4501_v7  ;;  %vm6478_vm5 = vcmp.gt.f32.partialorder %v4501_v7, 0.0  ;;  %6543 = vst [vmem:[#allocation26_spill] sm:$0xff] %v4515_v12  ;;  %vm504_vm7 = vcmp.gt.f32.partialorder %v4515_v12, 0.0 }
  0xf3   : > { %v1739_v10 = vsel %vm6478_vm5, %v4501_v7, 1.0  ;;  %v4511_v11 = vpop.f32.mrf.mxu1  ;;  %v520_v15 = vsel %vm504_vm7, %v4515_v12, 1.0  ;;  %v4530_v16 = vpop.f32.mrf.mxu0  ;;  %v952_v27 = vsel %vm504_vm7, 1, %v6481_v18 }
  0xf4   : > { %621 = vrot.lane.b32.xlu0 %v509_v30, %s4190_s22  ;;  %547 = vrot.lane.b32.xlu1 %v512_v31, %s4191_s24  ;;  %6542 = vst [vmem:[#allocation25_spill] sm:$0xff] %v4511_v11  ;;  %vm6489_vm6 = vcmp.gt.f32.partialorder %v4511_v11, 0.0  ;;  %6544 = vst [vmem:[#allocation27_spill] sm:$0xff] %v4530_v16  ;;  %vm503_vm8 = vcmp.gt.f32.partialorder %v4530_v16, 0.0 }
  0xf5   : > { %v1742_v14 = vsel %vm6489_vm6, %v4511_v11, 1.0  ;;  %v4539_v23 = vpop.f32.mrf.mxu1  ;;  %v519_v29 = vsel %vm503_vm8, %v4530_v16, 1.0 }
  0xf6   : > { %6545 = vst [vmem:[#allocation28_spill] sm:$0xff] %v4539_v23  ;;  %vm6477_vm9 = vcmp.gt.f32.partialorder %v4539_v23, 0.0 }
  0xf8   : > { %957 = vrot.lane.b32.xlu0 %v941_v33, %s4191_s24  ;;  %627 = vrot.lane.b32.xlu1 %v512_v31, %s4190_s22  ;;  %v1741_v33 = vsel %vm6477_vm9, %v4539_v23, 1.0 }
  0xfc   : > { %1769 = vrot.lane.b32.xlu0 %v1734_v35, %s4191_s24  ;;  %963 = vrot.lane.b32.xlu1 %v944_v36, %s4191_s24  ;;  %v4563_v36 = vpop.f32.mrf.mxu0 }
  0xfd   : > { %6547 = vst [vmem:[#allocation30_spill] sm:$0xff] %v4563_v36  ;;  %vm506_vm11 = vcmp.gt.f32.partialorder %v4563_v36, 0.0 }
 0x100   : > { %1849 = vrot.lane.b32.xlu0 %v1734_v35, %s4190_s22  ;;  %545 = vrot.lane.b32.xlu1 %v511_v38, %s4191_s24  ;;  %v4559_v35 = vpop.f32.mrf.mxu1 }
 0x101   : > { %6546 = vst [vmem:[#allocation29_spill] sm:$0xff] %v4559_v35  ;;  %vm6488_vm10 = vcmp.gt.f32.partialorder %v4559_v35, 0.0 }
 0x104   : > { %2185 = vrot.lane.b32.xlu0 %v2166_v39, %s4191_s24  ;;  %1767 = vrot.lane.b32.xlu1 %v1733_v40, %s4191_s24 }
 0x108   : > { %625 = vrot.lane.b32.xlu0 %v511_v38, %s4190_s22  ;;  %1847 = vrot.lane.b32.xlu1 %v1733_v40, %s4190_s22  ;;  %v951_v40 = vsel %vm503_vm8, 1, %v6481_v18 }
 0x10c   : > { %961 = vrot.lane.b32.xlu0 %v943_v43, %s4191_s24  ;;  %2183 = vrot.lane.b32.xlu1 %v2165_v44, %s4191_s24  ;;  %v1744_v43 = vsel %vm6488_vm10, %v4559_v35, 1.0  ;;  %v522_v44 = vsel %vm506_vm11, %v4563_v36, 1.0 }
 0x110   : > { %1773 = vrot.lane.b32.xlu0 %v1736_v45, %s4191_s24  ;;  %551 = vrot.lane.b32.xlu1 %v514_v46, %s4191_s24 }
 0x114   : > { %1853 = vrot.lane.b32.xlu0 %v1736_v45, %s4190_s22  ;;  %631 = vrot.lane.b32.xlu1 %v514_v46, %s4190_s22 }
 0x118   : > { %2189 = vrot.lane.b32.xlu0 %v2168_v50, %s4191_s24  ;;  %967 = vrot.lane.b32.xlu1 %v946_v51, %s4191_s24  ;;  %v4588_v50 = vpop.f32.mrf.mxu0 }
 0x119   : > { %6548 = vst [vmem:[#allocation31_spill] sm:$0xff] %v4588_v50  ;;  %vm505_vm12 = vcmp.gt.f32.partialorder %v4588_v50, 0.0 }
 0x11c   : > { %1771 = vrot.lane.b32.xlu1 %v1735_v52, %s4191_s24  ;;  %549 = vrot.lane.b32.xlu0 %v513_v53, %s4191_s24 }
 0x120   : > { %1851 = vrot.lane.b32.xlu1 %v1735_v52, %s4190_s22  ;;  %629 = vrot.lane.b32.xlu0 %v513_v53, %s4190_s22  ;;  %v4595_v53 = vpop.f32.mrf.mxu1 }
 0x121   : > { %6549 = vst [vmem:[#allocation32_spill] sm:$0xff] %v4595_v53  ;;  %vm6476_vm13 = vcmp.gt.f32.partialorder %v4595_v53, 0.0 }
 0x124   : > { %2187 = vrot.lane.b32.xlu1 %v2167_v56, %s4191_s24  ;;  %965 = vrot.lane.b32.xlu0 %v945_v57, %s4191_s24 }
 0x128   : > { %1777 = vrot.lane.b32.xlu0 %v1738_v58, %s4191_s24  ;;  %555 = vrot.lane.b32.xlu1 %v516_v59, %s4191_s24 }
 0x12c   : > { %1857 = vrot.lane.b32.xlu0 %v1738_v58, %s4190_s22  ;;  %635 = vrot.lane.b32.xlu1 %v516_v59, %s4190_s22  ;;  %v954_v58 = vsel %vm506_vm11, 1, %v6481_v18  ;;  %v521_v59 = vsel %vm505_vm12, %v4588_v50, 1.0 }
 0x130   : > { %971 = vrot.lane.b32.xlu1 %v948_v62, %s4191_s24  ;;  %553 = vrot.lane.b32.xlu0 %v515_v63, %s4191_s24 }
 0x134   : > { %1775 = vrot.lane.b32.xlu1 %v1737_v0, %s4191_s24  ;;  %633 = vrot.lane.b32.xlu0 %v515_v63, %s4190_s22 }
 0x138   : > { %1855 = vrot.lane.b32.xlu1 %v1737_v0, %s4190_s22  ;;  %969 = vrot.lane.b32.xlu0 %v947_v3, %s4191_s24  ;;  %v1743_v0 = vsel %vm6476_vm13, %v4595_v53, 1.0  ;;  %v4615_v3 = vpop.f32.mrf.mxu1 }
 0x139   : > { %6550 = vst [vmem:[#allocation33_spill] sm:$0xff] %v4615_v3  ;;  %vm6480_vm15 = vcmp.gt.f32.partialorder %v4615_v3, 0.0 }
 0x13c   : > { %1781 = vrot.lane.b32.xlu0 %v1740_v4, %s4191_s24  ;;  %559 = vrot.lane.b32.xlu1 %v518_v5, %s4191_s24 }
 0x140   : > { %1861 = vrot.lane.b32.xlu0 %v1740_v4, %s4190_s22  ;;  %639 = vrot.lane.b32.xlu1 %v518_v5, %s4190_s22  ;;  %v4619_v4 = vpop.f32.mrf.mxu0 }
 0x141   : > { %6551 = vst [vmem:[#allocation34_spill] sm:$0xff] %v4619_v4  ;;  %vm508_vm0 = vcmp.gt.f32.partialorder %v4619_v4, 0.0 }
 0x144   : > { %975 = vrot.lane.b32.xlu1 %v950_v8, %s4191_s24  ;;  %557 = vrot.lane.b32.xlu0 %v517_v9, %s4191_s24 }
 0x148   : > { %1779 = vrot.lane.b32.xlu1 %v1739_v10, %s4191_s24  ;;  %637 = vrot.lane.b32.xlu0 %v517_v9, %s4190_s22  ;;  %v953_v9 = vsel %vm505_vm12, 1, %v6481_v18 }
 0x14c   : > { %1859 = vrot.lane.b32.xlu1 %v1739_v10, %s4190_s22  ;;  %973 = vrot.lane.b32.xlu0 %v949_v13, %s4191_s24  ;;  %v1746_v10 = vsel %vm6480_vm15, %v4615_v3, 1.0  ;;  %v524_v13 = vsel %vm508_vm0, %v4619_v4, 1.0 }
 0x150   : > { %1785 = vrot.lane.b32.xlu0 %v1742_v14, %s4191_s24  ;;  %563 = vrot.lane.b32.xlu1 %v520_v15, %s4191_s24 }
 0x152   : > { %v4532_v17 = vpop.permute.xlu1 %623  ;;  %v4534_v21 = vpop.permute.xlu0 %543 }
 0x153   : > { %3983 = vrcp.f32 %v4532_v17 }
 0x154   : > { %1865 = vrot.lane.b32.xlu0 %v1742_v14, %s4190_s22  ;;  %643 = vrot.lane.b32.xlu1 %v520_v15, %s4190_s22 }
 0x156   : > { %v4541_v24 = vpop.permute.xlu1 %959  ;;  %v4543_v25 = vpop.permute.xlu0 %1765 }
 0x158   : > { %979 = vrot.lane.b32.xlu1 %v952_v27, %s4191_s24  ;;  %561 = vrot.lane.b32.xlu0 %v519_v29, %s4191_s24  ;;  %v4643_v27 = vpop.f32.mrf.mxu0 }
 0x159   : > { %6552 = vst [vmem:[#allocation35_spill] sm:$0xff] %v4643_v27  ;;  %vm507_vm3 = vcmp.gt.f32.partialorder %v4643_v27, 0.0 }
 0x15a   : > { %v4554_v30 = vpop.permute.xlu1 %1763  ;;  %v1846_v31 = vpop.permute.xlu0 %1845 }
 0x15b   : > { %3985 = vrcp.f32 %v1846_v31 }
 0x15c   : > { %1783 = vrot.lane.b32.xlu1 %v1741_v33, %s4191_s24  ;;  %641 = vrot.lane.b32.xlu0 %v519_v29, %s4190_s22  ;;  %3987 = vrcp.f32 %v4534_v21  ;;  %v523_v21 = vsel %vm507_vm3, %v4643_v27, 1.0 }
 0x15e   : > { %v4565_v38 = vpop.permute.xlu1 %1843  ;;  %v4567_v39 = vpop.permute.xlu0 %2181 }
 0x160   : > { %1863 = vrot.lane.b32.xlu1 %v1741_v33, %s4190_s22  ;;  %977 = vrot.lane.b32.xlu0 %v951_v40, %s4191_s24  ;;  %v4651_v40 = vpop.f32.mrf.mxu1 }
 0x161   : > { %6553 = vst [vmem:[#allocation36_spill] sm:$0xff] %v4651_v40  ;;  %vm6475_vm4 = vcmp.gt.f32.partialorder %v4651_v40, 0.0 }
 0x162   : > { %v4582_v45 = vpop.permute.xlu1 %2179  ;;  %v4584_v46 = vpop.permute.xlu0 %541 }
 0x164   : > { %1789 = vrot.lane.b32.xlu0 %v1744_v43, %s4191_s24  ;;  %567 = vrot.lane.b32.xlu1 %v522_v44, %s4191_s24 }
 0x166   : > { %v622_v51 = vpop.permute.xlu0 %621  ;;  %v4590_v52 = vpop.permute.xlu1 %547 }
 0x167   : > { %3989 = vrcp.f32 %v622_v51 }
 0x168   : > { %1869 = vrot.lane.b32.xlu0 %v1744_v43, %s4190_s22  ;;  %647 = vrot.lane.b32.xlu1 %v522_v44, %s4190_s22  ;;  %v956_v43 = vsel %vm508_vm0, 1, %v6481_v18  ;;  %3991 = vrcp.f32 %v4565_v38 }
 0x16a   : > { %v4597_v56 = vpop.permute.xlu0 %957  ;;  %v628_v57 = vpop.permute.xlu1 %627 }
 0x16b   : > { %vm989_vm10 = vcmp.ne.s32.totalorder %v4597_v56, 0 }
 0x16c   : > { %983 = vrot.lane.b32.xlu1 %v954_v58, %s4191_s24  ;;  %565 = vrot.lane.b32.xlu0 %v521_v59, %s4191_s24 }
 0x16e   : > { %v4608_v62 = vpop.permute.xlu0 %1769  ;;  %v4610_v63 = vpop.permute.xlu1 %963 }
 0x170   : > { %1787 = vrot.lane.b32.xlu1 %v1743_v0, %s4191_s24  ;;  %645 = vrot.lane.b32.xlu0 %v521_v59, %s4190_s22  ;;  %v1745_v59 = vsel %vm6475_vm4, %v4651_v40, 1.0 }
 0x172   : > { %v1850_v5 = vpop.permute.xlu0 %1849  ;;  %v4621_v8 = vpop.permute.xlu1 %545 }
 0x173   : > { %3993 = vrcp.f32 %v1850_v5 }
 0x174   : > { %1867 = vrot.lane.b32.xlu1 %v1743_v0, %s4190_s22  ;;  %981 = vrot.lane.b32.xlu0 %v953_v9, %s4191_s24  ;;  %v3984_v0 = vpop.eup %3983  ;;  %3995 = vrcp.f32 %v628_v57 }
 0x175   : > { %v3986_v51 = vpop.eup %3985  ;;  %v672_v47 = vmul.f32 %v3984_v0, %v4343_v19 }
 0x176   : > { %v4636_v14 = vpop.permute.xlu0 %2185  ;;  %v4638_v15 = vpop.permute.xlu1 %1767 }
 0x177   : > { %vm750_vm7 = vcmp.ge.f32.partialorder %v672_v47, 0.0  ;;  %vm846_vm11 = vcmp.le.f32.partialorder %v672_v47, 7.0 }
 0x178   : > { %1793 = vrot.lane.b32.xlu0 %v1746_v10, %s4191_s24  ;;  %571 = vrot.lane.b32.xlu1 %v524_v13, %s4191_s24  ;;  %v766_v57 = vsel %vm750_vm7, 1, %v6481_v18 }
 0x17a   : > { %v626_v29 = vpop.permute.xlu0 %625  ;;  %v4646_v33 = vpop.permute.xlu1 %1847 }
 0x17b   : > { %3997 = vrcp.f32 %v626_v29 }
 0x17c   : > { %1873 = vrot.lane.b32.xlu0 %v1746_v10, %s4190_s22  ;;  %651 = vrot.lane.b32.xlu1 %v524_v13, %s4190_s22  ;;  %v3988_v13 = vpop.eup %3987 }
 0x17d   : > { %v4692_v38 = vmul.f32 %v3988_v13, %v4343_v19  ;;  %v3990_v5 = vpop.eup %3989 }
 0x17e   : > { %v4653_v17 = vpop.permute.xlu0 %961  ;;  %v4655_v31 = vpop.permute.xlu1 %2183  ;;  %v670_v13 = vmul.f32 %v3990_v5, %v4362_v26 }
 0x17f   : > { %6554 = vst [vmem:[#allocation37_spill] sm:$0xff] %v4653_v17  ;;  %6555 = vst [vmem:[#allocation38_spill] sm:$0xff] %v4655_v31  ;;  %v3992_v17 = vpop.eup %3991 }
 0x180   : > { %987 = vrot.lane.b32.xlu1 %v956_v43, %s4191_s24  ;;  %569 = vrot.lane.b32.xlu0 %v523_v21, %s4191_s24  ;;  %v955_v43 = vsel %vm507_vm3, 1, %v6481_v18  ;;  %vm749_vm0 = vcmp.ge.f32.partialorder %v670_v13, 0.0  ;;  %vm845_vm3 = vcmp.le.f32.partialorder %v670_v13, 7.0 }
 0x182   : > { %v4666_v44 = vpop.permute.xlu0 %1773  ;;  %v4668_v58 = vpop.permute.xlu1 %551 }
 0x184   : > { %1791 = vrot.lane.b32.xlu1 %v1745_v59, %s4191_s24  ;;  %649 = vrot.lane.b32.xlu0 %v523_v21, %s4190_s22  ;;  %v4685_v21 = vmul.f32 %v3986_v51, %v4346_v20 }
 0x186   : > { %v1854_v9 = vpop.permute.xlu0 %1853  ;;  %v4675_v10 = vpop.permute.xlu1 %631  ;;  %6556 = vst [vmem:[#allocation39_spill] sm:$0xff] %v4685_v21  ;;  %vm1972_vm8 = vcmp.ge.f32.partialorder %v4685_v21, 0.0  ;;  %vm2068_vm12 = vcmp.le.f32.partialorder %v4685_v21, 7.0  ;;  %v4720_v21 = vmul.f32 %v3992_v17, %v4352_v22 }
 0x187   : > { %v1988_v51 = vsel %vm1972_vm8, 1, %v6481_v18  ;;  %3999 = vrcp.f32 %v1854_v9 }
 0x188   : > { %1871 = vrot.lane.b32.xlu1 %v1745_v59, %s4190_s22  ;;  %985 = vrot.lane.b32.xlu0 %v955_v43, %s4191_s24  ;;  %v6560_v43 = vmov 1   ;;  %6563 = vst [vmem:[#allocation45_spill] sm:$0xff] %v4720_v21  ;;  %vm1971_vm7 = vcmp.ge.f32.partialorder %v4720_v21, 0.0  ;;  %4001 = vrcp.f32 %v4621_v8 }
 0x18a   : > { %v4687_v40 = vpop.permute.xlu0 %2189  ;;  %v4689_v31 = vpop.permute.xlu1 %967 }
 0x18b   : > { %6557 = vst [vmem:[#allocation40_spill] sm:$0xff] %v4687_v40  ;;  %6558 = vst [vmem:[#allocation41_spill] sm:$0xff] %v4689_v31  ;;  %v862_v40 = vsel %vm846_vm11, 1, %v6481_v18  ;;  %vm2067_vm11 = vcmp.le.f32.partialorder %v4720_v21, 7.0 }
 0x18c   : > { %1060 = vperm.xlu1 %3786, %v4692_v38   ;;  %1204 = vperm.xlu0 %3787, %v672_v47   ;;  %v3994_v47 = vpop.eup %3993 }
 0x18d   : > { %v3996_v5 = vpop.eup %3995 }
 0x18e   : > { %v4696_v59 = vpop.permute.xlu1 %1771  ;;  %v4698_v0 = vpop.permute.xlu0 %549 }
 0x18f   : > { %6559 = vst [vmem:[#allocation42_spill] sm:$0xff] %v4696_v59  ;;  %v2084_v59 = vsel %vm2068_vm12, 1, %v6481_v18  ;;  %v3998_v17 = vpop.eup %3997 }
 0x190   : > { %783 = vrot.lane.b32.xlu1 %v766_v57, %s4190_s22  ;;  %2005 = vrot.lane.b32.xlu0 %v1988_v51, %s4190_s22  ;;  %v765_v51 = vsel %vm749_vm0, 1, %v6481_v18  ;;  %v674_v9 = vmul.f32 %v3998_v17, %v4384_v34 }
 0x191   : > { %3788 = vset.pattern.permute.xlu1 %v6560_v43 }
 0x192   : > { %v4707_v19 = vpop.permute.xlu1 %1851  ;;  %v630_v31 = vpop.permute.xlu0 %629 }
 0x193   : > { %4003 = vrcp.f32 %v630_v31 }
 0x194   : > { %879 = vrot.lane.b32.xlu1 %v862_v40, %s4190_s22  ;;  %2101 = vrot.lane.b32.xlu0 %v2084_v59, %s4190_s22  ;;  %v4723_v40 = vmul.f32 %v3994_v47, %v4376_v32  ;;  %4005 = vrcp.f32 %v4646_v33 }
 0x195   : > { %4007 = vrcp.f32 %v4675_v10 }
 0x196   : > { %v4713_v29 = vpop.permute.xlu1 %2187  ;;  %v4715_v57 = vpop.permute.xlu0 %965  ;;  %6564 = vst [vmem:[#allocation46_spill] sm:$0xff] %v4723_v40  ;;  %vm1974_vm8 = vcmp.ge.f32.partialorder %v4723_v40, 0.0  ;;  %vm2070_vm12 = vcmp.le.f32.partialorder %v4723_v40, 7.0 }
 0x197   : > { %6561 = vst [vmem:[#allocation43_spill] sm:$0xff] %v4713_v29  ;;  %6562 = vst [vmem:[#allocation44_spill] sm:$0xff] %v4715_v57  ;;  %v676_v29 = vmul.f32 %v3996_v5, %v4368_v28  ;;  %v861_v57 = vsel %vm845_vm3, 1, %v6481_v18  ;;  %v1990_v5 = vsel %vm1974_vm8, 1, %v6481_v18  ;;  %vm751_vm3 = vcmp.ge.f32.partialorder %v674_v9, 0.0 }
 0x198   : > { %1199 = vperm.xlu1 %3788, %v670_v13   ;;  %781 = vrot.lane.b32.xlu0 %v765_v51, %s4190_s22  ;;  %v1987_v51 = vsel %vm1971_vm7, 1, %v6481_v18  ;;  %vm847_vm8 = vcmp.le.f32.partialorder %v674_v9, 7.0 }
 0x199   : > { %vm752_vm0 = vcmp.ge.f32.partialorder %v676_v29, 0.0  ;;  %vm848_vm7 = vcmp.le.f32.partialorder %v676_v29, 7.0  ;;  %v863_v10 = vsel %vm847_vm8, 1, %v6481_v18 }
 0x19a   : > { %v4725_v59 = vpop.permute.xlu0 %1777  ;;  %v4727_v4 = vpop.permute.xlu1 %555  ;;  %v864_v40 = vsel %vm848_vm7, 1, %v6481_v18 }
 0x19b   : > { %6565 = vst [vmem:[#allocation47_spill] sm:$0xff] %v4725_v59  ;;  %6566 = vst [vmem:[#allocation48_spill] sm:$0xff] %v4727_v4  ;;  %v2086_v59 = vsel %vm2070_vm12, 1, %v6481_v18 }
 0x19c   : > { %1214 = vperm.xlu1 %3788, %v676_v29   ;;  %877 = vrot.lane.b32.xlu0 %v861_v57, %s4190_s22  ;;  %v2083_v57 = vsel %vm2067_vm11, 1, %v6481_v18 }
 0x19e   : > { %v1858_v13 = vpop.permute.xlu0 %1857  ;;  %v4735_v47 = vpop.permute.xlu1 %635 }
 0x19f   : > { %4009 = vrcp.f32 %v1858_v13 }
 0x1a0   : > { %2003 = vrot.lane.b32.xlu1 %v1987_v51, %s4190_s22  ;;  %2009 = vrot.lane.b32.xlu0 %v1990_v5, %s4190_s22  ;;  %v768_v5 = vsel %vm752_vm0, 1, %v6481_v18 }
 0x1a1   : > { %3789 = vset.pattern.permute.xlu1 %v6481_v18 }
 0x1a2   : > { %v4745_v8 = vpop.permute.xlu1 %971  ;;  %v4747_v31 = vpop.permute.xlu0 %553 }
 0x1a3   : > { %6567 = vst [vmem:[#allocation49_spill] sm:$0xff] %v4745_v8  ;;  %v767_v8 = vsel %vm751_vm3, 1, %v6481_v18 }
 0x1a4   : > { %2099 = vrot.lane.b32.xlu1 %v2083_v57, %s4190_s22  ;;  %2105 = vrot.lane.b32.xlu0 %v2086_v59, %s4190_s22  ;;  %v4000_v59 = vpop.eup %3999 }
 0x1a5   : > { %v4002_v57 = vpop.eup %4001 }
 0x1a6   : > { %v4754_v51 = vpop.permute.xlu1 %1775  ;;  %v634_v17 = vpop.permute.xlu0 %633  ;;  %v4777_v21 = vmul.f32 %v4002_v57, %v4384_v34 }
 0x1a7   : > { %6568 = vst [vmem:[#allocation50_spill] sm:$0xff] %v4754_v51  ;;  %v4004_v51 = vpop.eup %4003  ;;  %4011 = vrcp.f32 %v634_v17 }
 0x1a8   : > { %787 = vrot.lane.b32.xlu1 %v768_v5, %s4190_s22  ;;  %785 = vrot.lane.b32.xlu0 %v767_v8, %s4190_s22  ;;  %v4770_v5 = vmul.f32 %v4000_v59, %v4403_v41  ;;  %4013 = vrcp.f32 %v4698_v0 }
 0x1a9   : > { %4015 = vrcp.f32 %v4707_v19 }
 0x1aa   : > { %v4761_v4 = vpop.permute.xlu1 %1855  ;;  %v4763_v33 = vpop.permute.xlu0 %969  ;;  %6570 = vst [vmem:[#allocation52_spill] sm:$0xff] %v4770_v5  ;;  %vm1976_vm11 = vcmp.ge.f32.partialorder %v4770_v5, 0.0  ;;  %vm2072_vm12 = vcmp.le.f32.partialorder %v4770_v5, 7.0  ;;  %4017 = vrcp.f32 %v4735_v47 }
 0x1ab   : > { %6569 = vst [vmem:[#allocation51_spill] sm:$0xff] %v4763_v33  ;;  %v678_v33 = vmul.f32 %v4004_v51, %v4428_v48  ;;  %v2088_v17 = vsel %vm2072_vm12, 1, %v6481_v18 }
 0x1ac   : > { %883 = vrot.lane.b32.xlu1 %v864_v40, %s4190_s22  ;;  %881 = vrot.lane.b32.xlu0 %v863_v10, %s4190_s22  ;;  %v4006_v40 = vpop.eup %4005 }
 0x1ad   : > { %v4008_v41 = vpop.eup %4007  ;;  %v4789_v13 = vmul.f32 %v4006_v40, %v4391_v37  ;;  %vm753_vm0 = vcmp.ge.f32.partialorder %v678_v33, 0.0  ;;  %vm849_vm7 = vcmp.le.f32.partialorder %v678_v33, 7.0 }
 0x1ae   : > { %v4772_v29 = vpop.permute.xlu0 %1781  ;;  %v4774_v8 = vpop.permute.xlu1 %559  ;;  %v680_v34 = vmul.f32 %v4008_v41, %v4407_v42  ;;  %v769_v40 = vsel %vm753_vm0, 1, %v6481_v18 }
 0x1af   : > { %6571 = vst [vmem:[#allocation53_spill] sm:$0xff] %v4772_v29  ;;  %6572 = vst [vmem:[#allocation54_spill] sm:$0xff] %v4774_v8  ;;  %v1992_v29 = vsel %vm1976_vm11, 1, %v6481_v18  ;;  %vm1973_vm3 = vcmp.ge.f32.partialorder %v4789_v13, 0.0  ;;  %v4010_v8 = vpop.eup %4009  ;;  %vm2069_vm8 = vcmp.le.f32.partialorder %v4789_v13, 7.0 }
 0x1b0   : > { %1065 = vperm.xlu1 %3789, %v4777_v21   ;;  %1219 = vperm.xlu0 %3787, %v678_v33   ;;  %6573 = vst [vmem:[#allocation55_spill] sm:$0xff] %v4789_v13  ;;  %v2085_v33 = vsel %vm2069_vm8, 1, %v6481_v18  ;;  %vm754_vm11 = vcmp.ge.f32.partialorder %v680_v34, 0.0  ;;  %vm850_vm0 = vcmp.le.f32.partialorder %v680_v34, 7.0 }
 0x1b1   : > { %v770_v47 = vsel %vm754_vm11, 1, %v6481_v18 }
 0x1b2   : > { %v1862_v10 = vpop.permute.xlu0 %1861  ;;  %v4782_v59 = vpop.permute.xlu1 %639 }
 0x1b3   : > { %4019 = vrcp.f32 %v1862_v10 }
 0x1b4   : > { %3790 = vset.pattern.permute.xlu1 %v6560_v43  ;;  %2013 = vrot.lane.b32.xlu0 %v1992_v29, %s4190_s22  ;;  %v4012_v0 = vpop.eup %4011 }
 0x1b5   : > { %1209 = vperm.xlu1 %3790, %v674_v9   ;;  %v4014_v13 = vpop.eup %4013 }
 0x1b6   : > { %v4791_v51 = vpop.permute.xlu1 %975  ;;  %v4793_v57 = vpop.permute.xlu0 %557 }
 0x1b7   : > { %6574 = vst [vmem:[#allocation56_spill] sm:$0xff] %v4791_v51  ;;  %v1989_v51 = vsel %vm1973_vm3, 1, %v6481_v18 }
 0x1b8   : > { %2109 = vrot.lane.b32.xlu0 %v2088_v17, %s4190_s22 }
 0x1b9   : > { %1224 = vperm.xlu1 %3790, %v680_v34   ;;  %v4016_v34 = vpop.eup %4015 }
 0x1ba   : > { %v4799_v29 = vpop.permute.xlu1 %1779  ;;  %v638_v9 = vpop.permute.xlu0 %637 }
 0x1bb   : > { %6575 = vst [vmem:[#allocation57_spill] sm:$0xff] %v4799_v29  ;;  %v865_v29 = vsel %vm849_vm7, 1, %v6481_v18  ;;  %4021 = vrcp.f32 %v638_v9 }
 0x1bc   : > { %789 = vrot.lane.b32.xlu0 %v769_v40, %s4190_s22  ;;  %4023 = vrcp.f32 %v4747_v31 }
 0x1bd   : > { %2007 = vrot.lane.b32.xlu1 %v1989_v51, %s4190_s22  ;;  %v4818_v51 = vmul.f32 %v4010_v8, %v4446_v54  ;;  %4025 = vrcp.f32 %v4761_v4 }
 0x1be   : > { %v4808_v41 = vpop.permute.xlu1 %1859  ;;  %v4810_v17 = vpop.permute.xlu0 %973  ;;  %3791 = vset.pattern.permute.xlu1 %v6481_v18 }
 0x1bf   : > { %6576 = vst [vmem:[#allocation58_spill] sm:$0xff] %v4810_v17  ;;  %6577 = vst [vmem:[#allocation59_spill] sm:$0xff] %v4818_v51  ;;  %v682_v17 = vmul.f32 %v4012_v0, %v4464_v60  ;;  %vm1978_vm12 = vcmp.ge.f32.partialorder %v4818_v51, 0.0  ;;  %v866_v0 = vsel %vm850_vm0, 1, %v6481_v18  ;;  %vm2074_vm3 = vcmp.le.f32.partialorder %v4818_v51, 7.0 }
 0x1c0   : > { %885 = vrot.lane.b32.xlu0 %v865_v29, %s4190_s22  ;;  %v2090_v9 = vsel %vm2074_vm3, 1, %v6481_v18 }
 0x1c1   : > { %2103 = vrot.lane.b32.xlu1 %v2085_v33, %s4190_s22  ;;  %v1994_v33 = vsel %vm1978_vm12, 1, %v6481_v18  ;;  %vm755_vm7 = vcmp.ge.f32.partialorder %v682_v17, 0.0  ;;  %vm851_vm8 = vcmp.le.f32.partialorder %v682_v17, 7.0 }
 0x1c2   : > { %v4821_v19 = vpop.permute.xlu0 %1785  ;;  %v4823_v40 = vpop.permute.xlu1 %563 }
 0x1c3   : > { %6578 = vst [vmem:[#allocation60_spill] sm:$0xff] %v4821_v19  ;;  %6579 = vst [vmem:[#allocation61_spill] sm:$0xff] %v4823_v40 }
 0x1c4   : > { %1229 = vperm.xlu0 %3787, %v682_v17  }
 0x1c5   : > { %791 = vrot.lane.b32.xlu1 %v770_v47, %s4190_s22  ;;  %v4842_v47 = vmul.f32 %v4014_v13, %v4428_v48 }
 0x1c6   : > { %v1866_v8 = vpop.permute.xlu0 %1865  ;;  %v4829_v29 = vpop.permute.xlu1 %643 }
 0x1c7   : > { %4027 = vrcp.f32 %v1866_v8 }
 0x1c8   : > { %2017 = vrot.lane.b32.xlu0 %v1994_v33, %s4190_s22  ;;  %v4018_v33 = vpop.eup %4017  ;;  %4029 = vrcp.f32 %v4782_v59 }
 0x1c9   : > { %887 = vrot.lane.b32.xlu1 %v866_v0, %s4190_s22  ;;  %v4849_v0 = vmul.f32 %v4016_v34, %v4430_v49  ;;  %v684_v5 = vmul.f32 %v4018_v33, %v4450_v55  ;;  %v4020_v13 = vpop.eup %4019  ;;  %v867_v34 = vsel %vm851_vm8, 1, %v6481_v18 }
 0x1ca   : > { %v4836_v10 = vpop.permute.xlu1 %979  ;;  %v4838_v19 = vpop.permute.xlu0 %561 }
 0x1cb   : > { %6580 = vst [vmem:[#allocation62_spill] sm:$0xff] %v4836_v10  ;;  %6582 = vst [vmem:[#allocation64_spill] sm:$0xff] %v4849_v0  ;;  %v771_v10 = vsel %vm755_vm7, 1, %v6481_v18  ;;  %vm1975_vm11 = vcmp.ge.f32.partialorder %v4849_v0, 0.0  ;;  %vm2071_vm12 = vcmp.le.f32.partialorder %v4849_v0, 7.0  ;;  %vm756_vm3 = vcmp.ge.f32.partialorder %v684_v5, 0.0 }
 0x1cc   : > { %2113 = vrot.lane.b32.xlu0 %v2090_v9, %s4190_s22  ;;  %v1991_v17 = vsel %vm1975_vm11, 1, %v6481_v18  ;;  %v2087_v31 = vsel %vm2071_vm12, 1, %v6481_v18  ;;  %v772_v4 = vsel %vm756_vm3, 1, %v6481_v18  ;;  %vm852_vm8 = vcmp.le.f32.partialorder %v684_v5, 7.0 }
 0x1cd   : > { %1075 = vperm.xlu1 %3791, %v4842_v47  }
 0x1ce   : > { %v4846_v40 = vpop.permute.xlu1 %1783  ;;  %v642_v51 = vpop.permute.xlu0 %641 }
 0x1cf   : > { %6581 = vst [vmem:[#allocation63_spill] sm:$0xff] %v4846_v40  ;;  %v4022_v40 = vpop.eup %4021  ;;  %4031 = vrcp.f32 %v642_v51 }
 0x1d0   : > { %793 = vrot.lane.b32.xlu0 %v771_v10, %s4190_s22  ;;  %v4864_v10 = vmul.f32 %v4020_v13, %v4479_v1 }
 0x1d1   : > { %3792 = vset.pattern.permute.xlu1 %v6560_v43 }
 0x1d2   : > { %v4855_v9 = vpop.permute.xlu1 %1863  ;;  %v4857_v48 = vpop.permute.xlu0 %977  ;;  %1234 = vperm.xlu1 %3792, %v684_v5   ;;  %6584 = vst [vmem:[#allocation66_spill] sm:$0xff] %v4864_v10  ;;  %vm1980_vm0 = vcmp.ge.f32.partialorder %v4864_v10, 0.0  ;;  %vm2076_vm7 = vcmp.le.f32.partialorder %v4864_v10, 7.0 }
 0x1d3   : > { %6583 = vst [vmem:[#allocation65_spill] sm:$0xff] %v4857_v48  ;;  %v686_v48 = vmul.f32 %v4022_v40, %v4496_v6  ;;  %v1996_v40 = vsel %vm1980_vm0, 1, %v6481_v18  ;;  %v2092_v51 = vsel %vm2076_vm7, 1, %v6481_v18 }
 0x1d4   : > { %889 = vrot.lane.b32.xlu0 %v867_v34, %s4190_s22 }
 0x1d5   : > { %vm757_vm11 = vcmp.ge.f32.partialorder %v686_v48, 0.0  ;;  %vm853_vm12 = vcmp.le.f32.partialorder %v686_v48, 7.0 }
 0x1d6   : > { %v4867_v33 = vpop.permute.xlu0 %1789  ;;  %v4869_v55 = vpop.permute.xlu1 %567  ;;  %2011 = vrot.lane.b32.xlu1 %v1991_v17, %s4190_s22 }
 0x1d7   : > { %6585 = vst [vmem:[#allocation67_spill] sm:$0xff] %v4867_v33  ;;  %6586 = vst [vmem:[#allocation68_spill] sm:$0xff] %v4869_v55  ;;  %3793 = vset.pattern.permute.xlu1 %v6481_v18  ;;  %v4024_v17 = vpop.eup %4023 }
 0x1d8   : > { %1239 = vperm.xlu0 %3787, %v686_v48   ;;  %v4026_v10 = vpop.eup %4025  ;;  %v4900_v5 = vmul.f32 %v4024_v17, %v4464_v60 }
 0x1d9   : > { %v4909_v49 = vmul.f32 %v4026_v10, %v4469_v61 }
 0x1da   : > { %v1870_v13 = vpop.permute.xlu0 %1869  ;;  %v4879_v34 = vpop.permute.xlu1 %647  ;;  %2107 = vrot.lane.b32.xlu1 %v2087_v31, %s4190_s22  ;;  %v868_v31 = vsel %vm852_vm8, 1, %v6481_v18 }
 0x1db   : > { %6590 = vst [vmem:[#allocation72_spill] sm:$0xff] %v4909_v49  ;;  %vm1977_vm0 = vcmp.ge.f32.partialorder %v4909_v49, 0.0  ;;  %4033 = vrcp.f32 %v1870_v13  ;;  %vm2073_vm7 = vcmp.le.f32.partialorder %v4909_v49, 7.0 }
 0x1dc   : > { %2021 = vrot.lane.b32.xlu0 %v1996_v40, %s4190_s22  ;;  %4035 = vrcp.f32 %v4793_v57  ;;  %v1993_v10 = vsel %vm1977_vm0, 1, %v6481_v18  ;;  %v2089_v57 = vsel %vm2073_vm7, 1, %v6481_v18 }
 0x1de   : > { %v4886_v8 = vpop.permute.xlu1 %983  ;;  %v4888_v59 = vpop.permute.xlu0 %565  ;;  %795 = vrot.lane.b32.xlu1 %v772_v4, %s4190_s22 }
 0x1df   : > { %6587 = vst [vmem:[#allocation69_spill] sm:$0xff] %v4886_v8  ;;  %v773_v8 = vsel %vm757_vm11, 1, %v6481_v18  ;;  %v4028_v4 = vpop.eup %4027 }
 0x1e0   : > { %2117 = vrot.lane.b32.xlu0 %v2092_v51, %s4190_s22  ;;  %v4030_v51 = vpop.eup %4029 }
 0x1e1   : > { %v688_v48 = vmul.f32 %v4030_v51, %v4483_v2 }
 0x1e2   : > { %v4894_v40 = vpop.permute.xlu1 %1787  ;;  %v646_v33 = vpop.permute.xlu0 %645  ;;  %891 = vrot.lane.b32.xlu1 %v868_v31, %s4190_s22  ;;  %v869_v31 = vsel %vm853_vm12, 1, %v6481_v18 }
 0x1e3   : > { %6588 = vst [vmem:[#allocation70_spill] sm:$0xff] %v4894_v40  ;;  %v4032_v40 = vpop.eup %4031  ;;  %4037 = vrcp.f32 %v646_v33  ;;  %vm758_vm11 = vcmp.ge.f32.partialorder %v688_v48, 0.0  ;;  %vm854_vm0 = vcmp.le.f32.partialorder %v688_v48, 7.0 }
 0x1e4   : > { %797 = vrot.lane.b32.xlu0 %v773_v8, %s4190_s22  ;;  %v4913_v8 = vmul.f32 %v4028_v4, %v4511_v11  ;;  %v690_v17 = vmul.f32 %v4032_v40, %v4530_v16  ;;  %4039 = vrcp.f32 %v4808_v41  ;;  %v774_v41 = vsel %vm758_vm11, 1, %v6481_v18 }
 0x1e5   : > { %4041 = vrcp.f32 %v4829_v29 }
 0x1e6   : > { %v4902_v0 = vpop.permute.xlu1 %1867  ;;  %v4904_v55 = vpop.permute.xlu0 %981  ;;  %1085 = vperm.xlu1 %3793, %v4900_v5   ;;  %vm1982_vm3 = vcmp.ge.f32.partialorder %v4913_v8, 0.0  ;;  %vm2078_vm8 = vcmp.le.f32.partialorder %v4913_v8, 7.0  ;;  %vm759_vm12 = vcmp.ge.f32.partialorder %v690_v17, 0.0  ;;  %4043 = vrcp.f32 %v4543_v25 }
 0x1e7   : > { %6589 = vst [vmem:[#allocation71_spill] sm:$0xff] %v4904_v55  ;;  %v1998_v40 = vsel %vm1982_vm3, 1, %v6481_v18  ;;  %v2094_v33 = vsel %vm2078_vm8, 1, %v6481_v18  ;;  %v775_v29 = vsel %vm759_vm12, 1, %v6481_v18  ;;  %vm855_vm3 = vcmp.le.f32.partialorder %v690_v17, 7.0 }
 0x1e8   : > { %893 = vrot.lane.b32.xlu0 %v869_v31, %s4190_s22  ;;  %v871_v25 = vsel %vm855_vm3, 1, %v6481_v18  ;;  %vm702_vm3 = vcmp.ge.f32.partialorder %v4692_v38, 0.0 }
 0x1ea   : > { %3794 = vset.pattern.permute.xlu1 %v6560_v43  ;;  %v4918_v60 = vpop.permute.xlu0 %1793  ;;  %v4920_v55 = vpop.permute.xlu1 %571 }
 0x1eb   : > { %6591 = vst [vmem:[#allocation73_spill] sm:$0xff] %v4918_v60  ;;  %1244 = vperm.xlu1 %3794, %v688_v48  }
 0x1ec   : > { %1249 = vperm.xlu0 %3787, %v690_v17  }
 0x1ee   : > { %v1874_v13 = vpop.permute.xlu0 %1873  ;;  %v4933_v4 = vpop.permute.xlu1 %651 }
 0x1ef   : > { %2015 = vrot.lane.b32.xlu1 %v1993_v10, %s4190_s22  ;;  %v4034_v10 = vpop.eup %4033  ;;  %4045 = vrcp.f32 %v1874_v13 }
 0x1f0   : > { %2025 = vrot.lane.b32.xlu0 %v1998_v40, %s4190_s22  ;;  %3795 = vset.pattern.permute.xlu1 %v6481_v18  ;;  %v4036_v40 = vpop.eup %4035 }
 0x1f1   : > { %v4959_v17 = vmul.f32 %v4036_v40, %v4496_v6 }
 0x1f2   : > { %v4942_v51 = vpop.permute.xlu1 %987  ;;  %v4944_v31 = vpop.permute.xlu0 %569 }
 0x1f3   : > { %2111 = vrot.lane.b32.xlu1 %v2089_v57, %s4190_s22  ;;  %6592 = vst [vmem:[#allocation74_spill] sm:$0xff] %v4942_v51  ;;  %v870_v57 = vsel %vm854_vm0, 1, %v6481_v18  ;;  %v4954_v51 = vmul.f32 %v4034_v10, %v4559_v35 }
 0x1f4   : > { %2121 = vrot.lane.b32.xlu0 %v2094_v33, %s4190_s22  ;;  %v4038_v33 = vpop.eup %4037 }
 0x1f5   : > { %vm1984_vm7 = vcmp.ge.f32.partialorder %v4954_v51, 0.0  ;;  %vm2080_vm11 = vcmp.le.f32.partialorder %v4954_v51, 7.0 }
 0x1f6   : > { %v4956_v60 = vpop.permute.xlu1 %1791  ;;  %v650_v48 = vpop.permute.xlu0 %649  ;;  %v2000_v13 = vsel %vm1984_vm7, 1, %v6481_v18  ;;  %vm718_vm7 = vcmp.le.f32.partialorder %v4692_v38, 7.0 }
 0x1f7   : > { %799 = vrot.lane.b32.xlu1 %v774_v41, %s4190_s22  ;;  %v4040_v41 = vpop.eup %4039  ;;  %4047 = vrcp.f32 %v650_v48  ;;  %vm734_vm5 = vmand %vm702_vm3, %vm718_vm7 }
 0x1f8   : > { %801 = vrot.lane.b32.xlu0 %v775_v29, %s4190_s22  ;;  %v694_v29 = vmul.f32 %v4038_v33, %v4588_v50  ;;  %v4042_v49 = vpop.eup %4041  ;;  %4049 = vrcp.f32 %v4584_v46 }
 0x1f9   : > { %v4968_v10 = vmul.f32 %v4042_v49, %v4515_v12  ;;  %4051 = vrcp.f32 %v4554_v30 }
 0x1fa   : > { %v4971_v40 = vpop.permute.xlu1 %1871  ;;  %v4973_v33 = vpop.permute.xlu0 %985  ;;  %4053 = vrcp.f32 %v4838_v19  ;;  %vm761_vm0 = vcmp.ge.f32.partialorder %v694_v29, 0.0  ;;  %vm857_vm9 = vcmp.le.f32.partialorder %v694_v29, 7.0 }
 0x1fb   : > { %895 = vrot.lane.b32.xlu1 %v870_v57, %s4190_s22  ;;  %v4965_v57 = vmul.f32 %v4040_v41, %v4501_v7  ;;  %4055 = vrcp.f32 %v4608_v62  ;;  %vm760_vm13 = vcmp.ge.f32.partialorder %v4968_v10, 0.0 }
 0x1fc   : > { %897 = vrot.lane.b32.xlu0 %v871_v25, %s4190_s22  ;;  %v4044_v25 = vpop.eup %4043  ;;  %4057 = vrcp.f32 %v4855_v9 }
 0x1fd   : > { %vm1979_vm8 = vcmp.ge.f32.partialorder %v4965_v57, 0.0  ;;  %v4984_v49 = vmul.f32 %v4044_v25, %v4346_v20  ;;  %vm2075_vm12 = vcmp.le.f32.partialorder %v4965_v57, 7.0  ;;  %4059 = vrcp.f32 %v4879_v34  ;;  %v4046_v9 = vpop.eup %4045 }
 0x1fe   : > { %v1995_v48 = vsel %vm1979_vm8, 1, %v6481_v18  ;;  %v2091_v19 = vsel %vm2075_vm12, 1, %v6481_v18  ;;  %v777_v25 = vsel %vm761_vm0, 1, %v6481_v18  ;;  %4061 = vrcp.f32 %v4590_v52 }
 0x1ff   : > { %1095 = vperm.xlu1 %3795, %v4959_v17   ;;  %vm1924_vm4 = vcmp.ge.f32.partialorder %v4984_v49, 0.0  ;;  %vm1940_vm8 = vcmp.le.f32.partialorder %v4984_v49, 7.0  ;;  %v5023_v52 = vmul.f32 %v4046_v9, %v4615_v3  ;;  %4063 = vrcp.f32 %v4888_v59 }
 0x200   : > { %1259 = vperm.xlu0 %3787, %v694_v29   ;;  %vm1956_vm12 = vmand %vm1924_vm4, %vm1940_vm8  ;;  %vm856_vm4 = vcmp.le.f32.partialorder %v4968_v10, 7.0  ;;  %4065 = vrcp.f32 %v4638_v15 }
 0x201   : > { %6597 = vst [vmem:[#allocation77_spill] sm:$0xff] %v5023_v52  ;;  %4067 = vrcp.f32 %v4902_v0 }
 0x202   : > { %4069 = vrcp.f32 %v4666_v44 }
 0x203   : > { %3796 = vset.pattern.permute.xlu1 %v6560_v43  ;;  %4071 = vrcp.f32 %v4933_v4 }
 0x204   : > { %1254 = vperm.xlu1 %3796, %v4968_v10   ;;  %2029 = vrot.lane.b32.xlu0 %v2000_v13, %s4190_s22  ;;  %v2096_v13 = vsel %vm2080_vm11, 1, %v6481_v18  ;;  %v4048_v34 = vpop.eup %4047  ;;  %4073 = vrcp.f32 %v4668_v58 }
 0x205   : > { %4075 = vrcp.f32 %v4971_v40 }
 0x206   : > { %4077 = vrcp.f32 %v4944_v31  ;;  %v6621_v31 = vld [vmem:[#allocation37_spill] sm:$0xff] }
 0x207   : > { %v4987_v46 = vpop.permute.xlu1 %1060  ;;  %v4989_v41 = vpop.permute.xlu0 %1204 }
 0x208   : > { %6593 = vst [vmem:[#allocation75_spill] sm:$0xff] %v4987_v46  ;;  %6594 = vst [vmem:[#allocation76_spill] sm:$0xff] %v4989_v41  ;;  %2019 = vrot.lane.b32.xlu1 %v1995_v48, %s4190_s22  ;;  %2125 = vrot.lane.b32.xlu0 %v2096_v13, %s4190_s22 }
 0x209   : > { %3797 = vset.pattern.permute.xlu1 %v6481_v18 }
 0x20b   : > { %v784_v30 = vpop.permute.xlu1 %783  ;;  %v2006_v62 = vpop.permute.xlu0 %2005 }
 0x20c   : > { %vm814_vm11 = vcmp.ne.s32.totalorder %v784_v30, 0  ;;  %2115 = vrot.lane.b32.xlu1 %v2091_v19, %s4190_s22  ;;  %805 = vrot.lane.b32.xlu0 %v777_v25, %s4190_s22  ;;  %vm2036_vm1 = vcmp.ne.s32.totalorder %v2006_v62, 0  ;;  %v776_v30 = vsel %vm760_vm13, 1, %v6481_v18  ;;  %v873_v19 = vsel %vm857_vm9, 1, %v6481_v18  ;;  %v4050_v25 = vpop.eup %4049 }
 0x20d   : > { %vm830_vm0 = vmand %vm734_vm5, %vm814_vm11  ;;  %vm990_vm5 = vcmp.ne.s32.totalorder %v4541_v24, 0  ;;  %v4052_v38 = vpop.eup %4051  ;;  %v5027_v62 = vmul.f32 %v4048_v34, %v4643_v27  ;;  %v5038_v24 = vmul.f32 %v4050_v25, %v4362_v26 }
 0x20e   : > { %vm5015_vm15 = vmand %vm1956_vm12, %vm2036_vm1  ;;  %v4054_v18 = vpop.eup %4053  ;;  %vm2212_vm1 = vcmp.ne.s32.totalorder %v4567_v39, 0  ;;  %vm1986_vm12 = vcmp.ge.f32.partialorder %v5023_v52, 0.0  ;;  %v5055_v20 = vmul.f32 %v4052_v38, %v4352_v22 }
 0x20f   : > { %v880_v48 = vpop.permute.xlu1 %879  ;;  %v2102_v13 = vpop.permute.xlu0 %2101  ;;  %v5052_v25 = vmul.f32 %v4054_v18, %v4530_v16 }
 0x210   : > { %vm910_vm3 = vcmp.ne.s32.totalorder %v880_v48, 0  ;;  %vm2132_vm7 = vcmp.ne.s32.totalorder %v2102_v13, 0  ;;  %803 = vrot.lane.b32.xlu1 %v776_v30, %s4190_s22  ;;  %901 = vrot.lane.b32.xlu0 %v873_v19, %s4190_s22  ;;  %v6486_v48 = vmov 0.0   ;;  %v6599_v30 = vmov 0   ;;  %v4056_v34 = vpop.eup %4055 }
 0x211   : > { %vm926_vm13 = vmand %vm830_vm0, %vm910_vm3  ;;  %v872_v19 = vsel %vm856_vm4, 1, %v6599_v30  ;;  %v4058_v29 = vpop.eup %4057  ;;  %vm717_vm0 = vcmp.le.f32.partialorder %v5038_v24, 7.0 }
 0x212   : > { %vm1006_vm9 = vmand %vm926_vm13, %vm990_vm5  ;;  %v4060_v41 = vpop.eup %4059  ;;  %v5069_v18 = vmul.f32 %v4058_v29, %v4539_v23  ;;  %vm1923_vm13 = vcmp.ge.f32.partialorder %v5055_v20, 0.0 }
 0x213   : > { %v5031_v13 = vsel %vm1006_vm9, 1.0, %v6486_v48  ;;  %vm2148_vm8 = vmand %vm5015_vm15, %vm2132_vm7  ;;  %v5035_v10 = vpop.permute.xlu1 %1199  ;;  %v782_v9 = vpop.permute.xlu0 %781  ;;  %vm701_vm15 = vcmp.ge.f32.partialorder %v5038_v24, 0.0  ;;  %vm2082_vm7 = vcmp.le.f32.partialorder %v5023_v52, 7.0  ;;  %vm1939_vm9 = vcmp.le.f32.partialorder %v5055_v20, 7.0 }
 0x214   : > { %6598 = vst [vmem:[#allocation78_spill] sm:$0xff] %v5035_v10  ;;  %vm2228_vm11 = vmand %vm2148_vm8, %vm2212_vm1  ;;  %899 = vrot.lane.b32.xlu1 %v872_v19, %s4190_s22  ;;  %1269 = vperm.xlu0 %3787, %v5027_v62   ;;  %v5063_v10 = vmul.f32 %v4056_v34, %v4376_v32  ;;  %vm813_vm3 = vcmp.ne.s32.totalorder %v782_v9, 0  ;;  %v4062_v38 = vpop.eup %4061 }
 0x215   : > { %v5045_v39 = vsel %vm2228_vm11, 1.0, %v6486_v48  ;;  %v2002_v48 = vsel %vm1986_vm12, 1, %v6599_v30  ;;  %vm733_vm5 = vmand %vm701_vm15, %vm717_vm0  ;;  %vm763_vm15 = vcmp.ge.f32.partialorder %v5027_v62, 0.0 }
 0x216   : > { %v5049_v6 = vadd.f32 %v5045_v39, %v5031_v13  ;;  %vm829_vm1 = vmand %vm733_vm5, %vm813_vm3  ;;  %vm1926_vm8 = vcmp.ge.f32.partialorder %v5063_v10, 0.0  ;;  %vm1942_vm11 = vcmp.le.f32.partialorder %v5063_v10, 7.0  ;;  %vm1981_vm5 = vcmp.ge.f32.partialorder %v5069_v18, 0.0 }
 0x217   : > { %v5059_v19 = vpop.permute.xlu1 %1214  ;;  %v878_v26 = vpop.permute.xlu0 %877  ;;  %vm1955_vm0 = vmand %vm1923_vm13, %vm1939_vm9  ;;  %v779_v32 = vsel %vm763_vm15, 1, %v6599_v30  ;;  %v1997_v56 = vsel %vm1981_vm5, 1, %v6599_v30 }
 0x218   : > { %6600 = vst [vmem:[#allocation79_spill] sm:$0xff] %v5049_v6  ;;  %6601 = vst [vmem:[#allocation80_spill] sm:$0xff] %v5059_v19  ;;  %1105 = vperm.xlu1 %3797, %v5052_v25   ;;  %2033 = vrot.lane.b32.xlu0 %v2002_v48, %s4190_s22  ;;  %vm909_vm4 = vcmp.ne.s32.totalorder %v878_v26, 0  ;;  %v2098_v48 = vsel %vm2082_vm7, 1, %v6599_v30  ;;  %v5077_v26 = vmul.f32 %v4060_v41, %v4563_v36  ;;  %v6655_v19 = vld [vmem:[#allocation50_spill] sm:$0xff] }
 0x219   : > { %vm925_vm12 = vmand %vm829_vm1, %vm909_vm4  ;;  %v5090_v41 = vmul.f32 %v4062_v38, %v4368_v28  ;;  %vm859_vm1 = vcmp.le.f32.partialorder %v5027_v62, 7.0  ;;  %v2170_v62 = vsel %vm1722_vm14, 1, %v6599_v30  ;;  %vm6611_vm14 = vcmp.gt.f32.partialorder %v4511_v11, 0.0 }
 0x21a   : > { %vm5085_vm6 = vmand %vm1926_vm8, %vm1942_vm11  ;;  %vm2211_vm8 = vcmp.ne.s32.totalorder %v4582_v45, 0  ;;  %v875_v38 = vsel %vm859_vm1, 1, %v6599_v30 }
 0x21b   : > { %v2004_v34 = vpop.permute.xlu1 %2003  ;;  %v2010_v9 = vpop.permute.xlu0 %2009  ;;  %vm5093_vm7 = vmand %vm925_vm12, %vm989_vm10  ;;  %vm2077_vm12 = vcmp.le.f32.partialorder %v5069_v18, 7.0 }
 0x21c   : > { %3798 = vset.pattern.permute.xlu1 %v6560_v43  ;;  %2129 = vrot.lane.b32.xlu0 %v2098_v48, %s4190_s22  ;;  %vm2035_vm3 = vcmp.ne.s32.totalorder %v2004_v34, 0  ;;  %vm2038_vm13 = vcmp.ne.s32.totalorder %v2010_v9, 0  ;;  %v2093_v9 = vsel %vm2077_vm12, 1, %v6599_v30 }
 0x21d   : > { %1264 = vperm.xlu1 %3798, %v5077_v26   ;;  %vm2051_vm4 = vmand %vm1955_vm0, %vm2035_vm3  ;;  %vm704_vm0 = vcmp.ge.f32.partialorder %v5090_v41, 0.0  ;;  %vm720_vm3 = vcmp.le.f32.partialorder %v5090_v41, 7.0 }
 0x21e   : > { %vm2054_vm5 = vmand %vm5085_vm6, %vm2038_vm13  ;;  %vm2214_vm13 = vcmp.ne.s32.totalorder %v4636_v14, 0 }
 0x21f   : > { %v2100_v34 = vpop.permute.xlu1 %2099  ;;  %v2106_v16 = vpop.permute.xlu0 %2105 }
 0x220   : > { %vm2131_vm9 = vcmp.ne.s32.totalorder %v2100_v34, 0  ;;  %809 = vrot.lane.b32.xlu0 %v779_v32, %s4190_s22  ;;  %vm2134_vm11 = vcmp.ne.s32.totalorder %v2106_v16, 0  ;;  %v6606_v32 = vmov 0.0  }
 0x221   : > { %vm2147_vm10 = vmand %vm2051_vm4, %vm2131_vm9  ;;  %2023 = vrot.lane.b32.xlu1 %v1997_v56, %s4190_s22  ;;  %v5113_v45 = vsel %vm5093_vm7, 1.0, %v6606_v32  ;;  %vm762_vm4 = vcmp.ge.f32.partialorder %v5077_v26, 0.0 }
 0x222   : > { %vm2227_vm15 = vmand %vm2147_vm10, %vm2211_vm8  ;;  %3799 = vset.pattern.permute.xlu1 %v6599_v30 }
 0x223   : > { %v3507_v15 = vsel %vm2227_vm15, 1.0, %v6606_v32  ;;  %v788_v0 = vpop.permute.xlu1 %787  ;;  %v5119_v59 = vpop.permute.xlu0 %785  ;;  %vm2150_vm7 = vmand %vm2054_vm5, %vm2134_vm11  ;;  %vm992_vm11 = vcmp.ne.s32.totalorder %v4610_v63, 0  ;;  %vm858_vm15 = vcmp.le.f32.partialorder %v5077_v26, 7.0  ;;  %v2172_v63 = vsel %vm1724_vm2, 1, %v6599_v30 }
 0x224   : > { %v5126_v44 = vpack.i.bf16 %v5045_v39, %v3507_v15  ;;  %v5129_v48 = vadd.f32 %v3507_v15, %v5113_v45  ;;  %905 = vrot.lane.b32.xlu0 %v875_v38, %s4190_s22  ;;  %vm816_vm6 = vcmp.ne.s32.totalorder %v788_v0, 0  ;;  %vm736_vm9 = vmand %vm704_vm0, %vm720_vm3  ;;  %v778_v39 = vsel %vm762_vm4, 1, %v6599_v30  ;;  %v4064_v15 = vpop.eup %4063 }
 0x225   : > { %2119 = vrot.lane.b32.xlu1 %v2093_v9, %s4190_s22  ;;  %vm2230_vm1 = vmand %vm2150_vm7, %vm2214_vm13  ;;  %v874_v0 = vsel %vm858_vm15, 1, %v6599_v30  ;;  %v4066_v38 = vpop.eup %4065  ;;  %vm6614_vm2 = vcmp.gt.f32.partialorder %v4559_v35, 0.0  ;;  %vm703_vm3 = vcmp.ge.f32.partialorder %v4777_v21, 0.0  ;;  %vm719_vm5 = vcmp.le.f32.partialorder %v4777_v21, 7.0 }
 0x226   : > { %6607 = vst [vmem:[#allocation81_spill] sm:$0xff] %v5129_v48  ;;  %vm832_vm8 = vmand %vm736_vm9, %vm816_vm6  ;;  %v5152_v14 = vsel %vm2230_vm1, 1.0, %v6606_v32  ;;  %v4068_v9 = vpop.eup %4067  ;;  %v2176_v6 = vsel %vm6614_vm2, 1, %v6599_v30  ;;  %vm815_vm7 = vcmp.ne.s32.totalorder %v5119_v59, 0  ;;  %v6639_v48 = vld [vmem:[#allocation48_spill] sm:$0xff] }
 0x227   : > { %v884_v16 = vpop.permute.xlu1 %883  ;;  %v882_v4 = vpop.permute.xlu0 %881  ;;  %vm735_vm13 = vmand %vm703_vm3, %vm719_vm5  ;;  %vm991_vm3 = vcmp.ne.s32.totalorder %v6621_v31, 0 }
 0x228   : > { %vm912_vm10 = vcmp.ne.s32.totalorder %v884_v16, 0  ;;  %2193 = vrot.lane.b32.xlu0 %v2170_v62, %s4191_s24  ;;  %v2174_v62 = vsel %vm6611_vm14, 1, %v6599_v30  ;;  %v4070_v58 = vpop.eup %4069  ;;  %vm911_vm6 = vcmp.ne.s32.totalorder %v882_v4, 0 }
 0x229   : > { %vm928_vm12 = vmand %vm832_vm8, %vm912_vm10  ;;  %807 = vrot.lane.b32.xlu1 %v778_v39, %s4190_s22  ;;  %v5176_v39 = vmul.f32 %v4064_v15, %v4588_v50  ;;  %v6615_v15 = vld [vmem:[#allocation13_spill] sm:$0xff]  ;;  %vm6618_vm8 = vcmp.gt.f32.partialorder %v4615_v3, 0.0 }
 0x22a   : > { %vm1008_vm0 = vmand %vm928_vm12, %vm992_vm11 }
 0x22b   : > { %v5155_v29 = vsel %vm1008_vm0, 1.0, %v6606_v32  ;;  %v5157_v34 = vpop.permute.xlu1 %1065  ;;  %v5159_v56 = vpop.permute.xlu0 %1219  ;;  %vm831_vm10 = vmand %vm735_vm13, %vm815_vm7 }
 0x22c   : > { %6608 = vst [vmem:[#allocation82_spill] sm:$0xff] %v5157_v34  ;;  %6609 = vst [vmem:[#allocation83_spill] sm:$0xff] %v5159_v56  ;;  %v5167_v26 = vadd.f32 %v5152_v14, %v5155_v29  ;;  %2197 = vrot.lane.b32.xlu0 %v2172_v63, %s4191_s24  ;;  %v4072_v63 = vpop.eup %4071 }
 0x22d   : > { %903 = vrot.lane.b32.xlu1 %v874_v0, %s4190_s22  ;;  %v5183_v0 = vmul.f32 %v4068_v9, %v4595_v53  ;;  %v6617_v9 = vld [vmem:[#allocation34_spill] sm:$0xff]  ;;  %v4074_v59 = vpop.eup %4073  ;;  %vm927_vm15 = vmand %vm831_vm10, %vm911_vm6 }
 0x22e   : > { %6610 = vst [vmem:[#allocation84_spill] sm:$0xff] %v5167_v26  ;;  %v5189_v26 = vmul.f32 %v4066_v38, %v4391_v37  ;;  %v5200_v52 = vmul.f32 %v4072_v63, %v6617_v9  ;;  %vm5230_vm6 = vmand %vm927_vm15, %vm991_vm3  ;;  %v4076_v4 = vpop.eup %4075 }
 0x22f   : > { %v2014_v16 = vpop.permute.xlu0 %2013  ;;  %6613 = vst [vmem:[#allocation86_spill] sm:$0xff] %v5183_v0  ;;  %vm1983_vm4 = vcmp.ge.f32.partialorder %v5183_v0, 0.0  ;;  %vm2079_vm2 = vcmp.le.f32.partialorder %v5183_v0, 7.0  ;;  %v6660_v0 = vld [vmem:[#allocation47_spill] sm:$0xff] }
 0x230   : > { %v5178_v28 = vpop.permute.xlu1 %1209  ;;  %2201 = vrot.lane.b32.xlu0 %v2174_v62, %s4191_s24  ;;  %v5194_v62 = vmul.f32 %v4070_v58, %v6615_v15  ;;  %vm1925_vm9 = vcmp.ge.f32.partialorder %v5189_v26, 0.0  ;;  %vm1941_vm1 = vcmp.le.f32.partialorder %v5189_v26, 7.0  ;;  %v1999_v38 = vsel %vm1983_vm4, 1, %v6599_v30 }
 0x231   : > { %6612 = vst [vmem:[#allocation85_spill] sm:$0xff] %v5178_v28  ;;  %1115 = vperm.xlu1 %3799, %v5176_v39   ;;  %vm2040_vm0 = vcmp.ne.s32.totalorder %v2014_v16, 0  ;;  %vm5220_vm14 = vmand %vm1925_vm9, %vm1941_vm1  ;;  %v5236_v15 = vmul.f32 %v4074_v59, %v4407_v42  ;;  %vm860_vm3 = vcmp.le.f32.partialorder %v5200_v52, 7.0 }
 0x232   : > { %vm1928_vm11 = vcmp.ge.f32.partialorder %v5194_v62, 0.0  ;;  %vm1944_vm12 = vcmp.le.f32.partialorder %v5194_v62, 7.0 }
 0x233   : > { %v2110_v22 = vpop.permute.xlu0 %2109  ;;  %vm1960_vm5 = vmand %vm1928_vm11, %vm1944_vm12  ;;  %vm706_vm15 = vcmp.ge.f32.partialorder %v5236_v15, 0.0 }
 0x234   : > { %v5196_v50 = vpop.permute.xlu1 %1224  ;;  %2205 = vrot.lane.b32.xlu0 %v2176_v6, %s4191_s24  ;;  %v2178_v6 = vsel %vm6618_vm8, 1, %v6599_v30  ;;  %vm5239_vm4 = vmand %vm1960_vm5, %vm2040_vm0  ;;  %vm2136_vm9 = vcmp.ne.s32.totalorder %v2110_v22, 0  ;;  %vm764_vm8 = vcmp.ge.f32.partialorder %v5200_v52, 0.0  ;;  %vm722_vm0 = vcmp.le.f32.partialorder %v5236_v15, 7.0 }
 0x235   : > { %6616 = vst [vmem:[#allocation87_spill] sm:$0xff] %v5196_v50  ;;  %3800 = vset.pattern.permute.xlu1 %v6560_v43  ;;  %v5257_v22 = vsel %vm5230_vm6, 1.0, %v6606_v32 }
 0x236   : > { %1274 = vperm.xlu1 %3800, %v5200_v52   ;;  %v6635_v52 = vld [vmem:[#allocation36_spill] sm:$0xff] }
 0x237   : > { %v5207_v21 = vpop.permute.xlu0 %789 }
 0x238   : > { %v2008_v40 = vpop.permute.xlu1 %2007  ;;  %2209 = vrot.lane.b32.xlu0 %v2178_v6, %s4191_s24  ;;  %v6624_v6 = vld [vmem:[#allocation45_spill] sm:$0xff] }
 0x239   : > { %vm2037_vm7 = vcmp.ne.s32.totalorder %v2008_v40, 0  ;;  %v2095_v40 = vsel %vm2079_vm2, 1, %v6599_v30 }
 0x23a   : > { %2027 = vrot.lane.b32.xlu1 %v1999_v38, %s4190_s22  ;;  %v6625_v38 = vld [vmem:[#allocation42_spill] sm:$0xff]  ;;  %vm2053_vm1 = vmand %vm5220_vm14, %vm2037_vm7 }
 0x23b   : > { %v5227_v63 = vpop.permute.xlu0 %885  ;;  %3801 = vset.pattern.permute.xlu1 %v6599_v30  ;;  %4079 = vrcp.f32 %v6625_v38  ;;  %v6630_v38 = vld [vmem:[#allocation46_spill] sm:$0xff]  ;;  %vm2152_vm14 = vmand %vm5239_vm4, %vm2136_vm9 }
 0x23c   : > { %v2104_v16 = vpop.permute.xlu1 %2103  ;;  %2421 = vperm.xlu0 %3787, %v6624_v6   ;;  %v6628_v6 = vld [vmem:[#allocation38_spill] sm:$0xff]  ;;  %vm738_vm7 = vmand %vm706_vm15, %vm722_vm0  ;;  %4081 = vrcp.f32 %v6639_v48  ;;  %vm817_vm15 = vcmp.ne.s32.totalorder %v5207_v21, 0 }
 0x23d   : > { %vm2133_vm13 = vcmp.ne.s32.totalorder %v2104_v16, 0  ;;  %vm2213_vm10 = vcmp.ne.s32.totalorder %v6628_v6, 0  ;;  %v6642_v48 = vld [vmem:[#allocation54_spill] sm:$0xff] }
 0x23e   : > { %2123 = vrot.lane.b32.xlu1 %v2095_v40, %s4190_s22  ;;  %vm2149_vm11 = vmand %vm2053_vm1, %vm2133_vm13  ;;  %v780_v40 = vsel %vm764_vm8, 1, %v6599_v30  ;;  %4083 = vrcp.f32 %v6642_v48 }
 0x23f   : > { %v5249_v59 = vpop.permute.xlu0 %1229  ;;  %vm2229_vm12 = vmand %vm2149_vm11, %vm2213_vm10  ;;  %vm705_vm11 = vcmp.ge.f32.partialorder %v4842_v47, 0.0 }
 0x240   : > { %6629 = vst [vmem:[#allocation37_spill] sm:$0xff] %v5249_v59  ;;  %v792_v16 = vpop.permute.xlu1 %791  ;;  %2436 = vperm.xlu0 %3787, %v6630_v38   ;;  %v3509_v58 = vsel %vm2229_vm12, 1.0, %v6606_v32  ;;  %v6632_v38 = vld [vmem:[#allocation40_spill] sm:$0xff]  ;;  %v4078_v59 = vpop.eup %4077  ;;  %vm721_vm12 = vcmp.le.f32.partialorder %v4842_v47, 7.0 }
 0x241   : > { %v5264_v6 = vpack.i.bf16 %v5152_v14, %v3509_v58  ;;  %v5267_v42 = vadd.f32 %v3509_v58, %v5257_v22  ;;  %vm818_vm2 = vcmp.ne.s32.totalorder %v792_v16, 0  ;;  %vm2216_vm5 = vcmp.ne.s32.totalorder %v6632_v38, 0  ;;  %v6633_v14 = vld [vmem:[#allocation52_spill] sm:$0xff]  ;;  %v6634_v58 = vld [vmem:[#allocation41_spill] sm:$0xff] }
 0x242   : > { %811 = vrot.lane.b32.xlu1 %v780_v40, %s4190_s22  ;;  %vm2232_vm6 = vmand %vm2152_vm14, %vm2216_vm5  ;;  %v876_v16 = vsel %vm860_vm3, 1, %v6599_v30  ;;  %vm994_vm9 = vcmp.ne.s32.totalorder %v6634_v58, 0  ;;  %v5281_v40 = vmul.f32 %v4076_v4, %v6635_v52  ;;  %v5293_v58 = vmul.f32 %v4078_v59, %v4643_v27  ;;  %v6641_v27 = vld [vmem:[#allocation16_spill] sm:$0xff] }
 0x243   : > { %6631 = vst [vmem:[#allocation45_spill] sm:$0xff] %v5267_v42  ;;  %v5274_v31 = vpop.permute.xlu0 %2017  ;;  %vm834_vm4 = vmand %vm738_vm7, %vm818_vm2  ;;  %v3512_v42 = vsel %vm2232_vm6, 1.0, %v6606_v32  ;;  %vm913_vm14 = vcmp.ne.s32.totalorder %v5227_v63, 0 }
 0x244   : > { %v888_v37 = vpop.permute.xlu1 %887  ;;  %2446 = vperm.xlu0 %3787, %v6633_v14   ;;  %vm1985_vm10 = vcmp.ge.f32.partialorder %v5281_v40, 0.0  ;;  %vm2081_vm0 = vcmp.le.f32.partialorder %v5281_v40, 7.0  ;;  %vm737_vm2 = vmand %vm705_vm11, %vm721_vm12 }
 0x245   : > { %vm914_vm13 = vcmp.ne.s32.totalorder %v888_v37, 0  ;;  %v6637_v37 = vld [vmem:[#allocation59_spill] sm:$0xff]  ;;  %vm833_vm3 = vmand %vm737_vm2, %vm817_vm15  ;;  %v2097_v21 = vsel %vm2081_vm0, 1, %v6599_v30  ;;  %vm6652_vm2 = vcmp.gt.f32.partialorder %v4539_v23, 0.0 }
 0x246   : > { %vm930_vm1 = vmand %vm834_vm4, %vm914_vm13  ;;  %907 = vrot.lane.b32.xlu1 %v876_v16, %s4190_s22 }
 0x247   : > { %vm1010_vm8 = vmand %vm930_vm1, %vm994_vm9  ;;  %v5283_v38 = vpop.permute.xlu0 %2113 }
 0x248   : > { %v5287_v14 = vsel %vm1010_vm8, 1.0, %v6606_v32  ;;  %v5289_v50 = vpop.permute.xlu1 %1075  ;;  %2456 = vperm.xlu0 %3787, %v6637_v37   ;;  %v4080_v4 = vpop.eup %4079  ;;  %v2001_v37 = vsel %vm1985_vm10, 1, %v6599_v30  ;;  %vm929_vm6 = vmand %vm833_vm3, %vm913_vm14  ;;  %vm6646_vm8 = vcmp.gt.f32.partialorder %v4469_v61, 0.0  ;;  %vm6649_vm14 = vcmp.gt.f32.partialorder %v4501_v7, 0.0 }
 0x249   : > { %6636 = vst [vmem:[#allocation42_spill] sm:$0xff] %v5289_v50  ;;  %v5296_v16 = vadd.f32 %v3512_v42, %v5287_v14  ;;  %vm6654_vm3 = vcmp.gt.f32.partialorder %v4595_v53, 0.0 }
 0x24a   : > { %1125 = vperm.xlu1 %3801, %v5293_v58  }
 0x24b   : > { %6638 = vst [vmem:[#allocation38_spill] sm:$0xff] %v5296_v16  ;;  %v5301_v28 = vpop.permute.xlu0 %793  ;;  %v5310_v16 = vmul.f32 %v4080_v4, %v6641_v27  ;;  %v6643_v4 = vld [vmem:[#allocation61_spill] sm:$0xff] }
 0x24c   : > { %2476 = vperm.xlu0 %3787, %v4913_v8   ;;  %4085 = vrcp.f32 %v6643_v4 }
 0x24d   : > { %v5306_v59 = vpop.permute.xlu1 %1234  ;;  %vm1927_vm5 = vcmp.ge.f32.partialorder %v5310_v16, 0.0  ;;  %vm1943_vm7 = vcmp.le.f32.partialorder %v5310_v16, 7.0 }
 0x24e   : > { %6640 = vst [vmem:[#allocation46_spill] sm:$0xff] %v5306_v59  ;;  %2031 = vrot.lane.b32.xlu1 %v2001_v37, %s4190_s22  ;;  %v6645_v37 = vld [vmem:[#allocation44_spill] sm:$0xff]  ;;  %vm1959_vm9 = vmand %vm1927_vm5, %vm1943_vm7  ;;  %vm6656_vm5 = vcmp.gt.f32.partialorder %v6635_v52, 0.0 }
 0x24f   : > { %v5317_v8 = vpop.permute.xlu0 %889  ;;  %vm993_vm13 = vcmp.ne.s32.totalorder %v6645_v37, 0  ;;  %v4082_v37 = vpop.eup %4081 }
 0x250   : > { %3803 = vset.pattern.permute.xlu0 %v6599_v30  ;;  %vm1009_vm1 = vmand %vm929_vm6, %vm993_vm13  ;;  %v4084_v56 = vpop.eup %4083  ;;  %vm723_vm13 = vcmp.le.f32.partialorder %v4900_v5, 7.0 }
 0x251   : > { %v2012_v47 = vpop.permute.xlu1 %2011  ;;  %1055 = vperm.xlu0 %3803, %v5038_v24   ;;  %v2169_v24 = vsel %vm6646_vm8, 1, %v6599_v30  ;;  %v5339_v27 = vsel %vm1009_vm1, 1.0, %v6606_v32 }
 0x252   : > { %2127 = vrot.lane.b32.xlu1 %v2097_v21, %s4190_s22  ;;  %vm2039_vm4 = vcmp.ne.s32.totalorder %v2012_v47, 0  ;;  %v6647_v21 = vld [vmem:[#allocation43_spill] sm:$0xff]  ;;  %v6648_v47 = vld [vmem:[#allocation68_spill] sm:$0xff]  ;;  %s4196_s22 = smov [#allocation2]  }
 0x253   : > { %v5326_v63 = vpop.permute.xlu0 %1239  ;;  %vm2055_vm10 = vmand %vm1959_vm9, %vm2039_vm4  ;;  %vm2215_vm12 = vcmp.ne.s32.totalorder %v6647_v21, 0  ;;  %4087 = vrcp.f32 %v6648_v47  ;;  %v6651_v47 = vld [vmem:[#allocation18_spill] sm:$0xff]  ;;  %vm707_vm4 = vcmp.ge.f32.partialorder %v4900_v5, 0.0  ;;  %v5487_v5 = vpack.i.bf16 %v5155_v29, %v5257_v22  ;;  %v6672_v29 = vld [vmem:[#allocation51_spill] sm:$0xff] }
 0x254   : > { %6644 = vst [vmem:[#allocation40_spill] sm:$0xff] %v5326_v63  ;;  %4089 = vrcp.f32 %v4920_v55  ;;  %v5356_v59 = vmul.f32 %v4082_v37, %v6651_v47  ;;  %v5370_v55 = vmul.f32 %v4084_v56, %v4483_v2  ;;  %v2175_v47 = vsel %vm6654_vm3, 1, %v6599_v30 }
 0x255   : > { %v2108_v48 = vpop.permute.xlu1 %2107  ;;  %1070 = vperm.xlu0 %3803, %v5090_v41   ;;  %4091 = vrcp.f32 %v6655_v19  ;;  %v2177_v56 = vsel %vm6656_vm5, 1, %v6599_v30 }
 0x256   : > { %vm2135_vm11 = vcmp.ne.s32.totalorder %v2108_v48, 0  ;;  %2191 = vrot.lane.b32.xlu1 %v2169_v24, %s4191_s24  ;;  %v2171_v48 = vsel %vm6649_vm14, 1, %v6599_v30  ;;  %vm708_vm7 = vcmp.ge.f32.partialorder %v5356_v59, 0.0  ;;  %vm724_vm6 = vcmp.le.f32.partialorder %v5356_v59, 7.0 }
 0x257   : > { %vm2151_vm15 = vmand %vm2055_vm10, %vm2135_vm11  ;;  %v5336_v4 = vpop.permute.xlu0 %2021  ;;  %vm819_vm11 = vcmp.ne.s32.totalorder %v5301_v28, 0  ;;  %v6671_v28 = vld [vmem:[#allocation49_spill] sm:$0xff] }
 0x258   : > { %vm2231_vm0 = vmand %vm2151_vm15, %vm2215_vm12  ;;  %vm915_vm12 = vcmp.ne.s32.totalorder %v5317_v8, 0  ;;  %vm996_vm5 = vcmp.ne.s32.totalorder %v6671_v28, 0  ;;  %v6673_v8 = vld [vmem:[#allocation72_spill] sm:$0xff] }
 0x259   : > { %v3511_v41 = vsel %vm2231_vm0, 1.0, %v6606_v32  ;;  %v5342_v63 = vpop.permute.xlu1 %795  ;;  %1080 = vperm.xlu0 %3803, %v5236_v15   ;;  %v4086_v37 = vpop.eup %4085  ;;  %vm740_vm1 = vmand %vm708_vm7, %vm724_vm6  ;;  %v3975_v28 = vld [vmem:[%s4300_s21 + $0x38] sm:$0xff]  }
 0x25a   : > { %v5348_v24 = vpack.i.bf16 %v3512_v42, %v3511_v41  ;;  %v5351_v21 = vadd.f32 %v3511_v41, %v5339_v27  ;;  %2195 = vrot.lane.b32.xlu1 %v2171_v48, %s4191_s24  ;;  %v2173_v42 = vsel %vm6652_vm2, 1, %v6599_v30  ;;  %vm820_vm9 = vcmp.ne.s32.totalorder %v5342_v63, 0  ;;  %vm739_vm10 = vmand %vm707_vm4, %vm723_vm13  ;;  %3674 = vmatprep.subr.bf16.mxu0 %v3975_v28 }
 0x25b   : > { %v5358_v50 = vpop.permute.xlu0 %2117  ;;  %vm836_vm15 = vmand %vm740_vm1, %vm820_vm9  ;;  %vm711_vm4 = vcmp.ge.f32.partialorder %v5052_v25, 0.0  ;;  %vm727_vm13 = vcmp.le.f32.partialorder %v5052_v25, 7.0  ;;  %vm995_vm9 = vcmp.ne.s32.totalorder %v6672_v29, 0  ;;  %v6679_v29 = vld [vmem:[#allocation66_spill] sm:$0xff]  ;;  %3675 = vmatpush3.bf16.msra.mxu0 %v3975_v28 }
 0x25c   : > { %6650 = vst [vmem:[#allocation52_spill] sm:$0xff] %v5351_v21  ;;  %vm835_vm14 = vmand %vm739_vm10, %vm819_vm11  ;;  %v3979_v28 = vld [vmem:[%s4300_s21 + $0x28] sm:$0xff]  }
 0x25d   : > { %v5360_v15 = vpop.permute.xlu1 %891  ;;  %1090 = vperm.xlu0 %3803, %v5356_v59   ;;  %vm931_vm7 = vmand %vm835_vm14, %vm915_vm12 }
 0x25e   : > { %2199 = vrot.lane.b32.xlu1 %v2173_v42, %s4191_s24  ;;  %v5382_v42 = vmul.f32 %v4086_v37, %v4515_v12  ;;  %v6659_v12 = vld [vmem:[#allocation57_spill] sm:$0xff]  ;;  %vm916_vm8 = vcmp.ne.s32.totalorder %v5360_v15, 0  ;;  %vm1011_vm10 = vmand %vm931_vm7, %vm995_vm9 }
 0x25f   : > { %v5367_v41 = vpop.permute.xlu0 %797  ;;  %4093 = vrcp.f32 %v6659_v12  ;;  %v6662_v12 = vld [vmem:[#allocation53_spill] sm:$0xff]  ;;  %vm932_vm0 = vmand %vm836_vm15, %vm916_vm8  ;;  %v5510_v25 = vsel %vm1011_vm10, 1.0, %v6606_v32 }
 0x260   : > { %v4088_v34 = vpop.eup %4087  ;;  %4095 = vrcp.f32 %v6660_v0  ;;  %vm712_vm2 = vcmp.ge.f32.partialorder %v5382_v42, 0.0  ;;  %vm728_vm3 = vcmp.le.f32.partialorder %v5382_v42, 7.0  ;;  %vm1012_vm6 = vmand %vm932_vm0, %vm996_vm5  ;;  %6675 = vst [vmem:[#allocation50_spill] sm:$0xff] %v5510_v25 }
 0x261   : > { %v5372_v48 = vpop.permute.xlu1 %1085  ;;  %1100 = vperm.xlu0 %3803, %v5370_v55   ;;  %v4090_v37 = vpop.eup %4089  ;;  %vm744_vm1 = vmand %vm712_vm2, %vm728_vm3 }
 0x262   : > { %6653 = vst [vmem:[#allocation41_spill] sm:$0xff] %v5372_v48  ;;  %2203 = vrot.lane.b32.xlu1 %v2175_v47, %s4191_s24  ;;  %v5395_v47 = vmul.f32 %v4088_v34, %v4563_v36  ;;  %vm743_vm11 = vmand %vm711_vm4, %vm727_vm13 }
 0x263   : > { %v5379_v21 = vpop.permute.xlu0 %893 }
 0x265   : > { %1110 = vperm.xlu0 %3803, %v5382_v42   ;;  %v5504_v42 = vsel %vm1012_vm6, 1.0, %v6606_v32 }
 0x266   : > { %v5389_v2 = vpop.permute.xlu1 %1244  ;;  %2207 = vrot.lane.b32.xlu1 %v2177_v56, %s4191_s24  ;;  %v5406_v56 = vmul.f32 %v4090_v37, %v6617_v9  ;;  %v6664_v37 = vld [vmem:[#allocation60_spill] sm:$0xff]  ;;  %s4115_s24 = sshll.u32 %s4196_s22, 4  ;;  %s4116_s24 = int_to_ptr.vmem [resolvable:$false] %s4115_s24 }
 0x267   : > { %6657 = vst [vmem:[#allocation59_spill] sm:$0xff] %v5389_v2  ;;  %v5392_v48 = vpop.permute.xlu0 %1249  ;;  %p4118_p1 = scmp.lt.s32.totalorder %s6394_s11, %s4116_s24 }
 0x268   : > { %6658 = vst [vmem:[#allocation48_spill] sm:$0xff] %v5392_v48  ;;  %v6661_v48 = vld [vmem:[#allocation63_spill] sm:$0xff]  ;;  %vm732_vm10 = vcmp.le.f32.partialorder %v5406_v56, 7.0 }
 0x269   : > { %1120 = vperm.xlu0 %3803, %v5395_v47   ;;  %4097 = vrcp.f32 %v6661_v48 }
 0x26a   : > { %v5399_v19 = vpop.permute.xlu1 %2015  ;;  %2277 = vperm.xlu1 %3801, %v5055_v20   ;;  %4099 = vrcp.f32 %v6662_v12  ;;  %v4092_v20 = vpop.eup %4091 }
 0x26b   : > { %v5403_v46 = vpop.permute.xlu0 %2025  ;;  %4101 = vrcp.f32 %v6664_v37  ;;  %v5424_v9 = vmul.f32 %v4092_v20, %v4469_v61 }
 0x26c   : > { %v4094_v2 = vpop.eup %4093 }
 0x26d   : > { %1130 = vperm.xlu0 %3803, %v5406_v56   ;;  %v5433_v35 = vmul.f32 %v4094_v2, %v4501_v7 }
 0x26e   : > { %v5410_v34 = vpop.permute.xlu1 %2111  ;;  %2287 = vperm.xlu1 %3801, %v5189_v26  }
 0x26f   : > { %v5414_v36 = vpop.permute.xlu0 %2121 }
 0x270   : > { %6663 = vst [vmem:[#allocation54_spill] sm:$0xff] %v5414_v36 }
 0x271   : > { %2282 = vperm.xlu0 %3803, %v4984_v49   ;;  %v4096_v49 = vpop.eup %4095 }
 0x272   : > { %v5417_v0 = vpop.permute.xlu1 %799  ;;  %2297 = vperm.xlu1 %3801, %v5310_v16   ;;  %v5440_v20 = vmul.f32 %v4096_v49, %v4446_v54 }
 0x273   : > { %v5421_v48 = vpop.permute.xlu0 %801 }
 0x274   : > { %vm823_vm12 = vcmp.ne.s32.totalorder %v5421_v48, 0 }
 0x275   : > { %2292 = vperm.xlu0 %3803, %v5063_v10   ;;  %vm839_vm3 = vmand %vm743_vm11, %vm823_vm12  ;;  %vm715_vm11 = vcmp.ge.f32.partialorder %v5293_v58, 0.0  ;;  %vm731_vm12 = vcmp.le.f32.partialorder %v5293_v58, 7.0  ;;  %v6688_v58 = vmov 0 }
 0x276   : > { %v5427_v26 = vpop.permute.xlu1 %895  ;;  %2307 = vperm.xlu1 %3801, %v5424_v9   ;;  %v4098_v16 = vpop.eup %4097 }
 0x277   : > { %v5430_v12 = vpop.permute.xlu0 %897  ;;  %v4100_v61 = vpop.eup %4099  ;;  %v5445_v36 = vmul.f32 %v4098_v16, %v4539_v23  ;;  %v6668_v23 = vld [vmem:[#allocation39_spill] sm:$0xff] }
 0x278   : > { %v5450_v2 = vmul.f32 %v4100_v61, %v4479_v1  ;;  %v5474_v61 = vpack.i.bf16 %v5031_v13, %v5113_v45  ;;  %v6670_v45 = vld [vmem:[#allocation64_spill] sm:$0xff]  ;;  %vm919_vm0 = vcmp.ne.s32.totalorder %v5430_v12, 0  ;;  %v6678_v12 = vld [vmem:[#allocation65_spill] sm:$0xff] }
 0x279   : > { %2302 = vperm.xlu0 %3803, %v5194_v62   ;;  %vm935_vm7 = vmand %vm839_vm3, %vm919_vm0  ;;  %vm999_vm4 = vcmp.ne.s32.totalorder %v6678_v12, 0 }
 0x27a   : > { %v5436_v37 = vpop.permute.xlu1 %1095  ;;  %2317 = vperm.xlu1 %3801, %v5433_v35   ;;  %vm1015_vm13 = vmand %vm935_vm7, %vm999_vm4  ;;  %vm1930_vm7 = vcmp.ge.f32.partialorder %v5440_v20, 0.0 }
 0x27b   : > { %6665 = vst [vmem:[#allocation61_spill] sm:$0xff] %v5436_v37  ;;  %v5442_v10 = vpop.permute.xlu0 %1259  ;;  %v4102_v37 = vpop.eup %4101  ;;  %v5533_v12 = vsel %vm1015_vm13, 1.0, %v6606_v32 }
 0x27c   : > { %6666 = vst [vmem:[#allocation44_spill] sm:$0xff] %v5442_v10  ;;  %v5459_v49 = vmul.f32 %v4102_v37, %v4511_v11  ;;  %v6669_v37 = vld [vmem:[#allocation55_spill] sm:$0xff]  ;;  %6682 = vst [vmem:[#allocation53_spill] sm:$0xff] %v5533_v12  ;;  %v6683_v10 = vld [vmem:[#allocation73_spill] sm:$0xff] }
 0x27d   : > { %2312 = vperm.xlu0 %3803, %v5440_v20   ;;  %v3977_v11 = vld [vmem:[%s4300_s21 + $0x30] sm:$0xff]   ;;  %4103 = vrcp.f32 %v6683_v10  ;;  %v3835_v10 = vpack.i.bf16 %v5287_v14, %v5339_v27 }
 0x27e   : > { %2327 = vperm.xlu1 %3801, %v5445_v36   ;;  %3676 = vmatprep.subr.bf16.mxu0 %v3977_v11 }
 0x27f   : > { %v5452_v62 = vpop.permute.xlu1 %1254  ;;  %v5454_v7 = vpop.permute.xlu0 %2029  ;;  %3677 = vmatpush3.bf16.msra.mxu0 %v3977_v11  ;;  %v3981_v11 = vld [vmem:[%s4300_s21 + $0x20] sm:$0xff]  }
 0x280   : > { %6667 = vst [vmem:[#allocation43_spill] sm:$0xff] %v5452_v62  ;;  %3678 = vmatprep.subr.bf16.mxu0 %v3979_v28 }
 0x281   : > { %2322 = vperm.xlu0 %3803, %v5450_v2  }
 0x282   : > { %3802 = vset.pattern.permute.xlu1 %v6560_v43 }
 0x283   : > { %v5461_v16 = vpop.permute.xlu1 %2019  ;;  %2426 = vperm.xlu1 %3802, %v6668_v23   ;;  %v5464_v54 = vpop.permute.xlu0 %2125  ;;  %3679 = vmatpush3.bf16.msra.mxu0 %v3979_v28 }
 0x284   : > { %3680 = vmatprep.subr.bf16.mxu0 %v3981_v11 }
 0x285   : > { %2332 = vperm.xlu0 %3803, %v5459_v49  }
 0x287   : > { %v5477_v23 = vpop.permute.xlu1 %2115  ;;  %2431 = vperm.xlu1 %3802, %v6669_v37   ;;  %v5480_v59 = vpop.permute.xlu0 %805  ;;  %v3850_v37 = vpack.i.bf16 %v5504_v42, %v5510_v25  ;;  %3681 = vmatpush3.bf16.msra.mxu0 %v3981_v11 }
 0x289   : > { %3805 = vperm.xlu0 %3803, %v5474_v61  }
 0x28a   : > { %v4104_v25 = vpop.eup %4103 }
 0x28b   : > { %v804_v13 = vpop.permute.xlu1 %803  ;;  %2441 = vperm.xlu1 %3802, %v6670_v45   ;;  %v5492_v63 = vpop.permute.xlu0 %901  ;;  %v6677_v45 = vld [vmem:[#allocation62_spill] sm:$0xff]  ;;  %v5577_v11 = vmul.f32 %v4104_v25, %v4615_v3 }
 0x28c   : > { %vm824_vm8 = vcmp.ne.s32.totalorder %v804_v13, 0  ;;  %vm1000_vm5 = vcmp.ne.s32.totalorder %v6677_v45, 0  ;;  %v3976_v45 = vld [vmem:[%s4300_s21 + $0x18] sm:$0xff]  }
 0x28d   : > { %3826 = vrot.lane.b32.xlu0 %v5487_v5, %s4194_s26  ;;  %vm840_vm14 = vmand %vm744_vm1, %vm824_vm8  ;;  %3698 = vmatprep.subr.bf16.mxu1 %v3976_v45  ;;  %vm1938_vm9 = vcmp.ge.f32.partialorder %v5577_v11, 0.0  ;;  %vm1954_vm1 = vcmp.le.f32.partialorder %v5577_v11, 7.0  ;;  %vm716_vm8 = vcmp.ge.f32.partialorder %v5406_v56, 0.0 }
 0x28e   : > { %3699 = vmatpush3.bf16.msra.mxu1 %v3976_v45  ;;  %v3980_v45 = vld [vmem:[%s4300_s21 + $0x8] sm:$0xff]  }
 0x28f   : > { %v900_v22 = vpop.permute.xlu1 %899  ;;  %2451 = vperm.xlu1 %3802, %v6673_v8   ;;  %v5501_v15 = vpop.permute.xlu0 %1269 }
 0x290   : > { %6674 = vst [vmem:[#allocation68_spill] sm:$0xff] %v5501_v15  ;;  %vm920_vm15 = vcmp.ne.s32.totalorder %v900_v22, 0 }
 0x291   : > { %3831 = vperm.xlu0 %3803, %v5264_v6   ;;  %vm936_vm2 = vmand %vm840_vm14, %vm920_vm15 }
 0x292   : > { %vm1016_vm6 = vmand %vm936_vm2, %vm1000_vm5 }
 0x293   : > { %v5514_v13 = vpop.permute.xlu1 %1105  ;;  %2461 = vperm.xlu1 %3802, %v4965_v57   ;;  %v5517_v48 = vpop.permute.xlu0 %2033  ;;  %v5526_v8 = vsel %vm1016_vm6, 1.0, %v6606_v32  ;;  %vm1970_vm15 = vmand %vm1938_vm9, %vm1954_vm1  ;;  %vm1946_vm6 = vcmp.le.f32.partialorder %v5440_v20, 7.0 }
 0x294   : > { %6676 = vst [vmem:[#allocation57_spill] sm:$0xff] %v5514_v13  ;;  %6680 = vst [vmem:[#allocation47_spill] sm:$0xff] %v5526_v8  ;;  %v3982_v13 = vld [vmem:[%s4300_s21] sm:$0xff]   ;;  %vm2050_vm3 = vcmp.ne.s32.totalorder %v5517_v48, 0 }
 0x295   : > { %3851 = vperm.xlu0 %3803, %v3850_v37   ;;  %vm5593_vm2 = vmand %vm716_vm8, %vm732_vm10  ;;  %vm1003_vm10 = vcmp.ne.s32.totalorder %v4973_v33, 0  ;;  %v6695_v33 = vld [vmem:[#allocation74_spill] sm:$0xff] }
 0x296   : > { %vm747_vm5 = vmand %vm715_vm11, %vm731_vm12 }
 0x297   : > { %2466 = vperm.xlu1 %3802, %v6679_v29   ;;  %v5523_v22 = vpop.permute.xlu0 %2129  ;;  %v3875_v29 = vpack.i.bf16 %v5526_v8, %v5533_v12  ;;  %vm2066_vm1 = vmand %vm1970_vm15, %vm2050_vm3  ;;  %vm725_vm15 = vcmp.le.f32.partialorder %v4959_v17, 7.0 }
 0x298   : > { %v5528_v57 = vpop.permute.xlu1 %1264  ;;  %vm2146_vm4 = vcmp.ne.s32.totalorder %v5523_v22, 0 }
 0x299   : > { %6681 = vst [vmem:[#allocation63_spill] sm:$0xff] %v5528_v57  ;;  %3856 = vrot.lane.b32.xlu0 %v3850_v37, %s4194_s26  ;;  %v3978_v37 = vld [vmem:[%s4300_s21 + $0x10] sm:$0xff]   ;;  %vm2162_vm11 = vmand %vm2066_vm1, %vm2146_vm4  ;;  %vm710_vm1 = vcmp.ge.f32.partialorder %v5370_v55, 0.0  ;;  %s4111_s21 = scalar_lea.vmem %s6394_s11, 2048 }
 0x29a   : > { %3700 = vmatprep.subr.bf16.mxu1 %v3978_v37  ;;  %p4112_p12 = scmp.ne.s32.totalorder %s6394_s11, %s4111_s21 }
 0x29b   : > { %2471 = vperm.xlu1 %3802, %v5069_v18   ;;  %v5539_v1 = vpop.permute.xlu0 %809  ;;  %3701 = vmatpush3.bf16.msra.mxu1 %v3978_v37 }
 0x29c   : > { %v5541_v57 = vpop.permute.xlu1 %2023  ;;  %3702 = vmatprep.subr.bf16.mxu1 %v3980_v45  ;;  %vm827_vm0 = vcmp.ne.s32.totalorder %v5539_v1, 0  ;;  %p4113_p13 = pnand %p4112_p12, %p4264_p4 }
 0x29d   : > { %3876 = vperm.xlu0 %3803, %v3875_v29   ;;  %vm843_vm13 = vmand %vm747_vm5, %vm827_vm0 }
 0x29e   : > { %p4114_p0 = pneg %p4113_p13 }
 0x29f   : > { %3810 = vrot.lane.b32.xlu1 %v5474_v61, %s4194_s26  ;;  %v906_v15 = vpop.permute.xlu0 %905  ;;  %3703 = vmatpush3.bf16.msra.mxu1 %v3980_v45 }
 0x2a0   : > { %v5547_v18 = vpop.permute.xlu1 %2119  ;;  %3814 = vset.pattern.permute.xlu1 %v6599_v30  ;;  %3704 = vmatprep.subr.bf16.mxu1 %v3982_v13  ;;  %vm923_vm14 = vcmp.ne.s32.totalorder %v906_v15, 0  ;;  %v6703_v15 = vmov 0 }
 0x2a1   : > { %3881 = vrot.lane.b32.xlu0 %v3875_v29, %s4194_s26  ;;  %vm939_vm9 = vmand %vm843_vm13, %vm923_vm14  ;;  %vm1948_vm14 = vcmp.le.f32.partialorder %v5450_v2, 7.0  ;;  %vm1004_vm13 = vcmp.ne.s32.totalorder %v6695_v33, 0 }
 0x2a2   : > { %vm5610_vm0 = vmand %vm939_vm9, %vm1003_vm10  ;;  %vm1945_vm9 = vcmp.le.f32.partialorder %v5424_v9, 7.0 }
 0x2a3   : > { %3816 = vperm.xlu1 %3814, %v5126_v44   ;;  %v5555_v62 = vpop.permute.xlu0 %2193  ;;  %3705 = vmatpush3.bf16.msra.mxu1 %v3982_v13  ;;  %v6686_v13 = vmov 0 }
 0x2a4   : > { %v5557_v61 = vpop.permute.xlu1 %807  ;;  %v6687_v13 = vsel %vm5593_vm2, 4294967295, %v6686_v13  ;;  %vm5604_vm2 = vmand %vm1930_vm7, %vm1946_vm6 }
 0x2a5   : > { %v6689_v58 = vsel %vm5604_vm2, 4294967295, %v6688_v58  ;;  %vm6694_vm7 = vnez %v6687_v13  ;;  %vm2042_vm2 = vcmp.ne.s32.totalorder %v5274_v31, 0  ;;  %v5641_v13 = vsel %vm5610_vm0, 1.0, %v6606_v32 }
 0x2a7   : > { %3821 = vperm.xlu1 %3814, %v5487_v5   ;;  %v5561_v29 = vpop.permute.xlu0 %2197 }
 0x2a8   : > { %v5563_v37 = vpop.permute.xlu1 %903 }
 0x2ab   : > { %3836 = vperm.xlu1 %3814, %v3835_v10   ;;  %v5567_v28 = vpop.permute.xlu0 %2201 }
 0x2ac   : > { %v5569_v12 = vpop.permute.xlu1 %1115 }
 0x2ad   : > { %6684 = vst [vmem:[#allocation60_spill] sm:$0xff] %v5569_v12 }
 0x2af   : > { %3841 = vrot.lane.b32.xlu1 %v3835_v10, %s4194_s26  ;;  %v5572_v45 = vpop.permute.xlu0 %2205 }
 0x2b1   : > { %v5574_v5 = vpop.permute.xlu1 %1274 }
 0x2b2   : > { %6685 = vst [vmem:[#allocation39_spill] sm:$0xff] %v5574_v5 }
 0x2b3   : > { %3846 = vperm.xlu1 %3814, %v5348_v24   ;;  %v2210_v8 = vpop.permute.xlu0 %2209 }
 0x2b4   : > { %vm2226_vm8 = vcmp.ne.s32.totalorder %v2210_v8, 0 }
 0x2b5   : > { %v5580_v27 = vpop.permute.xlu1 %2027  ;;  %vm5614_vm5 = vmand %vm2162_vm11, %vm2226_vm8  ;;  %vm726_vm8 = vcmp.le.f32.partialorder %v5370_v55, 7.0  ;;  %vm709_vm11 = vcmp.ge.f32.partialorder %v4959_v17, 0.0  ;;  %v6708_v17 = vmov 0  ;;  %v6722_v55 = vmov 0 }
 0x2b6   : > { %vm5662_vm0 = vmand %vm710_vm1, %vm726_vm8  ;;  %vm917_vm1 = vcmp.ne.s32.totalorder %v5379_v21, 0  ;;  %vm1931_vm8 = vcmp.ge.f32.partialorder %v5433_v35, 0.0 }
 0x2b7   : > { %v5584_v14 = vpop.permute.xlu0 %2421  ;;  %v6704_v15 = vsel %vm5662_vm0, 4294967295, %v6703_v15 }
 0x2b9   : > { %v5591_v25 = vpop.permute.xlu1 %2123 }
 0x2bb   : > { %v5598_v10 = vpop.permute.xlu0 %2436 }
 0x2bd   : > { %v812_v1 = vpop.permute.xlu1 %811 }
 0x2be   : > { %vm828_vm12 = vcmp.ne.s32.totalorder %v812_v1, 0  ;;  %v5646_v1 = vsel %vm5614_vm5, 1.0, %v6606_v32  ;;  %vm741_vm5 = vmand %vm709_vm11, %vm725_vm15  ;;  %vm2044_vm11 = vcmp.ne.s32.totalorder %v5336_v4, 0  ;;  %v6715_v4 = vmov 0 }
 0x2bf   : > { %v5608_v56 = vpop.permute.xlu0 %2446  ;;  %vm844_vm6 = vmand %vm6694_vm7, %vm828_vm12  ;;  %vm6696_vm12 = vcmp.ge.f32.partialorder %v5450_v2, 0.0  ;;  %v6701_v2 = vmov 0 }
 0x2c0   : > { %vm5634_vm7 = vmand %vm6696_vm12, %vm1948_vm14  ;;  %vm6700_vm14 = vcmp.ge.f32.partialorder %v5424_v9, 0.0 }
 0x2c1   : > { %v908_v48 = vpop.permute.xlu1 %907 }
 0x2c2   : > { %vm924_vm4 = vcmp.ne.s32.totalorder %v908_v48, 0 }
 0x2c3   : > { %vm940_vm10 = vmand %vm844_vm6, %vm924_vm4  ;;  %v5627_v22 = vpop.permute.xlu0 %2456  ;;  %vm2138_vm6 = vcmp.ne.s32.totalorder %v5283_v38, 0  ;;  %v6714_v38 = vld [vmem:[#allocation58_spill] sm:$0xff] }
 0x2c4   : > { %vm1020_vm3 = vmand %vm940_vm10, %vm1004_vm13  ;;  %vm6707_vm13 = vnez %v6689_v58  ;;  %vm1947_vm10 = vcmp.le.f32.partialorder %v5433_v35, 7.0 }
 0x2c5   : > { %v3488_v48 = vsel %vm1020_vm3, 1.0, %v6606_v32  ;;  %v5649_v33 = vpop.permute.xlu1 %1125  ;;  %vm5656_vm4 = vmand %vm6700_vm14, %vm1945_vm9  ;;  %vm821_vm3 = vcmp.ne.s32.totalorder %v5367_v41, 0  ;;  %vm822_vm14 = vcmp.ne.s32.totalorder %v5417_v0, 0  ;;  %v6718_v41 = vmov 0 }
 0x2c6   : > { %6699 = vst [vmem:[#allocation55_spill] sm:$0xff] %v5649_v33  ;;  %v6702_v2 = vsel %vm5656_vm4, 4294967295, %v6701_v2  ;;  %v3896_v20 = vpack.i.bf16 %v3488_v48, %v5641_v13  ;;  %v5668_v3 = vadd.f32 %v5646_v1, %v3488_v48  ;;  %v6706_v33 = vld [vmem:[#allocation70_spill] sm:$0xff]  ;;  %vm2058_vm9 = vmand %vm6707_vm13, %vm2042_vm2  ;;  %vm2140_vm2 = vcmp.ne.s32.totalorder %v5358_v50, 0 }
 0x2c7   : > { %4105 = vrcp.f32 %v6706_v33  ;;  %v5674_v9 = vpop.permute.xlu0 %2476  ;;  %vm5686_vm15 = vmand %vm2058_vm9, %vm2138_vm6  ;;  %vm918_vm4 = vcmp.ne.s32.totalorder %v5427_v26, 0  ;;  %vm2041_vm9 = vcmp.ne.s32.totalorder %v5399_v19, 0 }
 0x2c8   : > { %6705 = vst [vmem:[#allocation64_spill] sm:$0xff] %v5668_v3  ;;  %3897 = vperm.xlu0 %3803, %v3896_v20   ;;  %4107 = vrcp.f32 %v4956_v60  ;;  %v6709_v17 = vsel %vm5686_vm15, 4294967295, %v6708_v17  ;;  %vm837_vm12 = vmand %vm741_vm5, %vm821_vm3  ;;  %vm730_vm5 = vcmp.le.f32.partialorder %v5395_v47, 7.0  ;;  %vm997_vm3 = vcmp.ne.s32.totalorder %v6714_v38, 0  ;;  %v6736_v60 = vld [vmem:[#allocation69_spill] sm:$0xff] }
 0x2c9   : > { %v5691_v31 = vpop.permute.xlu1 %2031  ;;  %vm5695_vm13 = vmand %vm837_vm12, %vm917_vm1  ;;  %vm713_vm12 = vcmp.ge.f32.partialorder %v5176_v39, 0.0  ;;  %vm2218_vm15 = vcmp.ne.s32.totalorder %v5555_v62, 0 }
 0x2ca   : > { %vm5700_vm0 = vmand %vm1931_vm8, %vm1947_vm10  ;;  %vm2137_vm8 = vcmp.ne.s32.totalorder %v5410_v34, 0  ;;  %v6724_v34 = vld [vmem:[#allocation56_spill] sm:$0xff] }
 0x2cb   : > { %vm2060_vm6 = vmand %vm5634_vm7, %vm2044_vm11  ;;  %vm6717_vm7 = vnez %v6704_v15 }
 0x2cc   : > { %3902 = vrot.lane.b32.xlu0 %v3896_v20, %s4194_s26  ;;  %v5710_v50 = vpop.permute.xlu0 %1055  ;;  %vm5713_vm1 = vmand %vm2060_vm6, %vm2140_vm2  ;;  %vm729_vm6 = vcmp.le.f32.partialorder %v5176_v39, 7.0  ;;  %v6735_v20 = vld [vmem:[#allocation67_spill] sm:$0xff] }
 0x2cd   : > { %v6716_v4 = vsel %vm5713_vm1, 4294967295, %v6715_v4  ;;  %vm838_vm10 = vmand %vm6717_vm7, %vm822_vm14  ;;  %v5720_v21 = vpop.permute.xlu1 %2127  ;;  %3906 = vset.pattern.permute.xlu0 %v6560_v43  ;;  %vm6720_vm14 = vnez %v6702_v2  ;;  %4109 = vrcp.f32 %v6735_v20 }
 0x2ce   : > { %vm5725_vm11 = vmand %vm5695_vm13, %vm997_vm3  ;;  %vm6721_vm13 = vcmp.ge.f32.partialorder %v5395_v47, 0.0 }
 0x2cf   : > { %v6719_v41 = vsel %vm5725_vm11, 4294967295, %v6718_v41  ;;  %vm934_vm2 = vmand %vm838_vm10, %vm918_vm4  ;;  %vm998_vm4 = vcmp.ne.s32.totalorder %v6724_v34, 0 }
 0x2d0   : > { %vm2057_vm7 = vmand %vm6720_vm14, %vm2041_vm9  ;;  %2486 = vperm.xlu0 %3906, %v4954_v51   ;;  %v5748_v39 = vpop.permute.xlu0 %1070  ;;  %vm2043_vm9 = vcmp.ne.s32.totalorder %v5461_v16, 0 }
 0x2d1   : > { %vm5742_vm3 = vmand %vm6721_vm13, %vm730_vm5  ;;  %v2192_v47 = vpop.permute.xlu1 %2191  ;;  %vm2139_vm5 = vcmp.ne.s32.totalorder %v5477_v23, 0  ;;  %vm6729_vm13 = vnez %v6709_v17 }
 0x2d2   : > { %v6723_v55 = vsel %vm5742_vm3, 4294967295, %v6722_v55  ;;  %vm2153_vm10 = vmand %vm2057_vm7, %vm2137_vm8  ;;  %vm2217_vm7 = vcmp.ne.s32.totalorder %v2192_v47, 0  ;;  %vm2220_vm3 = vcmp.ne.s32.totalorder %v5561_v29, 0 }
 0x2d3   : > { %vm5750_vm11 = vmand %vm934_vm2, %vm998_vm4 }
 0x2d4   : > { %vm5755_vm14 = vmand %vm713_vm12, %vm729_vm6  ;;  %v4106_v51 = vpop.eup %4105  ;;  %2491 = vperm.xlu0 %3906, %v5281_v40   ;;  %v5769_v62 = vpop.permute.xlu0 %1080  ;;  %vm6730_vm6 = vnez %v6716_v4  ;;  %v5789_v8 = vsel %vm5750_vm11, 1.0, %v6606_v32  ;;  %vm6734_vm11 = vnez %v6719_v41  ;;  %v6738_v4 = vld [vmem:[#allocation71_spill] sm:$0xff] }
 0x2d5   : > { %vm2234_vm8 = vmand %vm6729_vm13, %vm2218_vm15  ;;  %vm826_vm15 = vcmp.ne.s32.totalorder %v5557_v61, 0  ;;  %v2196_v23 = vpop.permute.xlu1 %2195  ;;  %v4108_v29 = vpop.eup %4107  ;;  %v5793_v61 = vmul.f32 %v4106_v51, %v4595_v53  ;;  %v5808_v33 = vsel %vm6734_vm11, 1.0, %v6606_v32  ;;  %vm1934_vm11 = vcmp.ge.f32.partialorder %v5459_v49, 0.0  ;;  %v6754_v53 = vld [vmem:[#allocation82_spill] sm:$0xff] }
 0x2d6   : > { %vm2233_vm1 = vmand %vm2153_vm10, %vm2217_vm7  ;;  %v5772_v16 = vsel %vm2234_vm8, 1.0, %v6606_v32  ;;  %vm825_vm10 = vcmp.ne.s32.totalorder %v5480_v59, 0  ;;  %v5811_v2 = vmul.f32 %v4108_v29, %v6635_v52  ;;  %v3865_v17 = vpack.i.bf16 %v5789_v8, %v5808_v33  ;;  %v6747_v29 = vld [vmem:[#allocation29_spill] sm:$0xff] }
 0x2d7   : > { %vm2059_vm2 = vmand %vm5700_vm0, %vm2043_vm9  ;;  %v5766_v26 = vsel %vm2233_vm1, 1.0, %v6606_v32  ;;  %vm922_vm0 = vcmp.ne.s32.totalorder %v5563_v37, 0  ;;  %vm2219_vm1 = vcmp.ne.s32.totalorder %v2196_v23, 0  ;;  %vm921_vm9 = vcmp.ne.s32.totalorder %v5492_v63, 0 }
 0x2d8   : > { %vm2155_vm12 = vmand %vm2059_vm2, %vm2139_vm5  ;;  %v5784_v40 = vpack.i.bf16 %v5772_v16, %v5766_v26  ;;  %vm6733_vm5 = vnez %v6723_v55  ;;  %3908 = vset.pattern.permute.xlu0 %v6599_v30  ;;  %v5803_v48 = vpop.permute.xlu0 %1090  ;;  %vm1002_vm2 = vcmp.ne.s32.totalorder %v6736_v60, 0  ;;  %v6749_v60 = vld [vmem:[#allocation76_spill] sm:$0xff] }
 0x2d9   : > { %vm5777_vm4 = vmand %vm6730_vm6, %vm2220_vm3  ;;  %v2200_v15 = vpop.permute.xlu1 %2199  ;;  %2337 = vperm.xlu0 %3908, %v5793_v61   ;;  %vm1937_vm6 = vcmp.ge.f32.partialorder %v5811_v2, 0.0 }
 0x2da   : > { %vm2235_vm3 = vmand %vm2155_vm12, %vm2219_vm1  ;;  %3861 = vperm.xlu1 %3814, %v5784_v40   ;;  %v5824_v35 = vsel %vm5777_vm4, 1.0, %v6606_v32  ;;  %vm1953_vm4 = vcmp.le.f32.partialorder %v5811_v2, 7.0  ;;  %vm2049_vm1 = vcmp.ne.s32.totalorder %v5691_v31, 0 }
 0x2db   : > { %vm842_vm13 = vmand %vm6733_vm5, %vm826_vm15  ;;  %v5799_v37 = vsel %vm2235_vm3, 1.0, %v6606_v32 }
 0x2dc   : > { %vm938_vm8 = vmand %vm842_vm13, %vm922_vm0  ;;  %v5831_v38 = vpack.i.bf16 %v5824_v35, %v5799_v37  ;;  %v5833_v59 = vpop.permute.xlu0 %1100 }
 0x2dd   : > { %vm841_vm7 = vmand %vm5755_vm14, %vm825_vm10  ;;  %6737 = vst [vmem:[#allocation49_spill] sm:$0xff] %v5833_v59  ;;  %vm1001_vm14 = vcmp.ne.s32.totalorder %v6738_v4, 0  ;;  %v5838_v41 = vpop.permute.xlu1 %2203  ;;  %vm2145_vm10 = vcmp.ne.s32.totalorder %v5720_v21, 0 }
 0x2de   : > { %vm937_vm12 = vmand %vm841_vm7, %vm921_vm9  ;;  %3866 = vperm.xlu1 %3814, %v3865_v17   ;;  %3911 = vperm.xlu0 %3908, %v5831_v38  }
 0x2df   : > { %vm1018_vm15 = vmand %vm938_vm8, %vm1002_vm2  ;;  %vm1950_vm8 = vcmp.le.f32.partialorder %v5459_v49, 7.0  ;;  %vm1933_vm2 = vcmp.ge.f32.partialorder %v5445_v36, 0.0  ;;  %v4110_v49 = vpop.eup %4109 }
 0x2e0   : > { %vm1017_vm0 = vmand %vm937_vm12, %vm1001_vm14  ;;  %v5843_v63 = vsel %vm1018_vm15, 1.0, %v6606_v32  ;;  %v5847_v55 = vpop.permute.xlu0 %1110  ;;  %vm1949_vm12 = vcmp.le.f32.partialorder %v5445_v36, 7.0  ;;  %vm2046_vm15 = vcmp.ne.s32.totalorder %v5403_v46, 0  ;;  %v1838_v58 = vmul.f32 %v4110_v49, %v6747_v29  ;;  %v6753_v29 = vld [vmem:[#allocation80_spill] sm:$0xff] }
 0x2e1   : > { %vm1969_vm3 = vmand %vm1937_vm6, %vm1953_vm4  ;;  %6739 = vst [vmem:[#allocation51_spill] sm:$0xff] %v5847_v55  ;;  %v5850_v34 = vsel %vm1017_vm0, 1.0, %v6606_v32  ;;  %v2208_v19 = vpop.permute.xlu1 %2207  ;;  %vm2045_vm6 = vcmp.ne.s32.totalorder %v5541_v57, 0  ;;  %vm2141_vm0 = vcmp.ne.s32.totalorder %v5547_v18, 0  ;;  %v6746_v57 = vld [vmem:[#allocation54_spill] sm:$0xff] }
 0x2e2   : > { %3871 = vrot.lane.b32.xlu1 %v3865_v17, %s4194_s26  ;;  %6740 = vst [vmem:[#allocation72_spill] sm:$0xff] %v5850_v34  ;;  %vm2065_vm9 = vmand %vm1969_vm3, %vm2049_vm1  ;;  %v3885_v0 = vpack.i.bf16 %v5843_v63, %v5850_v34  ;;  %vm2225_vm13 = vcmp.ne.s32.totalorder %v2208_v19, 0  ;;  %vm2142_vm3 = vcmp.ne.s32.totalorder %v6746_v57, 0  ;;  %v5888_v18 = vld [vmem:[%s6447_s2 + $0x1] ss:$0 sm:$0xff]  ;;  %v6751_v57 = vld [vmem:[#allocation86_spill] sm:$0xff] }
 0x2e3   : > { %vm2161_vm5 = vmand %vm2065_vm9, %vm2145_vm10  ;;  %vm2221_vm10 = vcmp.ne.s32.totalorder %v2200_v15, 0  ;;  %v6748_v15 = vld [vmem:[#allocation75_spill] sm:$0xff]  ;;  %v1278_v4 = vsub.f32 %v5888_v18, %v6749_v60  ;;  %v6752_v60 = vld [vmem:[#allocation78_spill] sm:$0xff]  ;;  %v1280_v52 = vsub.f32 %v5888_v18, %v6753_v29 }
 0x2e4   : > { %vm2241_vm7 = vmand %vm2161_vm5, %vm2225_vm13  ;;  %v5859_v21 = vpop.permute.xlu0 %1120  ;;  %vm2222_vm13 = vcmp.ne.s32.totalorder %v5567_v28, 0 }
 0x2e5   : > { %v3521_v31 = vsel %vm2241_vm7, 1.0, %v6606_v32  ;;  %6741 = vst [vmem:[#allocation62_spill] sm:$0xff] %v5859_v21  ;;  %v5866_v23 = vpop.permute.xlu1 %2277  ;;  %vm1966_vm14 = vmand %vm1934_vm11, %vm1950_vm8  ;;  %v1294_v49 = vand.u32 2147483647, %v1278_v4  ;;  %v6755_v21 = vld [vmem:[#allocation83_spill] sm:$0xff] }
 0x2e6   : > { %3886 = vperm.xlu1 %3814, %v3885_v0   ;;  %v5863_v47 = vadd.f32 %v3521_v31, %v5641_v13  ;;  %v3926_v51 = vpack.i.bf16 %v5646_v1, %v3521_v31  ;;  %vm1965_vm4 = vmand %vm1933_vm2, %vm1949_vm12  ;;  %v5880_v13 = vld [vmem:[%s6447_s2] ss:$0 sm:$0xff]  ;;  %vm1936_vm2 = vcmp.ge.f32.partialorder %v1838_v58, 0.0  ;;  %vm1952_vm12 = vcmp.le.f32.partialorder %v1838_v58, 7.0 }
 0x2e7   : > { %vm5870_vm1 = vmand %vm1966_vm14, %vm2046_vm15  ;;  %v1134_v20 = vsub.f32 %v5880_v13, %v6748_v15  ;;  %v1310_v4 = vsub.f32 1.0, %v1294_v49  ;;  %vm1935_vm15 = vcmp.ge.f32.partialorder %v5793_v61, 0.0  ;;  %vm1951_vm14 = vcmp.le.f32.partialorder %v5793_v61, 7.0 }
 0x2e8   : > { %6742 = vst [vmem:[#allocation65_spill] sm:$0xff] %v5863_v47  ;;  %3927 = vperm.xlu0 %3908, %v3926_v51   ;;  %v5875_v46 = vpop.permute.xlu0 %1130  ;;  %vm2061_vm9 = vmand %vm1965_vm4, %vm2045_vm6  ;;  %v1296_v12 = vand.u32 2147483647, %v1280_v52  ;;  %vm2048_vm6 = vcmp.ne.s32.totalorder %v5454_v7, 0  ;;  %v2510_v52 = vsub.f32 %v5888_v18, %v5674_v9 }
 0x2e9   : > { %6745 = vst [vmem:[#allocation66_spill] sm:$0xff] %v5875_v46  ;;  %v5883_v1 = vpop.permute.xlu1 %2287  ;;  %vm2157_vm5 = vmand %vm2061_vm9, %vm2141_vm0  ;;  %vm2047_vm0 = vcmp.ne.s32.totalorder %v5580_v27, 0  ;;  %vm2223_vm9 = vcmp.ne.s32.totalorder %v5838_v41, 0 }
 0x2ea   : > { %3891 = vrot.lane.b32.xlu1 %v3885_v0, %s4194_s26  ;;  %vm2237_vm11 = vmand %vm2157_vm5, %vm2221_vm10  ;;  %vm2143_vm10 = vcmp.ne.s32.totalorder %v5591_v25, 0  ;;  %v1312_v9 = vsub.f32 1.0, %v1296_v12  ;;  %vm2144_vm5 = vcmp.ne.s32.totalorder %v5464_v54, 0 }
 0x2eb   : > { %vm2158_vm8 = vmand %vm5870_vm1, %vm2142_vm3  ;;  %v5905_v28 = vsel %vm2237_vm11, 1.0, %v6606_v32  ;;  %vm2224_vm11 = vcmp.ne.s32.totalorder %v5572_v45, 0  ;;  %v3070_v45 = vadd.f32 %v5772_v16, %v5504_v42 }
 0x2ec   : > { %3937 = vrot.lane.b32.xlu0 %v5264_v6, %s4194_s26  ;;  %v5898_v17 = vpop.permute.xlu0 %2282  ;;  %vm2238_vm7 = vmand %vm2158_vm8, %vm2222_vm13  ;;  %6750 = vst [vmem:[#allocation73_spill] sm:$0xff] %v5905_v28  ;;  %v1150_v6 = vand.u32 2147483647, %v1134_v20  ;;  %v2506_v20 = vsub.f32 %v5888_v18, %v5627_v22  ;;  %v1281_v22 = vsub.f32 %v5888_v18, %v6755_v21  ;;  %v1326_v21 = vmax.f32 %v1310_v4, 0.0 }
 0x2ed   : > { %v5902_v19 = vpop.permute.xlu1 %2297  ;;  %v5910_v0 = vsel %vm2238_vm7, 1.0, %v6606_v32  ;;  %vm1968_vm4 = vmand %vm1936_vm2, %vm1952_vm12 }
 0x2ee   : > { %2342 = vperm.xlu1 %3814, %v1838_v58   ;;  %v5917_v36 = vpack.i.bf16 %v5910_v0, %v5905_v28  ;;  %v1166_v47 = vsub.f32 1.0, %v1150_v6  ;;  %v1133_v6 = vsub.f32 %v5880_v13, %v5710_v50  ;;  %v2522_v49 = vand.u32 2147483647, %v2506_v20  ;;  %vm1967_vm1 = vmand %vm1935_vm15, %vm1951_vm14 }
 0x2ef   : > { %v1297_v20 = vand.u32 2147483647, %v1281_v22  ;;  %vm5971_vm3 = vmand %vm1968_vm4, %vm2048_vm6  ;;  %v5991_v28 = vmax.f32 %v1312_v9, 0.0  ;;  %vm2716_vm15 = vcmask 523264  }
 0x2f0   : > { %3947 = vrot.lane.b32.xlu0 %v5784_v40, %s4194_s26  ;;  %v5913_v31 = vpop.permute.xlu0 %2292  ;;  %v1277_v40 = vsub.f32 %v5888_v18, %v6752_v60  ;;  %v1182_v29 = vmax.f32 %v1166_v47, 0.0  ;;  %v1149_v47 = vand.u32 2147483647, %v1133_v6  ;;  %vm2063_vm13 = vmand %vm1967_vm1, %vm2047_vm0 }
 0x2f1   : > { %v5920_v15 = vpop.permute.xlu1 %2307  ;;  %vm2159_vm8 = vmand %vm2063_vm13, %vm2143_vm10 }
 0x2f2   : > { %3895 = vset.pattern.permute.xlu1 %v6560_v43  ;;  %v1293_v60 = vand.u32 2147483647, %v1277_v40  ;;  %v1165_v12 = vsub.f32 1.0, %v1149_v47  ;;  %vm2239_vm7 = vmand %vm2159_vm8, %vm2223_vm9 }
 0x2f3   : > { %2481 = vperm.xlu1 %3895, %v6751_v57   ;;  %v1135_v57 = vsub.f32 %v5880_v13, %v6754_v53  ;;  %v6756_v53 = vld [vmem:[#allocation85_spill] sm:$0xff]  ;;  %vm2160_vm2 = vmand %vm5971_vm3, %vm2144_vm5 }
 0x2f4   : > { %3957 = vrot.lane.b32.xlu0 %v5917_v36, %s4194_s26  ;;  %v5928_v3 = vpop.permute.xlu0 %2302  ;;  %v1279_v5 = vsub.f32 %v5888_v18, %v6756_v53  ;;  %v1309_v59 = vsub.f32 1.0, %v1293_v60  ;;  %v6758_v60 = vld [vmem:[#allocation87_spill] sm:$0xff]  ;;  %vm2240_vm12 = vmand %vm2160_vm2, %vm2224_vm11  ;;  %v1181_v41 = vmax.f32 %v1165_v12, 0.0 }
 0x2f5   : > { %v5935_v46 = vpop.permute.xlu1 %2317  ;;  %v1151_v55 = vand.u32 2147483647, %v1135_v57  ;;  %v6757_v57 = vld [vmem:[#allocation81_spill] sm:$0xff]  ;;  %v1282_v22 = vsub.f32 %v5888_v18, %v6758_v60 }
 0x2f6   : > { %v1295_v53 = vand.u32 2147483647, %v1279_v5  ;;  %v6764_v60 = vld [vmem:[#allocation77_spill] sm:$0xff]  ;;  %v1325_v34 = vmax.f32 %v1309_v59, 0.0 }
 0x2f7   : > { %3907 = vset.pattern.permute.xlu1 %v6599_v30  ;;  %v1167_v58 = vsub.f32 1.0, %v1151_v55 }
 0x2f8   : > { %2347 = vperm.xlu1 %3907, %v5811_v2   ;;  %3967 = vrot.lane.b32.xlu0 %v3926_v51, %s4194_s26  ;;  %v2313_v40 = vpop.permute.xlu0 %2312  ;;  %v2538_v51 = vsub.f32 1.0, %v2522_v49  ;;  %v1311_v27 = vsub.f32 1.0, %v1295_v53 }
 0x2f9   : > { %v2362_v50 = vsub.f32 %v5880_v13, %v2313_v40  ;;  %v5948_v2 = vpop.permute.xlu1 %2327  ;;  %v6759_v40 = vld [vmem:[#allocation42_spill] sm:$0xff] }
 0x2fa   : > { %v1137_v6 = vsub.f32 %v5880_v13, %v6759_v40  ;;  %v2554_v55 = vmax.f32 %v2538_v51, 0.0  ;;  %v6765_v40 = vld [vmem:[#allocation84_spill] sm:$0xff]  ;;  %v1327_v9 = vmax.f32 %v1311_v27, 0.0  ;;  %v6767_v27 = vld [vmem:[#allocation46_spill] sm:$0xff] }
 0x2fb   : > { %v2378_v4 = vand.u32 2147483647, %v2362_v50  ;;  %v1313_v50 = vsub.f32 1.0, %v1297_v20  ;;  %v2526_v20 = vand.u32 2147483647, %v2510_v52  ;;  %v1284_v42 = vsub.f32 %v5888_v18, %v6767_v27 }
 0x2fc   : > { %2352 = vperm.xlu1 %3907, %v5577_v11   ;;  %3197 = vperm.xlu0 %3908, %v6757_v57   ;;  %v5967_v11 = vpop.permute.xlu0 %2322  ;;  %v6763_v57 = vld [vmem:[#allocation37_spill] sm:$0xff]  ;;  %v1153_v47 = vand.u32 2147483647, %v1137_v6  ;;  %v6766_v6 = vld [vmem:[#allocation38_spill] sm:$0xff] }
 0x2fd   : > { %6760 = vst [vmem:[#allocation74_spill] sm:$0xff] %v5967_v11  ;;  %v2394_v49 = vsub.f32 1.0, %v2378_v4  ;;  %v1283_v61 = vsub.f32 %v5888_v18, %v6763_v57  ;;  %v1342_v57 = vmul.f32 %v1326_v21, %v1182_v29  ;;  %v1298_v11 = vand.u32 2147483647, %v1282_v22 }
 0x2fe   : > { %v5982_v7 = vpop.permute.xlu1 %2426  ;;  %v1183_v29 = vmax.f32 %v1167_v58, 0.0  ;;  %v1329_v59 = vmax.f32 %v1313_v50, 0.0  ;;  %v2542_v53 = vsub.f32 1.0, %v2526_v20  ;;  %v6005_v22 = vsel %vm2239_vm7, 1.0, %v6606_v32 }
 0x2ff   : > { %v2410_v4 = vmax.f32 %v2394_v49, 0.0  ;;  %v1299_v21 = vand.u32 2147483647, %v1283_v61  ;;  %v1314_v5 = vsub.f32 1.0, %v1298_v11  ;;  %v1169_v58 = vsub.f32 1.0, %v1153_v47 }
 0x300   : > { %3909 = vset.pattern.permute.xlu1 %v6560_v43  ;;  %3212 = vperm.xlu0 %3908, %v6765_v40   ;;  %v2333_v43 = vpop.permute.xlu0 %2332  ;;  %v3520_v50 = vsel %vm2240_vm12, 1.0, %v6606_v32  ;;  %v2361_v61 = vsub.f32 %v5880_v13, %v5920_v15  ;;  %v2558_v16 = vmax.f32 %v2542_v53, 0.0  ;;  %v6031_v53 = vmul.f32 %v1327_v9, %v1183_v29  ;;  %v6769_v9 = vld [vmem:[#allocation47_spill] sm:$0xff] }
 0x301   : > { %2496 = vperm.xlu1 %3909, %v6764_v60   ;;  %v5997_v25 = vmul.f32 %v2554_v55, %v2410_v4  ;;  %v2366_v51 = vsub.f32 %v5880_v13, %v2333_v43  ;;  %v1315_v20 = vsub.f32 1.0, %v1299_v21  ;;  %v1341_v4 = vmul.f32 %v1325_v34, %v1181_v41  ;;  %v6768_v43 = vld [vmem:[#allocation41_spill] sm:$0xff] }
 0x302   : > { %v6002_v52 = vpop.permute.xlu1 %2431  ;;  %v6016_v60 = vpack.i.bf16 %v3520_v50, %v6005_v22  ;;  %v1185_v32 = vmax.f32 %v1169_v58, 0.0  ;;  %v1139_v15 = vsub.f32 %v5880_v13, %v6768_v43  ;;  %v3072_v34 = vadd.f32 %v5824_v35, %v5789_v8 }
 0x303   : > { %v2382_v54 = vand.u32 2147483647, %v2366_v51  ;;  %v2377_v21 = vand.u32 2147483647, %v2361_v61  ;;  %v2363_v41 = vsub.f32 %v5880_v13, %v5935_v46  ;;  %v6041_v8 = vand.u32 2147483647, %v1284_v42 }
 0x304   : > { %3222 = vperm.xlu0 %3908, %v6766_v6   ;;  %v3806_v49 = vpop.permute.xlu0 %3805  ;;  %v2502_v6 = vsub.f32 %v5888_v18, %v5598_v10  ;;  %v6044_v46 = vmul.f32 %v1329_v59, %v1185_v32  ;;  %v6046_v29 = vand.u32 2147483647, %v1139_v15  ;;  %v2358_v10 = vsub.f32 %v5880_v13, %v5913_v31 }
 0x305   : > { %3915 = vset.pattern.permute.xlu1 %v6599_v30  ;;  %v2398_v12 = vsub.f32 1.0, %v2382_v54  ;;  %v3808_v55 = vunpack.i.h.bf16 %v3806_v49  ;;  %v3807_v11 = vunpack.i.l.bf16 %v3806_v49  ;;  %v6037_v49 = vmax.f32 %v1314_v5, 0.0 }
 0x306   : > { %3917 = vperm.xlu1 %3915, %v5917_v36   ;;  %v6018_v40 = vpop.permute.xlu1 %2441  ;;  %v3074_v5 = vadd.f32 %v5910_v0, %v6769_v9  ;;  %v2393_v61 = vsub.f32 1.0, %v2377_v21  ;;  %v2355_v31 = vsub.f32 %v5880_v13, %v5866_v23  ;;  %v2365_v43 = vsub.f32 %v5880_v13, %v5948_v2 }
 0x307   : > { %v2414_v36 = vmax.f32 %v2398_v12, 0.0  ;;  %v1438_v47 = vmul.f32 %v3808_v55, %v1342_v57  ;;  %v1437_v51 = vmul.f32 %v3807_v11, %v1341_v4  ;;  %v2499_v57 = vsub.f32 %v5888_v18, %v5584_v14 }
 0x308   : > { %3232 = vperm.xlu0 %3908, %v3070_v45   ;;  %v6039_v12 = vmax.f32 %v1315_v20, 0.0  ;;  %v1136_v14 = vsub.f32 %v5880_v13, %v5748_v39  ;;  %v2379_v55 = vand.u32 2147483647, %v2363_v41  ;;  %v3076_v20 = vadd.f32 %v3520_v50, %v5843_v63 }
 0x309   : > { %v6029_v54 = vmul.f32 %v2558_v16, %v2414_v36  ;;  %v1453_v58 = vpack.c.bf16 %v1438_v47, %v1437_v51  ;;  %v2515_v4 = vand.u32 2147483647, %v2499_v57  ;;  %v2518_v11 = vand.u32 2147483647, %v2502_v6 }
 0x30a   : > { %3922 = vperm.xlu1 %3915, %v6016_v60   ;;  %v2452_v45 = vpop.permute.xlu1 %2451  ;;  %v2501_v39 = vsub.f32 %v5888_v18, %v6002_v52  ;;  %v1152_v16 = vand.u32 2147483647, %v1136_v14  ;;  %v2357_v63 = vsub.f32 %v5880_v13, %v5883_v1  ;;  %v2356_v50 = vsub.f32 %v5880_v13, %v5898_v17  ;;  %v6077_v17 = vpop.permute.xlu0 %3826 }
 0x30b   : > { %v2505_v35 = vsub.f32 %v5888_v18, %v2452_v45  ;;  %3706 = vmatprep.mubr.msk.bf16.mxu1 %vm2716_vm15, %v1453_v58  ;;  %v2374_v36 = vand.u32 2147483647, %v2358_v10  ;;  %v2409_v52 = vmax.f32 %v2393_v61, 0.0  ;;  %v2395_v23 = vsub.f32 1.0, %v2379_v55 }
 0x30c   : > { %3242 = vperm.xlu0 %3908, %v3072_v34   ;;  %v2517_v15 = vand.u32 2147483647, %v2501_v39  ;;  %v2371_v1 = vand.u32 2147483647, %v2355_v31  ;;  %v2531_v41 = vsub.f32 1.0, %v2515_v4  ;;  %v2534_v57 = vsub.f32 1.0, %v2518_v11 }
 0x30d   : > { %v2521_v59 = vand.u32 2147483647, %v2505_v35  ;;  %v2373_v6 = vand.u32 2147483647, %v2357_v63  ;;  %v2390_v58 = vsub.f32 1.0, %v2374_v36  ;;  %v2411_v2 = vmax.f32 %v2395_v23, 0.0 }
 0x30e   : > { %3932 = vrot.lane.b32.xlu1 %v5126_v44, %s4194_s26  ;;  %v2462_v27 = vpop.permute.xlu1 %2461  ;;  %v2500_v44 = vsub.f32 %v5888_v18, %v5982_v7  ;;  %v1138_v7 = vsub.f32 %v5880_v13, %v5769_v62  ;;  %v2372_v62 = vand.u32 2147483647, %v2356_v50  ;;  %v1168_v35 = vsub.f32 1.0, %v1152_v16 }
 0x30f   : > { %v2537_v42 = vsub.f32 1.0, %v2521_v59  ;;  %v2507_v0 = vsub.f32 %v5888_v18, %v2462_v27  ;;  %v2381_v14 = vand.u32 2147483647, %v2365_v43  ;;  %v2533_v10 = vsub.f32 1.0, %v2517_v15  ;;  %v6770_v15 = vld [vmem:[#allocation79_spill] sm:$0xff] }
 0x310   : > { %3252 = vperm.xlu0 %3908, %v3074_v5   ;;  %v2516_v34 = vand.u32 2147483647, %v2500_v44  ;;  %v1154_v5 = vand.u32 2147483647, %v1138_v7  ;;  %v2387_v61 = vsub.f32 1.0, %v2371_v1  ;;  %v1316_v4 = vsub.f32 1.0, %v6041_v8 }
 0x311   : > { %v2553_v47 = vmax.f32 %v2537_v42, 0.0  ;;  %v2523_v32 = vand.u32 2147483647, %v2507_v0  ;;  %v2389_v11 = vsub.f32 1.0, %v2373_v6  ;;  %v2547_v27 = vmax.f32 %v2531_v41, 0.0  ;;  %v3832_v0 = vpop.permute.xlu0 %3831 }
 0x312   : > { %3942 = vrot.lane.b32.xlu1 %v5348_v24, %s4194_s26  ;;  %v6075_v51 = vpop.permute.xlu1 %2466  ;;  %v2532_v55 = vsub.f32 1.0, %v2516_v34  ;;  %v1140_v31 = vsub.f32 %v5880_v13, %v5803_v48  ;;  %v2388_v44 = vsub.f32 1.0, %v2372_v62  ;;  %v2406_v42 = vmax.f32 %v2390_v58, 0.0 }
 0x313   : > { %v6079_v21 = vmul.f32 %v2553_v47, %v2409_v52  ;;  %v2539_v24 = vsub.f32 1.0, %v2523_v32  ;;  %v2550_v16 = vmax.f32 %v2534_v57, 0.0  ;;  %v2397_v63 = vsub.f32 1.0, %v2381_v14 }
 0x314   : > { %3262 = vperm.xlu0 %3908, %v3076_v20   ;;  %v4195_v20 = vmov 2   ;;  %v2549_v50 = vmax.f32 %v2533_v10, 0.0  ;;  %v1170_v52 = vsub.f32 1.0, %v1154_v5  ;;  %v2403_v23 = vmax.f32 %v2387_v61, 0.0 }
 0x315   : > { %v2555_v45 = vmax.f32 %v2539_v24, 0.0  ;;  %v2548_v47 = vmax.f32 %v2532_v55, 0.0  ;;  %v2405_v32 = vmax.f32 %v2389_v11, 0.0  ;;  %v3834_v7 = vunpack.i.h.bf16 %v3832_v0  ;;  %v6771_v55 = vld [vmem:[#allocation45_spill] sm:$0xff] }
 0x316   : > { %3952 = vrot.lane.b32.xlu1 %v5831_v38, %s4194_s26  ;;  %v2472_v9 = vpop.permute.xlu1 %2471  ;;  %v1171_v38 = vsub.f32 1.0, %v6046_v29  ;;  %v1184_v29 = vmax.f32 %v1168_v35, 0.0  ;;  %v1156_v48 = vand.u32 2147483647, %v1140_v31  ;;  %v2404_v1 = vmax.f32 %v2388_v44, 0.0 }
 0x317   : > { %v6083_v59 = vmul.f32 %v2555_v45, %v2411_v2  ;;  %v2509_v39 = vsub.f32 %v5888_v18, %v2472_v9  ;;  %v2566_v34 = vmul.f32 %v2550_v16, %v2406_v42  ;;  %v2360_v24 = vsub.f32 %v5880_v13, %v5928_v3 }
 0x318   : > { %3971 = vset.pattern.permute.xlu0 %v4195_v20  ;;  %v2413_v41 = vmax.f32 %v2397_v63, 0.0  ;;  %v2565_v57 = vmul.f32 %v2549_v50, %v2405_v32  ;;  %v2503_v6 = vsub.f32 %v5888_v18, %v6018_v40  ;;  %v2563_v2 = vmul.f32 %v2547_v27, %v2403_v23  ;;  %v6772_v32 = vld [vmem:[#allocation50_spill] sm:$0xff] }
 0x319   : > { %v2525_v36 = vand.u32 2147483647, %v2509_v39  ;;  %v2564_v45 = vmul.f32 %v2548_v47, %v2404_v1  ;;  %v2504_v10 = vsub.f32 %v5888_v18, %v5608_v56  ;;  %v2662_v9 = vmul.f32 %v3834_v7, %v2566_v34  ;;  %v3852_v56 = vpop.permute.xlu0 %3851 }
 0x31a   : > { %3962 = vrot.lane.b32.xlu1 %v6016_v60, %s4194_s26  ;;  %v6093_v8 = vpop.permute.xlu1 %3810  ;;  %v3833_v60 = vunpack.i.l.bf16 %v3832_v0  ;;  %v1172_v3 = vsub.f32 1.0, %v1156_v48  ;;  %v2359_v11 = vsub.f32 %v5880_v13, %v5902_v19  ;;  %v1332_v31 = vmax.f32 %v1316_v4, 0.0  ;;  %v6773_v19 = vld [vmem:[#allocation52_spill] sm:$0xff]  ;;  %s4117_s26 = scalar_lea.vmem %s4116_s24, 4096 }
 0x31b   : > { %v2541_v43 = vsub.f32 1.0, %v2525_v36  ;;  %v1186_v27 = vmax.f32 %v1170_v52, 0.0  ;;  %v2376_v44 = vand.u32 2147483647, %v2360_v24  ;;  %v2519_v42 = vand.u32 2147483647, %v2503_v6  ;;  %p4119_p2 = scmp.lt.s32.totalorder %s4117_s26, %s4111_s21 }
 0x31c   : > { %v2661_v5 = vmul.f32 %v3833_v60, %v2565_v57  ;;  %v1344_v16 = vmul.f32 %v5991_v28, %v1184_v29  ;;  %v1187_v23 = vmax.f32 %v1171_v38, 0.0  ;;  %v2520_v47 = vand.u32 2147483647, %v2504_v10 }
 0x31d   : > { %v2557_v62 = vmax.f32 %v2541_v43, 0.0  ;;  %v3069_v7 = vadd.f32 %v5766_v26, %v6772_v32  ;;  %v1188_v43 = vmax.f32 %v1172_v3, 0.0  ;;  %v2375_v4 = vand.u32 2147483647, %v2359_v11  ;;  %v6774_v3 = vld [vmem:[#allocation53_spill] sm:$0xff]  ;;  %v6778_v32 = vld [vmem:[#allocation59_spill] sm:$0xff]  ;;  %p4120_p3 = por %p4119_p2, %p4118_p1 }
 0x31e   : > { %3202 = vperm.xlu1 %3915, %v6770_v15   ;;  %v3817_v58 = vpop.permute.xlu1 %3816  ;;  %v2676_v60 = vpack.c.bf16 %v2662_v9, %v2661_v5  ;;  %v1346_v28 = vmul.f32 %v6037_v49, %v1186_v27  ;;  %v2392_v29 = vsub.f32 1.0, %v2376_v44  ;;  %v2535_v48 = vsub.f32 1.0, %v2519_v42 }
 0x31f   : > { %v3819_v35 = vunpack.i.h.bf16 %v3817_v58  ;;  %v3818_v14 = vunpack.i.l.bf16 %v3817_v58  ;;  %v6102_v61 = vmul.f32 %v2557_v62, %v2413_v41  ;;  %v3854_v1 = vunpack.i.h.bf16 %v3852_v56  ;;  %p4121_p5 = pnand %p4120_p3, %p4114_p0 }
 0x320   : > { %v3853_v34 = vunpack.i.l.bf16 %v3852_v56  ;;  %v1347_v57 = vmul.f32 %v6039_v12, %v1187_v23  ;;  %v2536_v6 = vsub.f32 1.0, %v2520_v47  ;;  %v2391_v62 = vsub.f32 1.0, %v2375_v4  ;;  %v6128_v56 = vpop.permute.xlu0 %3856 }
 0x321   : > { %v2659_v40 = vmul.f32 %v3818_v14, %v2563_v2  ;;  %v2660_v39 = vmul.f32 %v3819_v35, %v2564_v45  ;;  %v3071_v49 = vadd.f32 %v5799_v37, %v5808_v33  ;;  %v2408_v45 = vmax.f32 %v2392_v29, 0.0 }
 0x322   : > { %3207 = vperm.xlu1 %3915, %v6771_v55   ;;  %v3822_v0 = vpop.permute.xlu1 %3821  ;;  %v2551_v14 = vmax.f32 %v2535_v48, 0.0  ;;  %v1443_v9 = vmul.f32 %v3853_v34, %v1347_v57  ;;  %v2552_v12 = vmax.f32 %v2536_v6, 0.0  ;;  %v2407_v55 = vmax.f32 %v2391_v62, 0.0  ;;  %v6782_v48 = vld [vmem:[#allocation43_spill] sm:$0xff]  ;;  %v6785_v62 = vld [vmem:[#allocation44_spill] sm:$0xff] }
 0x323   : > { %v2675_v63 = vpack.c.bf16 %v2660_v39, %v2659_v40  ;;  %v3824_v50 = vunpack.i.h.bf16 %v3822_v0  ;;  %v3823_v36 = vunpack.i.l.bf16 %v3822_v0  ;;  %v6776_v0 = vld [vmem:[#allocation72_spill] sm:$0xff] }
 0x324   : > { %v2568_v40 = vmul.f32 %v2552_v12, %v2408_v45 }
 0x325   : > { %v1439_v52 = vmul.f32 %v3823_v36, %v6031_v53  ;;  %v1440_v15 = vmul.f32 %v3824_v50, %v1344_v16  ;;  %3682 = vmatprep.mubr.msk.bf16.mxu0 %vm2716_vm15, %v2675_v63  ;;  %v1348_v53 = vmul.f32 %v1332_v31, %v1188_v43  ;;  %v2567_v31 = vmul.f32 %v2551_v14, %v2407_v55  ;;  %v6132_v50 = vpop.permute.xlu0 %3876  ;;  %v6777_v36 = vld [vmem:[#allocation40_spill] sm:$0xff] }
 0x326   : > { %3217 = vperm.xlu1 %3915, %v6773_v19   ;;  %v3837_v38 = vpop.permute.xlu1 %3836  ;;  %3683 = vmatmul.mubr.msk.bf16.vlgmr.msra.gmra.mxu0 %vm2716_vm15, %v2676_v60  ;;  %v3075_v16 = vadd.f32 %v6005_v22, %v6776_v0  ;;  %v1285_v23 = vsub.f32 %v5888_v18, %v6777_v36  ;;  %v6779_v60 = vld [vmem:[#allocation61_spill] sm:$0xff]  ;;  %v6780_v43 = vld [vmem:[#allocation48_spill] sm:$0xff]  ;;  %v6789_v0 = vld [vmem:[#allocation39_spill] sm:$0xff] }
 0x327   : > { %v1454_v26 = vpack.c.bf16 %v1440_v15, %v1439_v52  ;;  %v3839_v24 = vunpack.i.h.bf16 %v3837_v38  ;;  %v3838_v41 = vunpack.i.l.bf16 %v3837_v38  ;;  %v1444_v10 = vmul.f32 %v3854_v1, %v1348_v53  ;;  %v6781_v15 = vld [vmem:[#allocation57_spill] sm:$0xff]  ;;  %v6790_v36 = vld [vmem:[#allocation63_spill] sm:$0xff] }
 0x328   : > { %v1141_v22 = vsub.f32 %v5880_v13, %v6779_v60  ;;  %v1301_v19 = vand.u32 2147483647, %v1285_v23  ;;  %v1287_v4 = vsub.f32 %v5888_v18, %v6780_v43  ;;  %v1288_v1 = vsub.f32 %v5888_v18, %v6782_v48  ;;  %v6792_v43 = vld [vmem:[#allocation62_spill] sm:$0xff] }
 0x329   : > { %v1441_v58 = vmul.f32 %v3838_v41, %v6044_v46  ;;  %v1442_v2 = vmul.f32 %v3839_v24, %v1346_v28  ;;  %3707 = vmatmul.mubr.msk.bf16.vlgmr.msra.gmra.mxu1 %vm2716_vm15, %v1454_v26  ;;  %v6775_v46 = vld [vmem:[#allocation73_spill] sm:$0xff]  ;;  %v1456_v27 = vpack.c.bf16 %v1444_v10, %v1443_v9  ;;  %v6136_v47 = vpop.permute.xlu0 %3881  ;;  %v1143_v28 = vsub.f32 %v5880_v13, %v6781_v15  ;;  %v6784_v41 = vld [vmem:[#allocation51_spill] sm:$0xff]  ;;  %v6786_v10 = vld [vmem:[#allocation68_spill] sm:$0xff] }
 0x32a   : > { %3227 = vperm.xlu1 %3915, %v3069_v7   ;;  %v6120_v35 = vpop.permute.xlu1 %3841  ;;  %v3073_v11 = vadd.f32 %v6775_v46, %v6774_v3  ;;  %v1286_v7 = vsub.f32 %v5888_v18, %v6778_v32  ;;  %v1157_v29 = vand.u32 2147483647, %v1141_v22  ;;  %v1317_v38 = vsub.f32 1.0, %v1301_v19  ;;  %v6783_v26 = vld [vmem:[#allocation49_spill] sm:$0xff]  ;;  %v6791_v32 = vld [vmem:[#allocation55_spill] sm:$0xff] }
 0x32b   : > { %v1455_v5 = vpack.c.bf16 %v1442_v2, %v1441_v58  ;;  %v1303_v34 = vand.u32 2147483647, %v1287_v4  ;;  %v1142_v24 = vsub.f32 %v5880_v13, %v6783_v26  ;;  %v1144_v57 = vsub.f32 %v5880_v13, %v6784_v41 }
 0x32c   : > { %v1289_v58 = vsub.f32 %v5888_v18, %v6785_v62  ;;  %v1159_v2 = vand.u32 2147483647, %v1143_v28  ;;  %v1173_v45 = vsub.f32 1.0, %v1157_v29  ;;  %v1304_v14 = vand.u32 2147483647, %v1288_v1 }
 0x32d   : > { %3710 = vmatprep.mubr.msk.bf16.mxu1 %vm2716_vm15, %v1455_v5  ;;  %v1291_v9 = vsub.f32 %v5888_v18, %v6786_v10  ;;  %v6787_v5 = vld [vmem:[#allocation74_spill] sm:$0xff]  ;;  %v1333_v55 = vmax.f32 %v1317_v38, 0.0  ;;  %v1319_v3 = vsub.f32 1.0, %v1303_v34  ;;  %v1158_v46 = vand.u32 2147483647, %v1142_v24 }
 0x32e   : > { %3237 = vperm.xlu1 %3915, %v3071_v49   ;;  %v3847_v39 = vpop.permute.xlu1 %3846  ;;  %v2508_v49 = vsub.f32 %v5888_v18, %v6075_v51  ;;  %v2364_v12 = vsub.f32 %v5880_v13, %v6787_v5  ;;  %v1189_v51 = vmax.f32 %v1173_v45, 0.0  ;;  %v1290_v23 = vsub.f32 %v5888_v18, %v6790_v36 }
 0x32f   : > { %v3849_v37 = vunpack.i.h.bf16 %v3847_v39  ;;  %v3848_v33 = vunpack.i.l.bf16 %v3847_v39  ;;  %v1174_v22 = vsub.f32 1.0, %v1158_v46  ;;  %v1146_v4 = vsub.f32 %v5880_v13, %v6792_v43 }
 0x330   : > { %v2380_v60 = vand.u32 2147483647, %v2364_v12  ;;  %v1335_v29 = vmax.f32 %v1319_v3, 0.0  ;;  %v1349_v34 = vmul.f32 %v1333_v55, %v1189_v51 }
 0x331   : > { %v2663_v44 = vmul.f32 %v3848_v33, %v2567_v31  ;;  %v2664_v42 = vmul.f32 %v3849_v37, %v2568_v40  ;;  %3711 = vmatmul.mubr.msk.bf16.gmra.mxu1 %vm2716_vm15, %v1456_v27  ;;  %v6166_v31 = vand.u32 2147483647, %v1289_v58  ;;  %v1175_v27 = vsub.f32 1.0, %v1159_v2 }
 0x332   : > { %3247 = vperm.xlu1 %3915, %v3073_v11   ;;  %v1160_v11 = vand.u32 2147483647, %v1144_v57  ;;  %v2524_v37 = vand.u32 2147483647, %v2508_v49  ;;  %v1320_v33 = vsub.f32 1.0, %v1304_v14  ;;  %v2396_v58 = vsub.f32 1.0, %v2380_v60 }
 0x333   : > { %v2677_v63 = vpack.c.bf16 %v2664_v42, %v2663_v44  ;;  %v6788_v44 = vld [vmem:[#allocation60_spill] sm:$0xff]  ;;  %v1321_v48 = vsub.f32 1.0, %v6166_v31  ;;  %v1191_v1 = vmax.f32 %v1175_v27, 0.0  ;;  %v1190_v2 = vmax.f32 %v1174_v22, 0.0 }
 0x334   : > { %v1145_v42 = vsub.f32 %v5880_v13, %v6788_v44  ;;  %v1176_v19 = vsub.f32 1.0, %v1160_v11  ;;  %v2540_v38 = vsub.f32 1.0, %v2524_v37  ;;  %v1336_v26 = vmax.f32 %v1320_v33, 0.0 }
 0x335   : > { %3686 = vmatprep.mubr.msk.bf16.mxu0 %vm2716_vm15, %v2677_v63  ;;  %v1307_v63 = vand.u32 2147483647, %v1291_v9  ;;  %v1162_v45 = vand.u32 2147483647, %v1146_v4  ;;  %v1351_v9 = vmul.f32 %v1335_v29, %v1191_v1  ;;  %v3879_v31 = vunpack.i.h.bf16 %v6132_v50 }
 0x336   : > { %3257 = vperm.xlu1 %3915, %v3075_v16   ;;  %v1292_v16 = vsub.f32 %v5888_v18, %v6789_v0  ;;  %v1161_v24 = vand.u32 2147483647, %v1145_v42  ;;  %v1192_v49 = vmax.f32 %v1176_v19, 0.0  ;;  %v2556_v5 = vmax.f32 %v2540_v38, 0.0 }
 0x337   : > { %v1323_v57 = vsub.f32 1.0, %v1307_v63  ;;  %v3878_v27 = vunpack.i.l.bf16 %v6132_v50  ;;  %v2412_v51 = vmax.f32 %v2396_v58, 0.0 }
 0x338   : > { %v1308_v41 = vand.u32 2147483647, %v1292_v16  ;;  %v1177_v11 = vsub.f32 1.0, %v1161_v24  ;;  %v1352_v0 = vmul.f32 %v1336_v26, %v1192_v49  ;;  %v1178_v16 = vsub.f32 1.0, %v1162_v45 }
 0x339   : > { %v1447_v43 = vmul.f32 %v3878_v27, %v1351_v9 }
 0x33a   : > { %3972 = vset.pattern.permute.xlu1 %v4195_v20  ;;  %v1302_v20 = vand.u32 2147483647, %v1286_v7  ;;  %v1147_v7 = vsub.f32 %v5880_v13, %v6791_v32  ;;  %v1324_v55 = vsub.f32 1.0, %v1308_v41  ;;  %v1448_v19 = vmul.f32 %v3879_v31, %v1352_v0 }
 0x33b   : > { %v1193_v24 = vmax.f32 %v1177_v11, 0.0 }
 0x33c   : > { %v1318_v53 = vsub.f32 1.0, %v1302_v20  ;;  %v6793_v20 = vld [vmem:[#allocation66_spill] sm:$0xff]  ;;  %v1163_v62 = vand.u32 2147483647, %v1147_v7  ;;  %v1340_v41 = vmax.f32 %v1324_v55, 0.0 }
 0x33d   : > { %v1148_v15 = vsub.f32 %v5880_v13, %v6793_v20  ;;  %v1339_v20 = vmax.f32 %v1323_v57, 0.0 }
 0x33e   : > { %v1334_v39 = vmax.f32 %v1318_v53, 0.0  ;;  %v1306_v53 = vand.u32 2147483647, %v1290_v23  ;;  %v1179_v37 = vsub.f32 1.0, %v1163_v62  ;;  %v2572_v23 = vmul.f32 %v2556_v5, %v2412_v51 }
 0x33f   : > { %v1164_v14 = vand.u32 2147483647, %v1148_v15  ;;  %v1194_v62 = vmax.f32 %v1178_v16, 0.0 }
 0x340   : > { %v1350_v42 = vmul.f32 %v1334_v39, %v1190_v2  ;;  %v1322_v15 = vsub.f32 1.0, %v1306_v53  ;;  %v1458_v2 = vpack.c.bf16 %v1448_v19, %v1447_v43  ;;  %v1337_v53 = vmax.f32 %v1321_v48, 0.0 }
 0x341   : > { %v1180_v63 = vsub.f32 1.0, %v1164_v14 }
 0x342   : > { %v1338_v45 = vmax.f32 %v1322_v15, 0.0 }
 0x343   : > { %v6144_v52 = vpop.permute.xlu0 %3897  ;;  %v1196_v39 = vmax.f32 %v1180_v63, 0.0 }
 0x344   : > { %v3900_v49 = vunpack.i.h.bf16 %v6144_v52  ;;  %v3899_v57 = vunpack.i.l.bf16 %v6144_v52  ;;  %v1354_v5 = vmul.f32 %v1338_v45, %v1194_v62 }
 0x347   : > { %v6154_v6 = vpop.permute.xlu0 %3902 }
 0x34b   : > { %v6164_v40 = vpop.permute.xlu0 %2486 }
 0x34c   : > { %v2512_v16 = vsub.f32 %v5888_v18, %v6164_v40 }
 0x34f   : > { %v6180_v28 = vpop.permute.xlu0 %2491 }
 0x350   : > { %v2513_v19 = vsub.f32 %v5888_v18, %v6180_v28 }
 0x354   : > { %v6183_v46 = vpop.permute.xlu0 %2337 }
 0x355   : > { %v3862_v10 = vpop.permute.xlu1 %3861 }
 0x356   : > { %v3864_v12 = vunpack.i.h.bf16 %v3862_v10  ;;  %v3863_v3 = vunpack.i.l.bf16 %v3862_v10  ;;  %v1356_v10 = vmul.f32 %v1340_v41, %v1196_v39 }
 0x358   : > { %v2665_v33 = vmul.f32 %v3863_v3, %v6079_v21  ;;  %v2666_v44 = vmul.f32 %v3864_v12, %v5997_v25  ;;  %v1195_v25 = vmax.f32 %v1179_v37, 0.0  ;;  %v1452_v11 = vmul.f32 %v3900_v49, %v1356_v10 }
 0x359   : > { %v3867_v36 = vpop.permute.xlu1 %3866  ;;  %v3912_v22 = vpop.permute.xlu0 %3911 }
 0x35a   : > { %v2678_v32 = vpack.c.bf16 %v2666_v44, %v2665_v33  ;;  %v3869_v7 = vunpack.i.h.bf16 %v3867_v36  ;;  %v3868_v60 = vunpack.i.l.bf16 %v3867_v36  ;;  %v3914_v4 = vunpack.i.h.bf16 %v3912_v22 }
 0x35b   : > { %v3913_v50 = vunpack.i.l.bf16 %v3912_v22  ;;  %v1355_v14 = vmul.f32 %v1339_v20, %v1195_v25  ;;  %v2367_v36 = vsub.f32 %v5880_v13, %v6183_v46  ;;  %v2528_v22 = vand.u32 2147483647, %v2512_v16 }
 0x35c   : > { %v1445_v29 = vmul.f32 %v3868_v60, %v1349_v34  ;;  %v1446_v21 = vmul.f32 %v3869_v7, %v1350_v42  ;;  %3687 = vmatmul.mubr.msk.bf16.gmra.mxu0 %vm2716_vm15, %v2678_v32  ;;  %v2668_v1 = vmul.f32 %v3914_v4, %v2572_v23  ;;  %v2529_v46 = vand.u32 2147483647, %v2513_v19  ;;  %v6795_v19 = vld [vmem:[#allocation8_spill] sm:$0xff] }
 0x35d   : > { %v2667_v38 = vmul.f32 %v3913_v50, %v6083_v59  ;;  %v6191_v26 = vpop.permute.xlu1 %3871  ;;  %v1353_v59 = vmul.f32 %v1337_v53, %v1193_v24  ;;  %v1451_v55 = vmul.f32 %v3899_v57, %v1355_v14  ;;  %v2383_v43 = vand.u32 2147483647, %v2367_v36 }
 0x35e   : > { %v1457_v58 = vpack.c.bf16 %v1446_v21, %v1445_v29  ;;  %v2544_v21 = vsub.f32 1.0, %v2528_v22  ;;  %v2545_v57 = vsub.f32 1.0, %v2529_v46  ;;  %v3829_v36 = vunpack.i.h.bf16 %v6077_v17 }
 0x35f   : > { %v2679_v34 = vpack.c.bf16 %v2668_v1, %v2667_v38  ;;  %v1460_v37 = vpack.c.bf16 %v1452_v11, %v1451_v55  ;;  %v2399_v1 = vsub.f32 1.0, %v2383_v43  ;;  %v3843_v43 = vunpack.i.l.bf16 %v6120_v35 }
 0x360   : > { %3714 = vmatprep.mubr.msk.bf16.mxu1 %vm2716_vm15, %v1457_v58  ;;  %v2560_v49 = vmax.f32 %v2544_v21, 0.0 }
 0x361   : > { %v3887_v9 = vpop.permute.xlu1 %3886  ;;  %3715 = vmatmul.mubr.msk.bf16.gmra.mxu1 %vm2716_vm15, %v1458_v2  ;;  %3690 = vmatprep.mubr.msk.bf16.mxu0 %vm2716_vm15, %v2679_v34  ;;  %v2415_v53 = vmax.f32 %v2399_v1, 0.0 }
 0x362   : > { %v3889_v12 = vunpack.i.h.bf16 %v3887_v9  ;;  %v3888_v3 = vunpack.i.l.bf16 %v3887_v9 }
 0x363   : > { %v3928_v25 = vpop.permute.xlu0 %3927 }
 0x364   : > { %v1449_v31 = vmul.f32 %v3888_v3, %v1353_v59  ;;  %v1450_v52 = vmul.f32 %v3889_v12, %v1354_v5 }
 0x365   : > { %v6198_v27 = vpop.permute.xlu1 %3891 }
 0x366   : > { %v1459_v48 = vpack.c.bf16 %v1450_v52, %v1449_v31  ;;  %v3813_v31 = vunpack.i.h.bf16 %v6093_v8  ;;  %v2561_v52 = vmax.f32 %v2545_v57, 0.0  ;;  %v6801_v57 = vld [vmem:[#allocation16_spill] sm:$0xff] }
 0x367   : > { %v3938_v10 = vpop.permute.xlu0 %3937 }
 0x368   : > { %3718 = vmatprep.mubr.msk.bf16.mxu1 %vm2716_vm15, %v1459_v48  ;;  %v3939_v21 = vunpack.i.l.bf16 %v3938_v10 }
 0x369   : > { %v2343_v51 = vpop.permute.xlu1 %2342  ;;  %3719 = vmatmul.mubr.msk.bf16.gmra.mxu1 %vm2716_vm15, %v1460_v37  ;;  %v3812_v37 = vunpack.i.l.bf16 %v6093_v8 }
 0x36a   : > { %v2368_v42 = vsub.f32 %v5880_v13, %v2343_v51 }
 0x36b   : > { %v1517_v8 = vmul.f32 %v3812_v37, %v6795_v19  ;;  %v6811_v19 = vld [vmem:[#allocation28_spill] sm:$0xff] }
 0x36c   : > { %v2384_v23 = vand.u32 2147483647, %v2368_v42 }
 0x36e   : > { %v2482_v33 = vpop.permute.xlu1 %2481  ;;  %v2400_v50 = vsub.f32 1.0, %v2384_v23  ;;  %v6794_v23 = vld [vmem:[#allocation5_spill] sm:$0xff] }
 0x36f   : > { %v2511_v0 = vsub.f32 %v5888_v18, %v2482_v33 }
 0x370   : > { %v2416_v38 = vmax.f32 %v2400_v50, 0.0 }
 0x371   : > { %v2527_v60 = vand.u32 2147483647, %v2511_v0 }
 0x372   : > { %v2576_v14 = vmul.f32 %v2560_v49, %v2416_v38 }
 0x373   : > { %v2348_v44 = vpop.permute.xlu1 %2347  ;;  %v2543_v29 = vsub.f32 1.0, %v2527_v60  ;;  %v3948_v60 = vpop.permute.xlu0 %3947 }
 0x374   : > { %v2369_v32 = vsub.f32 %v5880_v13, %v2348_v44  ;;  %v3949_v1 = vunpack.i.l.bf16 %v3948_v60  ;;  %v3950_v37 = vunpack.i.h.bf16 %v3948_v60 }
 0x375   : > { %v2559_v58 = vmax.f32 %v2543_v29, 0.0 }
 0x376   : > { %v2385_v20 = vand.u32 2147483647, %v2369_v32  ;;  %v1518_v32 = vmul.f32 %v3813_v31, %v6794_v23  ;;  %v6808_v23 = vld [vmem:[#allocation14_spill] sm:$0xff] }
 0x377   : > { %v2353_v63 = vpop.permute.xlu1 %2352  ;;  %v2575_v12 = vmul.f32 %v2559_v58, %v2415_v53  ;;  %v3828_v58 = vunpack.i.l.bf16 %v6077_v17  ;;  %v6802_v53 = vld [vmem:[#allocation12_spill] sm:$0xff] }
 0x378   : > { %v2370_v7 = vsub.f32 %v5880_v13, %v2353_v63  ;;  %v2401_v13 = vsub.f32 1.0, %v2385_v20  ;;  %v6797_v20 = vld [vmem:[#allocation7_spill] sm:$0xff] }
 0x37a   : > { %v2386_v15 = vand.u32 2147483647, %v2370_v7  ;;  %v2417_v9 = vmax.f32 %v2401_v13, 0.0  ;;  %v3929_v7 = vunpack.i.l.bf16 %v3928_v25 }
 0x37c   : > { %v2497_v4 = vpop.permute.xlu1 %2496  ;;  %v2402_v24 = vsub.f32 1.0, %v2386_v15  ;;  %v2577_v44 = vmul.f32 %v2561_v52, %v2417_v9  ;;  %v3844_v52 = vunpack.i.h.bf16 %v6120_v35  ;;  %v6809_v35 = vld [vmem:[#allocation23_spill] sm:$0xff] }
 0x37d   : > { %v2514_v40 = vsub.f32 %v5888_v18, %v2497_v4  ;;  %v6796_v4 = vld [vmem:[#allocation6_spill] sm:$0xff] }
 0x37e   : > { %v2418_v59 = vmax.f32 %v2402_v24, 0.0  ;;  %v2673_v46 = vmul.f32 %v3929_v7, %v2577_v44  ;;  %v6799_v24 = vld [vmem:[#allocation9_spill] sm:$0xff] }
 0x37f   : > { %v2530_v39 = vand.u32 2147483647, %v2514_v40  ;;  %v6798_v40 = vld [vmem:[#allocation10_spill] sm:$0xff] }
 0x381   : > { %v2546_v41 = vsub.f32 1.0, %v2530_v39  ;;  %v3918_v62 = vpop.permute.xlu1 %3917 }
 0x382   : > { %v3920_v28 = vunpack.i.h.bf16 %v3918_v62  ;;  %v3919_v2 = vunpack.i.l.bf16 %v3918_v62 }
 0x383   : > { %v2562_v34 = vmax.f32 %v2546_v41, 0.0  ;;  %v1520_v41 = vmul.f32 %v3829_v36, %v6799_v24  ;;  %v3883_v36 = vunpack.i.l.bf16 %v6136_v47  ;;  %v6814_v24 = vld [vmem:[#allocation21_spill] sm:$0xff] }
 0x384   : > { %v2669_v18 = vmul.f32 %v3919_v2, %v6102_v61  ;;  %v2670_v45 = vmul.f32 %v3920_v28, %v6029_v54  ;;  %v3930_v54 = vunpack.i.h.bf16 %v3928_v25  ;;  %v3940_v61 = vunpack.i.h.bf16 %v3938_v10  ;;  %v6800_v2 = vld [vmem:[#allocation15_spill] sm:$0xff]  ;;  %v6803_v10 = vld [vmem:[#allocation20_spill] sm:$0xff] }
 0x385   : > { %v3923_v5 = vpop.permute.xlu1 %3922  ;;  %v2578_v48 = vmul.f32 %v2562_v34, %v2418_v59  ;;  %v3858_v28 = vunpack.i.l.bf16 %v6128_v56  ;;  %v1521_v49 = vmul.f32 %v3843_v43, %v6800_v2  ;;  %v3037_v9 = vmul.f32 %v3949_v1, %v6803_v10  ;;  %v3958_v59 = vpop.permute.xlu0 %3957 }
 0x386   : > { %v2680_v3 = vpack.c.bf16 %v2670_v45, %v2669_v18  ;;  %v3925_v11 = vunpack.i.h.bf16 %v3923_v5  ;;  %v3924_v55 = vunpack.i.l.bf16 %v3923_v5  ;;  %v3034_v29 = vmul.f32 %v3940_v61, %v6798_v40  ;;  %v6806_v61 = vld [vmem:[#allocation13_spill] sm:$0xff] }
 0x387   : > { %v2674_v22 = vmul.f32 %v3930_v54, %v2578_v48  ;;  %v3033_v18 = vmul.f32 %v3939_v21, %v6802_v53  ;;  %v3873_v48 = vunpack.i.l.bf16 %v6191_v26  ;;  %v3904_v2 = vunpack.i.l.bf16 %v6154_v6  ;;  %v6818_v53 = vld [vmem:[#allocation25_spill] sm:$0xff] }
 0x388   : > { %v2671_v51 = vmul.f32 %v3924_v55, %v2575_v12  ;;  %v2672_v33 = vmul.f32 %v3925_v11, %v2576_v14  ;;  %3691 = vmatmul.mubr.msk.bf16.gmra.mxu0 %vm2716_vm15, %v2680_v3  ;;  %v3050_v45 = vadd.f32 %v3034_v29, %v1520_v41  ;;  %v6804_v3 = vld [vmem:[#allocation11_spill] sm:$0xff] }
 0x389   : > { %v3933_v42 = vpop.permute.xlu1 %3932  ;;  %v2682_v62 = vpack.c.bf16 %v2674_v22, %v2673_v46  ;;  %v1519_v11 = vmul.f32 %v3828_v58, %v6804_v3  ;;  %v6805_v55 = vld [vmem:[#allocation19_spill] sm:$0xff]  ;;  %v1525_v7 = vmul.f32 %v3873_v48, %v6809_v35  ;;  %v6810_v22 = vld [vmem:[#allocation17_spill] sm:$0xff]  ;;  %v3874_v46 = vunpack.i.h.bf16 %v6191_v26 }
 0x38a   : > { %v2681_v0 = vpack.c.bf16 %v2672_v33, %v2671_v51  ;;  %v3935_v16 = vunpack.i.h.bf16 %v3933_v42  ;;  %v3934_v63 = vunpack.i.l.bf16 %v3933_v42  ;;  %v1523_v31 = vmul.f32 %v3858_v28, %v6805_v55  ;;  %v6807_v42 = vld [vmem:[#allocation24_spill] sm:$0xff]  ;;  %v6813_v29 = vld [vmem:[#allocation27_spill] sm:$0xff] }
 0x38b   : > { %v3959_v51 = vunpack.i.l.bf16 %v3958_v59  ;;  %v3049_v33 = vadd.f32 %v3033_v18, %v1519_v11  ;;  %v3038_v60 = vmul.f32 %v3950_v37, %v6810_v22  ;;  %v1527_v21 = vmul.f32 %v3883_v36, %v6813_v29 }
 0x38c   : > { %v3032_v50 = vmul.f32 %v3935_v16, %v6796_v4  ;;  %v3031_v15 = vmul.f32 %v3934_v63, %v6797_v20  ;;  %3694 = vmatprep.mubr.msk.bf16.mxu0 %vm2716_vm15, %v2681_v0  ;;  %v3053_v54 = vadd.f32 %v3037_v9, %v1523_v31  ;;  %v3859_v16 = vunpack.i.h.bf16 %v6128_v56  ;;  %v3968_v56 = vpop.permute.xlu0 %3967 }
 0x38d   : > { %v3943_v39 = vpop.permute.xlu1 %3942  ;;  %v3884_v28 = vunpack.i.h.bf16 %v6136_v47  ;;  %v3894_v47 = vunpack.i.h.bf16 %v6198_v27  ;;  %v3970_v55 = vunpack.i.h.bf16 %v3968_v56  ;;  %v3905_v37 = vunpack.i.h.bf16 %v6154_v6 }
 0x38e   : > { %v3048_v38 = vadd.f32 %v3032_v50, %v1518_v32  ;;  %v3047_v25 = vadd.f32 %v3031_v15, %v1517_v8  ;;  %v3944_v13 = vunpack.i.l.bf16 %v3943_v39  ;;  %v3945_v5 = vunpack.i.h.bf16 %v3943_v39  ;;  %v6812_v15 = vld [vmem:[#allocation18_spill] sm:$0xff] }
 0x38f   : > { %v1522_v32 = vmul.f32 %v3844_v52, %v6808_v23  ;;  %v3041_v8 = vmul.f32 %v3959_v51, %v6811_v19  ;;  %v1524_v40 = vmul.f32 %v3859_v16, %v6812_v15  ;;  %v3893_v39 = vunpack.i.l.bf16 %v6198_v27  ;;  %v6822_v52 = vld [vmem:[#allocation29_spill] sm:$0xff]  ;;  %v6823_v51 = vld [vmem:[#allocation30_spill] sm:$0xff]  ;;  %v6826_v27 = vld [vmem:[#allocation64_spill] sm:$0xff] }
 0x390   : > { %v3035_v34 = vmul.f32 %v3944_v13, %v6801_v57  ;;  %3084 = vperm.xlu1 %3972, %v3047_v25   ;;  %3089 = vperm.xlu0 %3971, %v3048_v38   ;;  %v3036_v44 = vmul.f32 %v3945_v5, %v6806_v61  ;;  %v3960_v38 = vunpack.i.h.bf16 %v3958_v59  ;;  %v3969_v13 = vunpack.i.l.bf16 %v3968_v56  ;;  %v6820_v5 = vld [vmem:[#allocation26_spill] sm:$0xff]  ;;  %v3198_v6 = vpop.permute.xlu0 %3197 }
 0x391   : > { %3695 = vmatmul.mubr.msk.bf16.gmra.mxu0 %vm2716_vm15, %v2682_v62  ;;  %v3953_v14 = vpop.permute.xlu1 %3952  ;;  %v3054_v1 = vadd.f32 %v3038_v60, %v1524_v40  ;;  %v3057_v25 = vadd.f32 %v3041_v8, %v1527_v21  ;;  %v6815_v62 = vld [vmem:[#allocation32_spill] sm:$0xff]  ;;  %v3079_v40 = vlaneseq }
 0x392   : > { %v3051_v12 = vadd.f32 %v3035_v34, %v1521_v49  ;;  %v3954_v17 = vunpack.i.l.bf16 %v3953_v14  ;;  %v3052_v43 = vadd.f32 %v3036_v44, %v1522_v32  ;;  %v3955_v4 = vunpack.i.h.bf16 %v3953_v14  ;;  %v6816_v49 = vld [vmem:[#allocation22_spill] sm:$0xff]  ;;  %v6817_v34 = vld [vmem:[#allocation31_spill] sm:$0xff] }
 0x393   : > { %v1526_v57 = vmul.f32 %v3874_v46, %v6816_v49  ;;  %v1529_v26 = vmul.f32 %v3893_v39, %v6817_v34  ;;  %v3042_v18 = vmul.f32 %v3960_v38, %v6818_v53  ;;  %v6286_v21 = vand.u32 127, %v3079_v40 }
 0x394   : > { %3104 = vperm.xlu0 %3971, %v3051_v12   ;;  %3099 = vperm.xlu1 %3972, %v3050_v45   ;;  %v3039_v0 = vmul.f32 %v3954_v17, %v6807_v42  ;;  %v3040_v41 = vmul.f32 %v3955_v4, %v6814_v24  ;;  %v6819_v45 = vld [vmem:[#allocation36_spill] sm:$0xff]  ;;  %v1528_v12 = vmul.f32 %v3884_v28, %v6820_v5  ;;  %v6821_v17 = vld [vmem:[#allocation35_spill] sm:$0xff]  ;;  %v6825_v42 = vld [vmem:[#allocation34_spill] sm:$0xff]  ;;  %v3213_v23 = vpop.permute.xlu0 %3212 }
 0x395   : > { %v3963_v63 = vpop.permute.xlu1 %3962  ;;  %v3045_v14 = vmul.f32 %v3969_v13, %v6819_v45  ;;  %v1531_v3 = vmul.f32 %v3904_v2, %v6821_v17  ;;  %vm3081_vm14 = vcmp.eq.s32.totalorder %v6286_v21, 80  ;;  %vm3194_vm6 = vcmp.eq.s32.totalorder %v6286_v21, 81 }
 0x396   : > { %v3055_v50 = vadd.f32 %v3039_v0, %v1525_v7  ;;  %v3964_v20 = vunpack.i.l.bf16 %v3963_v63  ;;  %v3056_v10 = vadd.f32 %v3040_v41, %v1526_v57  ;;  %v3965_v9 = vunpack.i.h.bf16 %v3963_v63  ;;  %v6827_v63 = vld [vmem:[#allocation65_spill] sm:$0xff] }
 0x397   : > { %v3058_v11 = vadd.f32 %v3042_v18, %v1528_v12  ;;  %v3061_v31 = vadd.f32 %v3045_v14, %v1531_v3  ;;  %v1532_v0 = vmul.f32 %v3905_v37, %v6825_v42  ;;  %v3275_v49 = vsel %vm3194_vm6, %v3198_v6, 0.0 }
 0x398   : > { %3114 = vperm.xlu0 %3971, %v3053_v54   ;;  %3094 = vperm.xlu1 %3972, %v3049_v33   ;;  %v3043_v58 = vmul.f32 %v3964_v20, %v6815_v62  ;;  %v3044_v48 = vmul.f32 %v3965_v9, %v6822_v52  ;;  %v1530_v33 = vmul.f32 %v3894_v47, %v6823_v51  ;;  %v6824_v54 = vld [vmem:[#allocation33_spill] sm:$0xff]  ;;  %v6270_v35 = vpop.permute.xlu0 %3222 }
 0x399   : > { %v3046_v61 = vmul.f32 %v3970_v55, %v6824_v54  ;;  %v3203_v36 = vpop.permute.xlu1 %3202 }
 0x39a   : > { %v3059_v59 = vadd.f32 %v3043_v58, %v1529_v26  ;;  %v3060_v44 = vadd.f32 %v3044_v48, %v1530_v33  ;;  %v3276_v57 = vsel %vm3194_vm6, %v3203_v36, 0.0 }
 0x39b   : > { %v3062_v16 = vadd.f32 %v3046_v61, %v1532_v0 }
 0x39c   : > { %3124 = vperm.xlu0 %3971, %v3055_v50   ;;  %3109 = vperm.xlu1 %3972, %v3052_v43   ;;  %v6274_v22 = vpop.permute.xlu0 %3232 }
 0x39d   : > { %v3208_v32 = vpop.permute.xlu1 %3207 }
 0x39e   : > { %v3277_v47 = vsel %vm3194_vm6, %v3208_v32, 0.0 }
 0x3a0   : > { %3134 = vperm.xlu0 %3971, %v3057_v25   ;;  %3119 = vperm.xlu1 %3972, %v3054_v1   ;;  %v6278_v19 = vpop.permute.xlu0 %3242 }
 0x3a1   : > { %v6272_v7 = vpop.permute.xlu1 %3217 }
 0x3a2   : > { %v3279_v32 = vsel %vm3194_vm6, %v6272_v7, 0.0 }
 0x3a4   : > { %3144 = vperm.xlu0 %3971, %v3059_v59   ;;  %3129 = vperm.xlu1 %3972, %v3056_v10   ;;  %v6282_v50 = vpop.permute.xlu0 %3252  ;;  %v3278_v10 = vsel %vm3194_vm6, %v3213_v23, 0.0 }
 0x3a5   : > { %v6276_v60 = vpop.permute.xlu1 %3227 }
 0x3a8   : > { %3154 = vperm.xlu0 %3971, %v3061_v31   ;;  %3139 = vperm.xlu1 %3972, %v3058_v11   ;;  %v6288_v46 = vpop.permute.xlu0 %3262 }
 0x3a9   : > { %v6280_v8 = vpop.permute.xlu1 %3237 }
 0x3ac   : > { %3974 = vset.pattern.permute.xlu0 %v6599_v30  ;;  %3149 = vperm.xlu1 %3972, %v3060_v44  }
 0x3ad   : > { %3272 = vperm.xlu0 %3974, %v6826_v27   ;;  %v6284_v20 = vpop.permute.xlu1 %3247  ;;  %v3281_v27 = vsel %vm3194_vm6, %v6276_v60, 0.0 }
 0x3b0   : > { %3159 = vperm.xlu1 %3972, %v3062_v16  }
 0x3b1   : > { %v6290_v39 = vpop.permute.xlu1 %3257 }
 0x3b4   : > { %3973 = vset.pattern.permute.xlu1 %v6599_v30 }
 0x3b5   : > { %3267 = vperm.xlu1 %3973, %v6827_v63  }
 0x3e6   : > { %v3684_v43 = vpop.f32.mrf.mxu0 }
 0x3e8   : > { %v2775_v15 = vpop.f32.mrf.mxu0 }
 0x3e9   : > { %v3708_v30 = vpop.f32.mrf.mxu1 }
 0x3ea   : > { %v3685_v29 = vpop.f32.mrf.mxu0  ;;  %v2929_v9 = vadd.f32 %v3708_v30, %v3684_v43 }
 0x3eb   : > { %v2920_v4 = vpop.f32.mrf.mxu1 }
 0x3ec   : > { %v2778_v38 = vpop.f32.mrf.mxu0  ;;  %v2921_v25 = vadd.f32 %v2920_v4, %v2775_v15 }
 0x3ed   : > { %v3709_v56 = vpop.f32.mrf.mxu1 }
 0x3ee   : > { %v2932_v34 = vadd.f32 %v3709_v56, %v3685_v29  ;;  %v3282_v56 = vsel %vm3194_vm6, %v6274_v22, 0.0 }
 0x3ef   : > { %v2923_v1 = vpop.f32.mrf.mxu1 }
 0x3f0   : > { %v2924_v13 = vadd.f32 %v2923_v1, %v2778_v38  ;;  %v3280_v38 = vsel %vm3194_vm6, %v6270_v35, 0.0 }
 0x3f1   : > { %v3712_v11 = vpop.f32.mrf.mxu1 }
 0x3f3   : > { %v2936_v52 = vpop.f32.mrf.mxu1 }
 0x3f5   : > { %v3713_v33 = vpop.f32.mrf.mxu1 }
 0x3f7   : > { %v2939_v30 = vpop.f32.mrf.mxu1 }
 0x40b   : > { %v3085_v24 = vpop.permute.xlu1 %3084  ;;  %v3090_v41 = vpop.permute.xlu0 %3089 }
 0x40c   : > { %v3162_v62 = vsel %vm3081_vm14, %v3085_v24, 0.0  ;;  %v3163_v58 = vsel %vm3081_vm14, %v3090_v41, 0.0 }
 0x40d   : > { %v3178_v28 = vadd.f32 %v3162_v62, %v2921_v25  ;;  %v3179_v2 = vadd.f32 %v3163_v58, %v2924_v13 }
 0x40f   : > { %v3291_v26 = vadd.f32 %v3275_v49, %v3178_v28  ;;  %v3292_v53 = vadd.f32 %v3276_v57, %v3179_v2  ;;  %v3100_v18 = vpop.permute.xlu1 %3099  ;;  %v3105_v17 = vpop.permute.xlu0 %3104 }
 0x410   : > { %v3165_v45 = vsel %vm3081_vm14, %v3100_v18, 0.0  ;;  %v3166_v16 = vsel %vm3081_vm14, %v3105_v17, 0.0 }
 0x411   : > { %3307 = vst [vmem:[%s6307_s9] sm:$0xff] %v3291_v26  ;;  %3308 = vst [vmem:[%s6307_s9 + $0x8] sm:$0xff] %v3292_v53  ;;  %v3181_v14 = vadd.f32 %v3165_v45, %v2932_v34 }
 0x413   : > { %v3294_v59 = vadd.f32 %v3278_v10, %v3181_v14  ;;  %v3095_v5 = vpop.permute.xlu1 %3094  ;;  %v3115_v48 = vpop.permute.xlu0 %3114  ;;  %v3285_v10 = vsel %vm3194_vm6, %v6284_v20, 0.0 }
 0x414   : > { %v3164_v12 = vsel %vm3081_vm14, %v3095_v5, 0.0  ;;  %v3168_v54 = vsel %vm3081_vm14, %v3115_v48, 0.0 }
 0x415   : > { %3310 = vst [vmem:[%s6307_s9 + $0x18] sm:$0xff] %v3294_v59  ;;  %v3180_v3 = vadd.f32 %v3164_v12, %v2929_v9 }
 0x417   : > { %v3293_v55 = vadd.f32 %v3277_v47, %v3180_v3  ;;  %v3110_v31 = vpop.permute.xlu1 %3109  ;;  %v3125_v41 = vpop.permute.xlu0 %3124  ;;  %v3283_v47 = vsel %vm3194_vm6, %v6280_v8, 0.0 }
 0x418   : > { %v3167_v29 = vsel %vm3081_vm14, %v3110_v31, 0.0  ;;  %v3170_v9 = vsel %vm3081_vm14, %v3125_v41, 0.0  ;;  %v3288_v41 = vsel %vm3194_vm6, %v6288_v46, 0.0 }
 0x419   : > { %3309 = vst [vmem:[%s6307_s9 + $0x10] sm:$0xff] %v3293_v55 }
 0x41b   : > { %v3120_v44 = vpop.permute.xlu1 %3119  ;;  %v3135_v22 = vpop.permute.xlu0 %3134 }
 0x41c   : > { %v3688_v37 = vpop.f32.mrf.mxu0  ;;  %v3169_v43 = vsel %vm3081_vm14, %v3120_v44, 0.0  ;;  %v3172_v26 = vsel %vm3081_vm14, %v3135_v22, 0.0  ;;  %v3284_v44 = vsel %vm3194_vm6, %v6278_v19, 0.0 }
 0x41d   : > { %v2945_v51 = vadd.f32 %v3712_v11, %v3688_v37  ;;  %v3286_v37 = vsel %vm3194_vm6, %v6282_v50, 0.0 }
 0x41e   : > { %v2791_v61 = vpop.f32.mrf.mxu0 }
 0x41f   : > { %v3184_v42 = vadd.f32 %v3168_v54, %v2945_v51  ;;  %v2937_v0 = vadd.f32 %v2936_v52, %v2791_v61  ;;  %v3130_v13 = vpop.permute.xlu1 %3129  ;;  %v3145_v53 = vpop.permute.xlu0 %3144 }
 0x420   : > { %v3689_v63 = vpop.f32.mrf.mxu0  ;;  %v3171_v51 = vsel %vm3081_vm14, %v3130_v13, 0.0 }
 0x421   : > { %v3297_v6 = vadd.f32 %v3281_v27, %v3184_v42  ;;  %v3182_v36 = vadd.f32 %v3166_v16, %v2937_v0  ;;  %v2948_v23 = vadd.f32 %v3713_v33, %v3689_v63  ;;  %v3716_v24 = vpop.f32.mrf.mxu1 }
 0x422   : > { %v2794_v4 = vpop.f32.mrf.mxu0 }
 0x423   : > { %3313 = vst [vmem:[%s6307_s9 + $0x30] sm:$0xff] %v3297_v6  ;;  %v3295_v60 = vadd.f32 %v3279_v32, %v3182_v36  ;;  %v3185_v15 = vadd.f32 %v3169_v43, %v2948_v23  ;;  %v2940_v40 = vadd.f32 %v2939_v30, %v2794_v4  ;;  %v2952_v62 = vpop.f32.mrf.mxu1  ;;  %v3140_v58 = vpop.permute.xlu1 %3139  ;;  %v3174_v23 = vsel %vm3081_vm14, %v3145_v53, 0.0 }
 0x424   : > { %v3173_v11 = vsel %vm3081_vm14, %v3140_v58, 0.0  ;;  %v3155_v33 = vpop.permute.xlu0 %3154 }
 0x425   : > { %3311 = vst [vmem:[%s6307_s9 + $0x20] sm:$0xff] %v3295_v60  ;;  %v3298_v1 = vadd.f32 %v3282_v56, %v3185_v15  ;;  %v3183_v7 = vadd.f32 %v3167_v29, %v2940_v40  ;;  %v3717_v28 = vpop.f32.mrf.mxu1  ;;  %v3176_v27 = vsel %vm3081_vm14, %v3155_v33, 0.0  ;;  %v3287_v15 = vsel %vm3194_vm6, %v6290_v39, 0.0 }
 0x427   : > { %3314 = vst [vmem:[%s6307_s9 + $0x38] sm:$0xff] %v3298_v1  ;;  %v3296_v25 = vadd.f32 %v3280_v38, %v3183_v7  ;;  %v3150_v2 = vpop.permute.xlu1 %3149  ;;  %v2955_v49 = vpop.f32.mrf.mxu1 }
 0x428   : > { %v3273_v30 = vpop.permute.xlu0 %3272 }
 0x429   : > { %3312 = vst [vmem:[%s6307_s9 + $0x28] sm:$0xff] %v3296_v25  ;;  %v3720_v18 = vpop.f32.mrf.mxu1  ;;  %v3175_v25 = vsel %vm3081_vm14, %v3150_v2, 0.0  ;;  %v3290_v39 = vsel %vm3194_vm6, %v3273_v30, 0.0 }
 0x42b   : > { %v3160_v59 = vpop.permute.xlu1 %3159  ;;  %v2968_v31 = vpop.f32.mrf.mxu1 }
 0x42c   : > { %v3177_v40 = vsel %vm3081_vm14, %v3160_v59, 0.0 }
 0x42d   : > { %v3721_v16 = vpop.f32.mrf.mxu1 }
 0x42f   : > { %v2971_v56 = vpop.f32.mrf.mxu1 }
 0x430   : > { %v3268_v42 = vpop.permute.xlu1 %3267 }
 0x431   : > { %v3289_v32 = vsel %vm3194_vm6, %v3268_v42, 0.0 }
 0x448   : > { %v3692_v57 = vpop.f32.mrf.mxu0 }
 0x449   : > { %v2961_v34 = vadd.f32 %v3716_v24, %v3692_v57 }
 0x44a   : > { %v2807_v35 = vpop.f32.mrf.mxu0 }
 0x44b   : > { %v3188_v45 = vadd.f32 %v3172_v26, %v2961_v34  ;;  %v2953_v14 = vadd.f32 %v2952_v62, %v2807_v35 }
 0x44c   : > { %v3693_v5 = vpop.f32.mrf.mxu0 }
 0x44d   : > { %v3301_v12 = vadd.f32 %v3285_v10, %v3188_v45  ;;  %v3186_v17 = vadd.f32 %v3170_v9, %v2953_v14  ;;  %v2964_v3 = vadd.f32 %v3717_v28, %v3693_v5 }
 0x44e   : > { %v2810_v55 = vpop.f32.mrf.mxu0 }
 0x44f   : > { %3317 = vst [vmem:[%s6307_s9 + $0x50] sm:$0xff] %v3301_v12  ;;  %v3299_v20 = vadd.f32 %v3283_v47, %v3186_v17  ;;  %v3189_v52 = vadd.f32 %v3173_v11, %v2964_v3  ;;  %v2956_v48 = vadd.f32 %v2955_v49, %v2810_v55 }
 0x451   : > { %3315 = vst [vmem:[%s6307_s9 + $0x40] sm:$0xff] %v3299_v20  ;;  %v3302_v8 = vadd.f32 %v3286_v37, %v3189_v52  ;;  %v3187_v54 = vadd.f32 %v3171_v51, %v2956_v48  ;;  %v3696_v61 = vpop.f32.mrf.mxu0 }
 0x452   : > { %v2977_v0 = vadd.f32 %v3720_v18, %v3696_v61 }
 0x453   : > { %3318 = vst [vmem:[%s6307_s9 + $0x58] sm:$0xff] %v3302_v8  ;;  %v3300_v50 = vadd.f32 %v3284_v44, %v3187_v54  ;;  %v2823_v63 = vpop.f32.mrf.mxu0 }
 0x454   : > { %v3192_v6 = vadd.f32 %v3176_v27, %v2977_v0  ;;  %v2969_v36 = vadd.f32 %v2968_v31, %v2823_v63 }
 0x455   : > { %3316 = vst [vmem:[%s6307_s9 + $0x48] sm:$0xff] %v3300_v50  ;;  %v3697_v19 = vpop.f32.mrf.mxu0 }
 0x456   : > { %v3305_v43 = vadd.f32 %v3289_v32, %v3192_v6  ;;  %v3190_v4 = vadd.f32 %v3174_v23, %v2969_v36  ;;  %v2980_v60 = vadd.f32 %v3721_v16, %v3697_v19 }
 0x457   : > { %v2826_v29 = vpop.f32.mrf.mxu0 }
 0x458   : > { %3321 = vst [vmem:[%s6307_s9 + $0x70] sm:$0xff] %v3305_v43  ;;  %v3303_v1 = vadd.f32 %v3287_v15, %v3190_v4  ;;  %v3193_v7 = vadd.f32 %v3177_v40, %v2980_v60  ;;  %v2972_v38 = vadd.f32 %v2971_v56, %v2826_v29 }
 0x45a   : > { %3319 = vst [vmem:[%s6307_s9 + $0x60] sm:$0xff] %v3303_v1  ;;  %v3306_v13 = vadd.f32 %v3290_v39, %v3193_v7  ;;  %v3191_v24 = vadd.f32 %v3175_v25, %v2972_v38 }
 0x45c   : > { %3322 = vst [vmem:[%s6307_s9 + $0x78] sm:$0xff] %v3306_v13  ;;  %v3304_v62 = vadd.f32 %v3288_v41, %v3191_v24 }
 0x45e   : > { %3320 = vst [vmem:[%s6307_s9 + $0x68] sm:$0xff] %v3304_v62 }
 0x45f   : > { %4124 = shalt.err (!%p4121_p5)
}
 0x460   : > { %s4125_s29 = scalar_lea.hbm %s6392_s14, 2048  ;;  %s4129_s6 = scalar_lea.hbm %s6449_s4, 4096 }
 0x461   : > { %p4126_p6 = scmp.ne.s32.totalorder %s6392_s14, %s4125_s29  ;;  %p4130_p10 = scmp.lt.s32.totalorder %s6392_s14, %s6449_s4 }
 0x462   : > { %p4131_p11 = scmp.lt.s32.totalorder %s4129_s6, %s4125_s29 }
 0x463   : > { %p4127_p7 = pnand %p4126_p6, %p4264_p4 }
 0x464   : > { %p4132_p12 = por %p4131_p11, %p4130_p10 }
 0x465   : > { %p4128_p9 = pneg %p4127_p7 }
 0x467   : > { %p4133_p13 = pnand %p4132_p12, %p4128_p9 }
 0x469   : > { %4136 = shalt.err (!%p4133_p13)
}
 0x46a   : > { %s4197_s9 = smov 128   ;;  %s4198_s10 = smov 8  }
 0x46b   : > { %3722 = dma.vmem_to_hbm [thread:$0]  (%p4264_p4), %s6394_s11, 2048, %s6392_s14, %s6400_s18, %s4197_s9, %s4197_s9, %s4198_s10  }
 0x46c PF: > { %p3728_p0 = scmp.ge.s32.totalorder %s4187_s20, 2  ;;  %s3354_s12 = sand.u32 1, %s4167_s15  }
 0x46d   : > { %s3355_s13 = scalar_lea.sflag [#allocation3], %s3354_s12 }
 0x46e   : > { %p3725_p1 = pnand %p3728_p0, %p4271_p8 }
 0x470   : > { %p3726_p2 = pneg %p3725_p1 }
 0x472   : > { %4162 = dma.done.wait (%p3726_p2), %s3355_s13, 2048  }
 0x473   : > { %4164 = vsyncadd (%p3726_p2), %s3355_s13, 4294965248  ;;  %s17_s20 = sadd.s32 1, %s4187_s20   ;;  %s6828_s15 = smov %s4171_s16 }
 0x474   : > { %p14_p3 = scmp.ge.s32.totalorder %s17_s20, 4   ;;  %s6829_s16 = smov %s4175_s17 }
 0x475   : > { %s6830_s17 = smov %s4277_s28  ;;  %s6831_s18 = smov %s4183_s19 }
 0x476   : > { %s6832_s19 = smov %s6834_s23  ;;  %16 = sbr.rel (!%p14_p3) target bundleno = 4 (0x4), region = 79 }
 0x47b   :  { %3360 = vsyncpa [#allocation3], 1 }
 0x47c   :  { %3362 = vsyncpa [#allocation3 + $0x1], 1 }

</bundles_post_ra>
